<compile_context>
chip_gen: v6e
topology: v6e:2x2x1
jax: 0.10.0
libtpu: 0.0.40
codegen_flags: <defaults>
</compile_context>

<pallas_src>
import functools

import jax
import jax.numpy as jnp
from jax.experimental import pallas as pl
from jax.experimental.pallas import tpu as pltpu

EPS = 1e-5
LANE = 128


def _round_up(x, m):
    return (x + m - 1) // m * m


# ------------------------------ kernel helpers ------------------------------

def _bn_relu_phases(x_ref, mask_ref, scale, bias, s):
    """BN-affine + ReLU each of the s*s phase planes of the zero-padded input,
    re-zero the conv halo via the precomputed mask (AFTER BN+ReLU), and cast to
    bf16 once per phase (not once per tap)."""
    phases = {}
    for ph in range(s):
        for pw in range(s):
            i = ph * s + pw
            v = x_ref[i].astype(jnp.float32)                 # (Hq, Wq, Cin)
            v = jnp.maximum(v * scale + bias, 0.0)           # f32 VPU math
            v = v * mask_ref[i]                              # halo -> exact 0
            phases[(ph, pw)] = v.astype(jnp.bfloat16)
    return phases


def _conv_from_phases(phases, w_ref, s, Ho, Wo):
    """3x3 (possibly strided) conv: 9 per-tap bf16 MXU dots, f32 accumulate."""
    M = Ho * Wo
    acc = None
    for kh in range(3):
        for kw in range(3):
            v = phases[(kh % s, kw % s)]
            oh, ow = kh // s, kw // s
            tap = v[oh:oh + Ho, ow:ow + Wo, :].reshape(M, v.shape[-1])
            d = jnp.dot(tap, w_ref[kh * 3 + kw], preferred_element_type=jnp.float32)
            acc = d if acc is None else acc + d
    return acc                                               # (M, Cp) f32


def _conv_from_scratch(c1_scr, w_ref, Ho, Wo):
    """3x3 stride-1 conv over the zero-haloed bf16 VMEM scratch."""
    M = Ho * Wo
    C = c1_scr.shape[-1]
    acc = None
    for kh in range(3):
        for kw in range(3):
            tap = c1_scr[kh:kh + Ho, kw:kw + Wo, :].reshape(M, C)
            d = jnp.dot(tap, w_ref[kh * 3 + kw], preferred_element_type=jnp.float32)
            acc = d if acc is None else acc + d
    return acc


def _center_tap(x_ref, s, Ho, Wo):
    """Raw (pre-BN1) input sampled at the shortcut stride: exactly the
    (kh=1, kw=1) tap of the phase-decomposed padded input."""
    ph, oh = 1 % s, 1 // s
    v = x_ref[ph * s + ph]
    v = v[oh:oh + Ho, oh:oh + Wo, :]
    return v.reshape(Ho * Wo, v.shape[-1])                   # (M, Cin)


def _block_body(x_ref, mask_ref, s1_ref, b1_ref, w1_ref, s2_ref, b2_ref, w2_ref,
                c1_scr, *, stride, Ho, Wo):
    """conv1 -> BN2+ReLU -> bf16 VMEM scratch (zero halo) -> conv2; returns f32 acc."""
    phases = _bn_relu_phases(x_ref, mask_ref, s1_ref[...], b1_ref[...], stride)
    acc1 = _conv_from_phases(phases, w1_ref, stride, Ho, Wo)        # conv1

    c1 = jnp.maximum(acc1 * s2_ref[...] + b2_ref[...], 0.0)         # BN2 + ReLU (f32)
    c1_scr[...] = jnp.zeros_like(c1_scr)                            # halo ring = 0
    c1_scr[1:Ho + 1, 1:Wo + 1, :] = (
        c1.reshape(Ho, Wo, c1.shape[-1]).astype(c1_scr.dtype))      # bf16 stage

    return _conv_from_scratch(c1_scr, w2_ref, Ho, Wo)               # conv2


def _block_kernel_identity(x_ref, mask_ref, s1_ref, b1_ref, w1_ref,
                           s2_ref, b2_ref, w2_ref, o_ref, c1_scr,
                           *, stride, Ho, Wo):
    acc = _block_body(x_ref, mask_ref, s1_ref, b1_ref, w1_ref, s2_ref, b2_ref,
                      w2_ref, c1_scr, stride=stride, Ho=Ho, Wo=Wo)
    xc = _center_tap(x_ref, stride, Ho, Wo).astype(jnp.float32)     # identity residual
    padc = acc.shape[-1] - xc.shape[-1]
    if padc:                                                        # lane-pad compact x
        xc = jnp.concatenate(
            [xc, jnp.zeros((xc.shape[0], padc), jnp.float32)], axis=-1)
    o_ref[0] = (acc + xc).astype(o_ref.dtype)                       # lane-dense store


def _block_kernel_project(x_ref, mask_ref, s1_ref, b1_ref, w1_ref,
                          s2_ref, b2_ref, w2_ref, wsc_ref, ssc_ref, bsc_ref,
                          o_ref, c1_scr, *, stride, Ho, Wo):
    acc = _block_body(x_ref, mask_ref, s1_ref, b1_ref, w1_ref, s2_ref, b2_ref,
                      w2_ref, c1_scr, stride=stride, Ho=Ho, Wo=Wo)
    xc = _center_tap(x_ref, stride, Ho, Wo).astype(jnp.bfloat16)    # 1x1 strided proj
    sc = jnp.dot(xc, wsc_ref[...], preferred_element_type=jnp.float32)
    o_ref[0] = (acc + sc * ssc_ref[...] + bsc_ref[...]).astype(o_ref.dtype)


# ------------------------------ host-side prep ------------------------------

def _fold_bn(gamma, beta, rm, rv, cp):
    scale = gamma / jnp.sqrt(rv + EPS)
    bias = beta - rm * scale
    c = scale.shape[0]
    scale = jnp.pad(scale, (0, cp - c)).reshape(1, cp)
    bias = jnp.pad(bias, (0, cp - c)).reshape(1, cp)
    return scale.astype(jnp.float32), bias.astype(jnp.float32)


def _prep_conv_w(w_oihw, cin_p, cout_p):
    cout, cin, kh, kw = w_oihw.shape
    w = jnp.transpose(w_oihw, (2, 3, 1, 0)).reshape(kh * kw, cin, cout)
    w = jnp.pad(w, ((0, 0), (0, cin_p - cin), (0, cout_p - cout)))
    return w.astype(jnp.bfloat16)                            # (KH*KW, cin_p, cout_p)


def _phase_decompose(x_nhwc, stride, K, pad):
    """Zero-pad spatially and space-to-depth into s*s phase planes so strided
    conv taps become plain (unstrided) in-VMEM slices."""
    N, H, W, C = x_nhwc.shape
    s = stride
    Ho = (H + 2 * pad - K) // s + 1
    Wo = (W + 2 * pad - K) // s + 1
    Hq = Ho + (K - 1) // s
    Wq = Wo + (K - 1) // s
    Hp, Wp = s * Hq, s * Wq
    assert Hp >= H + pad and Wp >= W + pad
    xp = jnp.pad(x_nhwc, ((0, 0), (pad, Hp - H - pad), (pad, Wp - W - pad), (0, 0)))
    xph = xp.reshape(N, Hq, s, Wq, s, C).transpose(0, 2, 4, 1, 3, 5)
    return xph.reshape(N * s * s, Hq, Wq, C), Ho, Wo, Hq, Wq


@functools.partial(jax.jit, static_argnums=(2,))
def wide_basic_block(x_nchw, params, stride):
    """Eval-mode forward of the residual block. NCHW in / NCHW out."""
    x = jnp.transpose(x_nchw, (0, 2, 3, 1)).astype(jnp.float32)     # NCHW -> NHWC
    N, H, W, Cin = x.shape
    Cmid = params["conv1_w"].shape[0]
    K, pad = 3, 1
    Cp = _round_up(Cmid, LANE)                 # lane-dense OUTPUT channels only

    xph, Ho, Wo, Hq, Wq = _phase_decompose(x, stride, K, pad)
    maskph, *_ = _phase_decompose(jnp.ones((1, H, W, 1), jnp.float32), stride, K, pad)
    M = Ho * Wo
    ss = stride * stride

    s1, b1 = _fold_bn(params["bn1_w"], params["bn1_b"],
                      params["bn1_rm"], params["bn1_rv"], Cin)       # compact Cin
    s2, b2 = _fold_bn(params["bn2_w"], params["bn2_b"],
                      params["bn2_rm"], params["bn2_rv"], Cp)
    w1 = _prep_conv_w(params["conv1_w"], Cin, Cp)                    # (9, Cin, Cp)
    w2 = _prep_conv_w(params["conv2_w"], Cp, Cp)                     # (9, Cp, Cp)

    project = (stride != 1) or (Cin != Cmid)

    in_specs = [
        pl.BlockSpec((ss, Hq, Wq, Cin), lambda n: (n, 0, 0, 0)),     # per-image phases
        pl.BlockSpec((ss, Hq, Wq, 1), lambda n: (0, 0, 0, 0)),       # resident halo mask
        pl.BlockSpec((1, Cin), lambda n: (0, 0)),                    # bn1 scale
        pl.BlockSpec((1, Cin), lambda n: (0, 0)),                    # bn1 bias
        pl.BlockSpec((K * K, Cin, Cp), lambda n: (0, 0, 0)),         # w1 (resident)
        pl.BlockSpec((1, Cp), lambda n: (0, 0)),                     # bn2 scale
        pl.BlockSpec((1, Cp), lambda n: (0, 0)),                     # bn2 bias
        pl.BlockSpec((K * K, Cp, Cp), lambda n: (0, 0, 0)),          # w2 (resident)
    ]
    args = [xph, maskph, s1, b1, w1, s2, b2, w2]

    if project:
        ssc, bsc = _fold_bn(params["sc_bn_w"], params["sc_bn_b"],
                            params["sc_bn_rm"], params["sc_bn_rv"], Cp)
        wsc = _prep_conv_w(params["sc_conv_w"], Cin, Cp)[0]          # (Cin, Cp) bf16
        in_specs += [pl.BlockSpec((Cin, Cp), lambda n: (0, 0)),
                     pl.BlockSpec((1, Cp), lambda n: (0, 0)),
                     pl.BlockSpec((1, Cp), lambda n: (0, 0))]
        args += [wsc, ssc, bsc]
        kern = functools.partial(_block_kernel_project, stride=stride, Ho=Ho, Wo=Wo)
    else:
        kern = functools.partial(_block_kernel_identity, stride=stride, Ho=Ho, Wo=Wo)

    out = pl.pallas_call(
        kern,
        out_shape=jax.ShapeDtypeStruct((N, M, Cp), jnp.float32),
        grid=(N,),
        in_specs=in_specs,
        out_specs=pl.BlockSpec((1, M, Cp), lambda n: (n, 0, 0)),
        scratch_shapes=[pltpu.VMEM((Ho + 2, Wo + 2, Cp), jnp.bfloat16)],
        compiler_params=pltpu.CompilerParams(dimension_semantics=("parallel",)),
    )(*args)

    out = out.reshape(N, Ho, Wo, Cp)[..., :Cmid]
    return jnp.transpose(out, (0, 3, 1, 2))                          # NHWC -> NCHW


# --------------------------- pure-JAX reference -----------------------------

def _ref_bn(x, w, b, rm, rv):
    sh = (1, -1, 1, 1)
    return (x - rm.reshape(sh)) / jnp.sqrt(rv.reshape(sh) + EPS) * w.reshape(sh) + b.reshape(sh)


def _ref_conv(x, w, stride, pad):
    return jax.lax.conv_general_dilated(
        x, w, (stride, stride), [(pad, pad), (pad, pad)],
        dimension_numbers=("NCHW", "OIHW", "NCHW"),
        precision=jax.lax.Precision.HIGHEST)


def ref_block(x, p, stride, in_planes, planes):
    out = _ref_conv(jax.nn.relu(_ref_bn(x, p["bn1_w"], p["bn1_b"], p["bn1_rm"], p["bn1_rv"])),
                    p["conv1_w"], stride, 1)
    out = _ref_conv(jax.nn.relu(_ref_bn(out, p["bn2_w"], p["bn2_b"], p["bn2_rm"], p["bn2_rv"])),
                    p["conv2_w"], 1, 1)
    if stride != 1 or in_planes != planes:
        sc = _ref_conv(x, p["sc_conv_w"], stride, 0)
        sc = _ref_bn(sc, p["sc_bn_w"], p["sc_bn_b"], p["sc_bn_rm"], p["sc_bn_rv"])
    else:
        sc = x
    return out + sc


# --------------------------------- main --------------------------------------

def make_params(key, in_planes, planes):
    ks = jax.random.split(key, 16)
    def bn_p(i, c):
        return {"w": jax.random.uniform(ks[i], (c,), jnp.float32, 0.5, 1.5),
                "b": jax.random.normal(ks[i + 1], (c,), jnp.float32) * 0.1,
                "rm": jax.random.normal(ks[i + 2], (c,), jnp.float32) * 0.1,
                "rv": jax.random.uniform(ks[i + 3], (c,), jnp.float32, 0.5, 1.5)}
    bn1, bn2, bnsc = bn_p(0, in_planes), bn_p(4, planes), bn_p(8, planes)
    p = {f"bn1_{k}": v for k, v in bn1.items()}
    p.update({f"bn2_{k}": v for k, v in bn2.items()})
    p.update({f"sc_bn_{k}": v for k, v in bnsc.items()})
    p["conv1_w"] = jax.random.normal(ks[12], (planes, in_planes, 3, 3), jnp.float32) * (2.0 / (in_planes * 9)) ** 0.5
    p["conv2_w"] = jax.random.normal(ks[13], (planes, planes, 3, 3), jnp.float32) * (2.0 / (planes * 9)) ** 0.5
    p["sc_conv_w"] = jax.random.normal(ks[14], (planes, in_planes, 1, 1), jnp.float32) * (2.0 / in_planes) ** 0.5
    return p


if __name__ == "__main__":
    key = jax.random.PRNGKey(0)
    kx, kp, kx2, kp2 = jax.random.split(key, 4)

    # bf16 MXU operands (f32 accumulate) -> looser tolerance than pure f32.
    TOL = 5e-2

    # config 1: projection shortcut (stride 2, channel expansion)
    N, in_planes, planes, H, W, stride = 2, 4, 8, 16, 16, 2
    x = jax.random.normal(kx, (N, in_planes, H, W), jnp.float32)      # PyTorch NCHW
    params = make_params(kp, in_planes, planes)
    out = jax.block_until_ready(wide_basic_block(x, params, stride))
    ref = ref_block(x, params, stride, in_planes, planes)
    assert out.shape == (N, planes, H // stride, W // stride), out.shape
    assert jnp.allclose(out, ref, rtol=TOL, atol=TOL), float(jnp.max(jnp.abs(out - ref)))

    # config 2: identity shortcut (stride 1, same width)
    x2 = jax.random.normal(kx2, (N, planes, H, W), jnp.float32)
    params2 = make_params(kp2, planes, planes)
    out2 = jax.block_until_ready(wide_basic_block(x2, params2, 1))
    ref2 = ref_block(x2, params2, 1, planes, planes)
    assert out2.shape == (N, planes, H, W), out2.shape
    assert jnp.allclose(out2, ref2, rtol=TOL, atol=TOL), float(jnp.max(jnp.abs(out2 - ref2)))

    print("KERNEL_OK")
</pallas_src>

<mosaic_0001>
module attributes {stable_mosaic.version = 11 : i64} {
  func.func @_block_kernel_project(%arg0: i32, %arg1: memref<4x9x9x4xf32, #tpu.memory_space<vmem>>, %arg2: memref<4x9x9x1xf32, #tpu.memory_space<vmem>>, %arg3: memref<1x4xf32, #tpu.memory_space<vmem>>, %arg4: memref<1x4xf32, #tpu.memory_space<vmem>>, %arg5: memref<9x4x128xbf16, #tpu.memory_space<vmem>>, %arg6: memref<1x128xf32, #tpu.memory_space<vmem>>, %arg7: memref<1x128xf32, #tpu.memory_space<vmem>>, %arg8: memref<9x128x128xbf16, #tpu.memory_space<vmem>>, %arg9: memref<4x128xbf16, #tpu.memory_space<vmem>>, %arg10: memref<1x128xf32, #tpu.memory_space<vmem>>, %arg11: memref<1x128xf32, #tpu.memory_space<vmem>>, %arg12: memref<1x64x128xf32, #tpu.memory_space<vmem>>, %arg13: memref<10x10x128xbf16, #tpu.memory_space<vmem>>) attributes {dimension_semantics = [#tpu.dimension_semantics<parallel>], iteration_bounds = array<i64: 2>, scalar_prefetch = 0 : i64, scratch_operands = 1 : i64, tpu.core_type = #tpu.core_type<tc>, window_params = [{transform_indices = @transform_0, window_bounds = array<i64: 4, 9, 9, 4>}, {pipeline_mode = #tpu.pipeline_mode<synchronous>, transform_indices = @transform_1, window_bounds = array<i64: 4, 9, 9, 1>}, {pipeline_mode = #tpu.pipeline_mode<synchronous>, transform_indices = @transform_2, window_bounds = array<i64: 1, 4>}, {pipeline_mode = #tpu.pipeline_mode<synchronous>, transform_indices = @transform_3, window_bounds = array<i64: 1, 4>}, {pipeline_mode = #tpu.pipeline_mode<synchronous>, transform_indices = @transform_4, window_bounds = array<i64: 9, 4, 128>}, {pipeline_mode = #tpu.pipeline_mode<synchronous>, transform_indices = @transform_5, window_bounds = array<i64: 1, 128>}, {pipeline_mode = #tpu.pipeline_mode<synchronous>, transform_indices = @transform_6, window_bounds = array<i64: 1, 128>}, {pipeline_mode = #tpu.pipeline_mode<synchronous>, transform_indices = @transform_7, window_bounds = array<i64: 9, 128, 128>}, {pipeline_mode = #tpu.pipeline_mode<synchronous>, transform_indices = @transform_8, window_bounds = array<i64: 4, 128>}, {pipeline_mode = #tpu.pipeline_mode<synchronous>, transform_indices = @transform_9, window_bounds = array<i64: 1, 128>}, {pipeline_mode = #tpu.pipeline_mode<synchronous>, transform_indices = @transform_10, window_bounds = array<i64: 1, 128>}, {transform_indices = @transform_11, window_bounds = array<i64: 1, 64, 128>}]} {
    %c0 = arith.constant 0 : index
    %c0_0 = arith.constant 0 : index
    %0 = vector.load %arg3[%c0, %c0_0] : memref<1x4xf32, #tpu.memory_space<vmem>>, vector<1x4xf32>
    %c0_1 = arith.constant 0 : index
    %c0_2 = arith.constant 0 : index
    %1 = vector.load %arg4[%c0_1, %c0_2] : memref<1x4xf32, #tpu.memory_space<vmem>>, vector<1x4xf32>
    %c0_3 = arith.constant 0 : index
    %c0_4 = arith.constant 0 : index
    %c0_5 = arith.constant 0 : index
    %c0_6 = arith.constant 0 : index
    %2 = vector.load %arg1[%c0_3, %c0_4, %c0_5, %c0_6] : memref<4x9x9x4xf32, #tpu.memory_space<vmem>>, vector<1x9x9x4xf32>
    %3 = vector.shape_cast %2 : vector<1x9x9x4xf32> to vector<9x9x4xf32>
    %4 = vector.shape_cast %0 : vector<1x4xf32> to vector<1x1x4xf32>
    %5 = vector.broadcast %4 : vector<1x1x4xf32> to vector<9x9x4xf32>
    %6 = arith.mulf %3, %5 : vector<9x9x4xf32>
    %7 = vector.shape_cast %1 : vector<1x4xf32> to vector<1x1x4xf32>
    %8 = vector.broadcast %7 : vector<1x1x4xf32> to vector<9x9x4xf32>
    %9 = arith.addf %6, %8 : vector<9x9x4xf32>
    %cst = arith.constant 0.000000e+00 : f32
    %10 = vector.broadcast %cst : f32 to vector<9x9x4xf32>
    %11 = arith.maximumf %9, %10 : vector<9x9x4xf32>
    %c0_7 = arith.constant 0 : index
    %c0_8 = arith.constant 0 : index
    %c0_9 = arith.constant 0 : index
    %c0_10 = arith.constant 0 : index
    %12 = vector.load %arg2[%c0_7, %c0_8, %c0_9, %c0_10] : memref<4x9x9x1xf32, #tpu.memory_space<vmem>>, vector<1x9x9x1xf32>
    %13 = vector.shape_cast %12 : vector<1x9x9x1xf32> to vector<9x9x1xf32>
    %14 = vector.broadcast %13 : vector<9x9x1xf32> to vector<9x9x4xf32>
    %15 = arith.mulf %11, %14 : vector<9x9x4xf32>
    %16 = arith.truncf %15 : vector<9x9x4xf32> to vector<9x9x4xbf16>
    %c1 = arith.constant 1 : index
    %c0_11 = arith.constant 0 : index
    %c0_12 = arith.constant 0 : index
    %c0_13 = arith.constant 0 : index
    %17 = vector.load %arg1[%c1, %c0_11, %c0_12, %c0_13] : memref<4x9x9x4xf32, #tpu.memory_space<vmem>>, vector<1x9x9x4xf32>
    %18 = vector.shape_cast %17 : vector<1x9x9x4xf32> to vector<9x9x4xf32>
    %19 = vector.shape_cast %0 : vector<1x4xf32> to vector<1x1x4xf32>
    %20 = vector.broadcast %19 : vector<1x1x4xf32> to vector<9x9x4xf32>
    %21 = arith.mulf %18, %20 : vector<9x9x4xf32>
    %22 = vector.shape_cast %1 : vector<1x4xf32> to vector<1x1x4xf32>
    %23 = vector.broadcast %22 : vector<1x1x4xf32> to vector<9x9x4xf32>
    %24 = arith.addf %21, %23 : vector<9x9x4xf32>
    %cst_14 = arith.constant 0.000000e+00 : f32
    %25 = vector.broadcast %cst_14 : f32 to vector<9x9x4xf32>
    %26 = arith.maximumf %24, %25 : vector<9x9x4xf32>
    %c1_15 = arith.constant 1 : index
    %c0_16 = arith.constant 0 : index
    %c0_17 = arith.constant 0 : index
    %c0_18 = arith.constant 0 : index
    %27 = vector.load %arg2[%c1_15, %c0_16, %c0_17, %c0_18] : memref<4x9x9x1xf32, #tpu.memory_space<vmem>>, vector<1x9x9x1xf32>
    %28 = vector.shape_cast %27 : vector<1x9x9x1xf32> to vector<9x9x1xf32>
    %29 = vector.broadcast %28 : vector<9x9x1xf32> to vector<9x9x4xf32>
    %30 = arith.mulf %26, %29 : vector<9x9x4xf32>
    %31 = arith.truncf %30 : vector<9x9x4xf32> to vector<9x9x4xbf16>
    %c2 = arith.constant 2 : index
    %c0_19 = arith.constant 0 : index
    %c0_20 = arith.constant 0 : index
    %c0_21 = arith.constant 0 : index
    %32 = vector.load %arg1[%c2, %c0_19, %c0_20, %c0_21] : memref<4x9x9x4xf32, #tpu.memory_space<vmem>>, vector<1x9x9x4xf32>
    %33 = vector.shape_cast %32 : vector<1x9x9x4xf32> to vector<9x9x4xf32>
    %34 = vector.shape_cast %0 : vector<1x4xf32> to vector<1x1x4xf32>
    %35 = vector.broadcast %34 : vector<1x1x4xf32> to vector<9x9x4xf32>
    %36 = arith.mulf %33, %35 : vector<9x9x4xf32>
    %37 = vector.shape_cast %1 : vector<1x4xf32> to vector<1x1x4xf32>
    %38 = vector.broadcast %37 : vector<1x1x4xf32> to vector<9x9x4xf32>
    %39 = arith.addf %36, %38 : vector<9x9x4xf32>
    %cst_22 = arith.constant 0.000000e+00 : f32
    %40 = vector.broadcast %cst_22 : f32 to vector<9x9x4xf32>
    %41 = arith.maximumf %39, %40 : vector<9x9x4xf32>
    %c2_23 = arith.constant 2 : index
    %c0_24 = arith.constant 0 : index
    %c0_25 = arith.constant 0 : index
    %c0_26 = arith.constant 0 : index
    %42 = vector.load %arg2[%c2_23, %c0_24, %c0_25, %c0_26] : memref<4x9x9x1xf32, #tpu.memory_space<vmem>>, vector<1x9x9x1xf32>
    %43 = vector.shape_cast %42 : vector<1x9x9x1xf32> to vector<9x9x1xf32>
    %44 = vector.broadcast %43 : vector<9x9x1xf32> to vector<9x9x4xf32>
    %45 = arith.mulf %41, %44 : vector<9x9x4xf32>
    %46 = arith.truncf %45 : vector<9x9x4xf32> to vector<9x9x4xbf16>
    %c3 = arith.constant 3 : index
    %c0_27 = arith.constant 0 : index
    %c0_28 = arith.constant 0 : index
    %c0_29 = arith.constant 0 : index
    %47 = vector.load %arg1[%c3, %c0_27, %c0_28, %c0_29] : memref<4x9x9x4xf32, #tpu.memory_space<vmem>>, vector<1x9x9x4xf32>
    %48 = vector.shape_cast %47 : vector<1x9x9x4xf32> to vector<9x9x4xf32>
    %49 = vector.shape_cast %0 : vector<1x4xf32> to vector<1x1x4xf32>
    %50 = vector.broadcast %49 : vector<1x1x4xf32> to vector<9x9x4xf32>
    %51 = arith.mulf %48, %50 : vector<9x9x4xf32>
    %52 = vector.shape_cast %1 : vector<1x4xf32> to vector<1x1x4xf32>
    %53 = vector.broadcast %52 : vector<1x1x4xf32> to vector<9x9x4xf32>
    %54 = arith.addf %51, %53 : vector<9x9x4xf32>
    %cst_30 = arith.constant 0.000000e+00 : f32
    %55 = vector.broadcast %cst_30 : f32 to vector<9x9x4xf32>
    %56 = arith.maximumf %54, %55 : vector<9x9x4xf32>
    %c3_31 = arith.constant 3 : index
    %c0_32 = arith.constant 0 : index
    %c0_33 = arith.constant 0 : index
    %c0_34 = arith.constant 0 : index
    %57 = vector.load %arg2[%c3_31, %c0_32, %c0_33, %c0_34] : memref<4x9x9x1xf32, #tpu.memory_space<vmem>>, vector<1x9x9x1xf32>
    %58 = vector.shape_cast %57 : vector<1x9x9x1xf32> to vector<9x9x1xf32>
    %59 = vector.broadcast %58 : vector<9x9x1xf32> to vector<9x9x4xf32>
    %60 = arith.mulf %56, %59 : vector<9x9x4xf32>
    %61 = arith.truncf %60 : vector<9x9x4xf32> to vector<9x9x4xbf16>
    %62 = vector.extract_strided_slice %16 {offsets = [0, 0, 0], sizes = [8, 8, 4], strides = [1, 1, 1]} : vector<9x9x4xbf16> to vector<8x8x4xbf16>
    %63 = vector.shape_cast %62 : vector<8x8x4xbf16> to vector<64x4xbf16>
    %c0_35 = arith.constant 0 : index
    %c0_36 = arith.constant 0 : index
    %c0_37 = arith.constant 0 : index
    %64 = vector.load %arg5[%c0_35, %c0_36, %c0_37] : memref<9x4x128xbf16, #tpu.memory_space<vmem>>, vector<1x4x128xbf16>
    %65 = vector.shape_cast %64 : vector<1x4x128xbf16> to vector<4x128xbf16>
    %cst_38 = arith.constant dense<0.000000e+00> : vector<64x128xf32>
    %66 = tpu.matmul %63, %65, %cst_38 {dimension_numbers = #tpu.dot_dimension_numbers<[1], [0], [0], [1], [0, 0, 1, 1], [], []>} : vector<64x4xbf16>, vector<4x128xbf16>, vector<64x128xf32> -> vector<64x128xf32>
    %67 = vector.extract_strided_slice %31 {offsets = [0, 0, 0], sizes = [8, 8, 4], strides = [1, 1, 1]} : vector<9x9x4xbf16> to vector<8x8x4xbf16>
    %68 = vector.shape_cast %67 : vector<8x8x4xbf16> to vector<64x4xbf16>
    %c1_39 = arith.constant 1 : index
    %c0_40 = arith.constant 0 : index
    %c0_41 = arith.constant 0 : index
    %69 = vector.load %arg5[%c1_39, %c0_40, %c0_41] : memref<9x4x128xbf16, #tpu.memory_space<vmem>>, vector<1x4x128xbf16>
    %70 = vector.shape_cast %69 : vector<1x4x128xbf16> to vector<4x128xbf16>
    %cst_42 = arith.constant dense<0.000000e+00> : vector<64x128xf32>
    %71 = tpu.matmul %68, %70, %cst_42 {dimension_numbers = #tpu.dot_dimension_numbers<[1], [0], [0], [1], [0, 0, 1, 1], [], []>} : vector<64x4xbf16>, vector<4x128xbf16>, vector<64x128xf32> -> vector<64x128xf32>
    %72 = arith.addf %66, %71 : vector<64x128xf32>
    %73 = vector.extract_strided_slice %16 {offsets = [0, 1, 0], sizes = [8, 8, 4], strides = [1, 1, 1]} : vector<9x9x4xbf16> to vector<8x8x4xbf16>
    %74 = vector.shape_cast %73 : vector<8x8x4xbf16> to vector<64x4xbf16>
    %c2_43 = arith.constant 2 : index
    %c0_44 = arith.constant 0 : index
    %c0_45 = arith.constant 0 : index
    %75 = vector.load %arg5[%c2_43, %c0_44, %c0_45] : memref<9x4x128xbf16, #tpu.memory_space<vmem>>, vector<1x4x128xbf16>
    %76 = vector.shape_cast %75 : vector<1x4x128xbf16> to vector<4x128xbf16>
    %cst_46 = arith.constant dense<0.000000e+00> : vector<64x128xf32>
    %77 = tpu.matmul %74, %76, %cst_46 {dimension_numbers = #tpu.dot_dimension_numbers<[1], [0], [0], [1], [0, 0, 1, 1], [], []>} : vector<64x4xbf16>, vector<4x128xbf16>, vector<64x128xf32> -> vector<64x128xf32>
    %78 = arith.addf %72, %77 : vector<64x128xf32>
    %79 = vector.extract_strided_slice %46 {offsets = [0, 0, 0], sizes = [8, 8, 4], strides = [1, 1, 1]} : vector<9x9x4xbf16> to vector<8x8x4xbf16>
    %80 = vector.shape_cast %79 : vector<8x8x4xbf16> to vector<64x4xbf16>
    %c3_47 = arith.constant 3 : index
    %c0_48 = arith.constant 0 : index
    %c0_49 = arith.constant 0 : index
    %81 = vector.load %arg5[%c3_47, %c0_48, %c0_49] : memref<9x4x128xbf16, #tpu.memory_space<vmem>>, vector<1x4x128xbf16>
    %82 = vector.shape_cast %81 : vector<1x4x128xbf16> to vector<4x128xbf16>
    %cst_50 = arith.constant dense<0.000000e+00> : vector<64x128xf32>
    %83 = tpu.matmul %80, %82, %cst_50 {dimension_numbers = #tpu.dot_dimension_numbers<[1], [0], [0], [1], [0, 0, 1, 1], [], []>} : vector<64x4xbf16>, vector<4x128xbf16>, vector<64x128xf32> -> vector<64x128xf32>
    %84 = arith.addf %78, %83 : vector<64x128xf32>
    %85 = vector.extract_strided_slice %61 {offsets = [0, 0, 0], sizes = [8, 8, 4], strides = [1, 1, 1]} : vector<9x9x4xbf16> to vector<8x8x4xbf16>
    %86 = vector.shape_cast %85 : vector<8x8x4xbf16> to vector<64x4xbf16>
    %c4 = arith.constant 4 : index
    %c0_51 = arith.constant 0 : index
    %c0_52 = arith.constant 0 : index
    %87 = vector.load %arg5[%c4, %c0_51, %c0_52] : memref<9x4x128xbf16, #tpu.memory_space<vmem>>, vector<1x4x128xbf16>
    %88 = vector.shape_cast %87 : vector<1x4x128xbf16> to vector<4x128xbf16>
    %cst_53 = arith.constant dense<0.000000e+00> : vector<64x128xf32>
    %89 = tpu.matmul %86, %88, %cst_53 {dimension_numbers = #tpu.dot_dimension_numbers<[1], [0], [0], [1], [0, 0, 1, 1], [], []>} : vector<64x4xbf16>, vector<4x128xbf16>, vector<64x128xf32> -> vector<64x128xf32>
    %90 = arith.addf %84, %89 : vector<64x128xf32>
    %91 = vector.extract_strided_slice %46 {offsets = [0, 1, 0], sizes = [8, 8, 4], strides = [1, 1, 1]} : vector<9x9x4xbf16> to vector<8x8x4xbf16>
    %92 = vector.shape_cast %91 : vector<8x8x4xbf16> to vector<64x4xbf16>
    %c5 = arith.constant 5 : index
    %c0_54 = arith.constant 0 : index
    %c0_55 = arith.constant 0 : index
    %93 = vector.load %arg5[%c5, %c0_54, %c0_55] : memref<9x4x128xbf16, #tpu.memory_space<vmem>>, vector<1x4x128xbf16>
    %94 = vector.shape_cast %93 : vector<1x4x128xbf16> to vector<4x128xbf16>
    %cst_56 = arith.constant dense<0.000000e+00> : vector<64x128xf32>
    %95 = tpu.matmul %92, %94, %cst_56 {dimension_numbers = #tpu.dot_dimension_numbers<[1], [0], [0], [1], [0, 0, 1, 1], [], []>} : vector<64x4xbf16>, vector<4x128xbf16>, vector<64x128xf32> -> vector<64x128xf32>
    %96 = arith.addf %90, %95 : vector<64x128xf32>
    %97 = vector.extract_strided_slice %16 {offsets = [1, 0, 0], sizes = [8, 8, 4], strides = [1, 1, 1]} : vector<9x9x4xbf16> to vector<8x8x4xbf16>
    %98 = vector.shape_cast %97 : vector<8x8x4xbf16> to vector<64x4xbf16>
    %c6 = arith.constant 6 : index
    %c0_57 = arith.constant 0 : index
    %c0_58 = arith.constant 0 : index
    %99 = vector.load %arg5[%c6, %c0_57, %c0_58] : memref<9x4x128xbf16, #tpu.memory_space<vmem>>, vector<1x4x128xbf16>
    %100 = vector.shape_cast %99 : vector<1x4x128xbf16> to vector<4x128xbf16>
    %cst_59 = arith.constant dense<0.000000e+00> : vector<64x128xf32>
    %101 = tpu.matmul %98, %100, %cst_59 {dimension_numbers = #tpu.dot_dimension_numbers<[1], [0], [0], [1], [0, 0, 1, 1], [], []>} : vector<64x4xbf16>, vector<4x128xbf16>, vector<64x128xf32> -> vector<64x128xf32>
    %102 = arith.addf %96, %101 : vector<64x128xf32>
    %103 = vector.extract_strided_slice %31 {offsets = [1, 0, 0], sizes = [8, 8, 4], strides = [1, 1, 1]} : vector<9x9x4xbf16> to vector<8x8x4xbf16>
    %104 = vector.shape_cast %103 : vector<8x8x4xbf16> to vector<64x4xbf16>
    %c7 = arith.constant 7 : index
    %c0_60 = arith.constant 0 : index
    %c0_61 = arith.constant 0 : index
    %105 = vector.load %arg5[%c7, %c0_60, %c0_61] : memref<9x4x128xbf16, #tpu.memory_space<vmem>>, vector<1x4x128xbf16>
    %106 = vector.shape_cast %105 : vector<1x4x128xbf16> to vector<4x128xbf16>
    %cst_62 = arith.constant dense<0.000000e+00> : vector<64x128xf32>
    %107 = tpu.matmul %104, %106, %cst_62 {dimension_numbers = #tpu.dot_dimension_numbers<[1], [0], [0], [1], [0, 0, 1, 1], [], []>} : vector<64x4xbf16>, vector<4x128xbf16>, vector<64x128xf32> -> vector<64x128xf32>
    %108 = arith.addf %102, %107 : vector<64x128xf32>
    %109 = vector.extract_strided_slice %16 {offsets = [1, 1, 0], sizes = [8, 8, 4], strides = [1, 1, 1]} : vector<9x9x4xbf16> to vector<8x8x4xbf16>
    %110 = vector.shape_cast %109 : vector<8x8x4xbf16> to vector<64x4xbf16>
    %c8 = arith.constant 8 : index
    %c0_63 = arith.constant 0 : index
    %c0_64 = arith.constant 0 : index
    %111 = vector.load %arg5[%c8, %c0_63, %c0_64] : memref<9x4x128xbf16, #tpu.memory_space<vmem>>, vector<1x4x128xbf16>
    %112 = vector.shape_cast %111 : vector<1x4x128xbf16> to vector<4x128xbf16>
    %cst_65 = arith.constant dense<0.000000e+00> : vector<64x128xf32>
    %113 = tpu.matmul %110, %112, %cst_65 {dimension_numbers = #tpu.dot_dimension_numbers<[1], [0], [0], [1], [0, 0, 1, 1], [], []>} : vector<64x4xbf16>, vector<4x128xbf16>, vector<64x128xf32> -> vector<64x128xf32>
    %114 = arith.addf %108, %113 : vector<64x128xf32>
    %c0_66 = arith.constant 0 : index
    %c0_67 = arith.constant 0 : index
    %115 = vector.load %arg6[%c0_66, %c0_67] : memref<1x128xf32, #tpu.memory_space<vmem>>, vector<1x128xf32>
    %116 = vector.broadcast %115 : vector<1x128xf32> to vector<64x128xf32>
    %117 = arith.mulf %114, %116 : vector<64x128xf32>
    %c0_68 = arith.constant 0 : index
    %c0_69 = arith.constant 0 : index
    %118 = vector.load %arg7[%c0_68, %c0_69] : memref<1x128xf32, #tpu.memory_space<vmem>>, vector<1x128xf32>
    %119 = vector.broadcast %118 : vector<1x128xf32> to vector<64x128xf32>
    %120 = arith.addf %117, %119 : vector<64x128xf32>
    %cst_70 = arith.constant 0.000000e+00 : f32
    %121 = vector.broadcast %cst_70 : f32 to vector<64x128xf32>
    %122 = arith.maximumf %120, %121 : vector<64x128xf32>
    %cst_71 = arith.constant 0.000000e+00 : bf16
    %123 = vector.broadcast %cst_71 : bf16 to vector<10x10x128xbf16>
    %c0_72 = arith.constant 0 : index
    %c0_73 = arith.constant 0 : index
    %c0_74 = arith.constant 0 : index
    %124 = vector.load %arg13[%c0_72, %c0_73, %c0_74] : memref<10x10x128xbf16, #tpu.memory_space<vmem>>, vector<10x10x128xbf16>
    tpu.vector_store %arg13[%c0_72, %c0_73, %c0_74], %123 {strides = array<i32>} : memref<10x10x128xbf16, #tpu.memory_space<vmem>>, vector<10x10x128xbf16>,
    %125 = vector.shape_cast %122 : vector<64x128xf32> to vector<8x8x128xf32>
    %126 = arith.truncf %125 : vector<8x8x128xf32> to vector<8x8x128xbf16>
    %c1_75 = arith.constant 1 : index
    %c1_76 = arith.constant 1 : index
    %c0_77 = arith.constant 0 : index
    %127 = vector.load %arg13[%c1_75, %c1_76, %c0_77] : memref<10x10x128xbf16, #tpu.memory_space<vmem>>, vector<8x8x128xbf16>
    tpu.vector_store %arg13[%c1_75, %c1_76, %c0_77], %126 {strides = array<i32>} : memref<10x10x128xbf16, #tpu.memory_space<vmem>>, vector<8x8x128xbf16>,
    %c0_78 = arith.constant 0 : index
    %c0_79 = arith.constant 0 : index
    %c0_80 = arith.constant 0 : index
    %128 = vector.load %arg13[%c0_78, %c0_79, %c0_80] : memref<10x10x128xbf16, #tpu.memory_space<vmem>>, vector<8x8x128xbf16>
    %129 = vector.shape_cast %128 : vector<8x8x128xbf16> to vector<64x128xbf16>
    %c0_81 = arith.constant 0 : index
    %c0_82 = arith.constant 0 : index
    %c0_83 = arith.constant 0 : index
    %130 = vector.load %arg8[%c0_81, %c0_82, %c0_83] : memref<9x128x128xbf16, #tpu.memory_space<vmem>>, vector<1x128x128xbf16>
    %131 = vector.shape_cast %130 : vector<1x128x128xbf16> to vector<128x128xbf16>
    %cst_84 = arith.constant dense<0.000000e+00> : vector<64x128xf32>
    %132 = tpu.matmul %129, %131, %cst_84 {dimension_numbers = #tpu.dot_dimension_numbers<[1], [0], [0], [1], [0, 0, 1, 1], [], []>} : vector<64x128xbf16>, vector<128x128xbf16>, vector<64x128xf32> -> vector<64x128xf32>
    %c0_85 = arith.constant 0 : index
    %c1_86 = arith.constant 1 : index
    %c0_87 = arith.constant 0 : index
    %133 = vector.load %arg13[%c0_85, %c1_86, %c0_87] : memref<10x10x128xbf16, #tpu.memory_space<vmem>>, vector<8x8x128xbf16>
    %134 = vector.shape_cast %133 : vector<8x8x128xbf16> to vector<64x128xbf16>
    %c1_88 = arith.constant 1 : index
    %c0_89 = arith.constant 0 : index
    %c0_90 = arith.constant 0 : index
    %135 = vector.load %arg8[%c1_88, %c0_89, %c0_90] : memref<9x128x128xbf16, #tpu.memory_space<vmem>>, vector<1x128x128xbf16>
    %136 = vector.shape_cast %135 : vector<1x128x128xbf16> to vector<128x128xbf16>
    %cst_91 = arith.constant dense<0.000000e+00> : vector<64x128xf32>
    %137 = tpu.matmul %134, %136, %cst_91 {dimension_numbers = #tpu.dot_dimension_numbers<[1], [0], [0], [1], [0, 0, 1, 1], [], []>} : vector<64x128xbf16>, vector<128x128xbf16>, vector<64x128xf32> -> vector<64x128xf32>
    %138 = arith.addf %132, %137 : vector<64x128xf32>
    %c0_92 = arith.constant 0 : index
    %c2_93 = arith.constant 2 : index
    %c0_94 = arith.constant 0 : index
    %139 = vector.load %arg13[%c0_92, %c2_93, %c0_94] : memref<10x10x128xbf16, #tpu.memory_space<vmem>>, vector<8x8x128xbf16>
    %140 = vector.shape_cast %139 : vector<8x8x128xbf16> to vector<64x128xbf16>
    %c2_95 = arith.constant 2 : index
    %c0_96 = arith.constant 0 : index
    %c0_97 = arith.constant 0 : index
    %141 = vector.load %arg8[%c2_95, %c0_96, %c0_97] : memref<9x128x128xbf16, #tpu.memory_space<vmem>>, vector<1x128x128xbf16>
    %142 = vector.shape_cast %141 : vector<1x128x128xbf16> to vector<128x128xbf16>
    %cst_98 = arith.constant dense<0.000000e+00> : vector<64x128xf32>
    %143 = tpu.matmul %140, %142, %cst_98 {dimension_numbers = #tpu.dot_dimension_numbers<[1], [0], [0], [1], [0, 0, 1, 1], [], []>} : vector<64x128xbf16>, vector<128x128xbf16>, vector<64x128xf32> -> vector<64x128xf32>
    %144 = arith.addf %138, %143 : vector<64x128xf32>
    %c1_99 = arith.constant 1 : index
    %c0_100 = arith.constant 0 : index
    %c0_101 = arith.constant 0 : index
    %145 = vector.load %arg13[%c1_99, %c0_100, %c0_101] : memref<10x10x128xbf16, #tpu.memory_space<vmem>>, vector<8x8x128xbf16>
    %146 = vector.shape_cast %145 : vector<8x8x128xbf16> to vector<64x128xbf16>
    %c3_102 = arith.constant 3 : index
    %c0_103 = arith.constant 0 : index
    %c0_104 = arith.constant 0 : index
    %147 = vector.load %arg8[%c3_102, %c0_103, %c0_104] : memref<9x128x128xbf16, #tpu.memory_space<vmem>>, vector<1x128x128xbf16>
    %148 = vector.shape_cast %147 : vector<1x128x128xbf16> to vector<128x128xbf16>
    %cst_105 = arith.constant dense<0.000000e+00> : vector<64x128xf32>
    %149 = tpu.matmul %146, %148, %cst_105 {dimension_numbers = #tpu.dot_dimension_numbers<[1], [0], [0], [1], [0, 0, 1, 1], [], []>} : vector<64x128xbf16>, vector<128x128xbf16>, vector<64x128xf32> -> vector<64x128xf32>
    %150 = arith.addf %144, %149 : vector<64x128xf32>
    %c1_106 = arith.constant 1 : index
    %c1_107 = arith.constant 1 : index
    %c0_108 = arith.constant 0 : index
    %151 = vector.load %arg13[%c1_106, %c1_107, %c0_108] : memref<10x10x128xbf16, #tpu.memory_space<vmem>>, vector<8x8x128xbf16>
    %152 = vector.shape_cast %151 : vector<8x8x128xbf16> to vector<64x128xbf16>
    %c4_109 = arith.constant 4 : index
    %c0_110 = arith.constant 0 : index
    %c0_111 = arith.constant 0 : index
    %153 = vector.load %arg8[%c4_109, %c0_110, %c0_111] : memref<9x128x128xbf16, #tpu.memory_space<vmem>>, vector<1x128x128xbf16>
    %154 = vector.shape_cast %153 : vector<1x128x128xbf16> to vector<128x128xbf16>
    %cst_112 = arith.constant dense<0.000000e+00> : vector<64x128xf32>
    %155 = tpu.matmul %152, %154, %cst_112 {dimension_numbers = #tpu.dot_dimension_numbers<[1], [0], [0], [1], [0, 0, 1, 1], [], []>} : vector<64x128xbf16>, vector<128x128xbf16>, vector<64x128xf32> -> vector<64x128xf32>
    %156 = arith.addf %150, %155 : vector<64x128xf32>
    %c1_113 = arith.constant 1 : index
    %c2_114 = arith.constant 2 : index
    %c0_115 = arith.constant 0 : index
    %157 = vector.load %arg13[%c1_113, %c2_114, %c0_115] : memref<10x10x128xbf16, #tpu.memory_space<vmem>>, vector<8x8x128xbf16>
    %158 = vector.shape_cast %157 : vector<8x8x128xbf16> to vector<64x128xbf16>
    %c5_116 = arith.constant 5 : index
    %c0_117 = arith.constant 0 : index
    %c0_118 = arith.constant 0 : index
    %159 = vector.load %arg8[%c5_116, %c0_117, %c0_118] : memref<9x128x128xbf16, #tpu.memory_space<vmem>>, vector<1x128x128xbf16>
    %160 = vector.shape_cast %159 : vector<1x128x128xbf16> to vector<128x128xbf16>
    %cst_119 = arith.constant dense<0.000000e+00> : vector<64x128xf32>
    %161 = tpu.matmul %158, %160, %cst_119 {dimension_numbers = #tpu.dot_dimension_numbers<[1], [0], [0], [1], [0, 0, 1, 1], [], []>} : vector<64x128xbf16>, vector<128x128xbf16>, vector<64x128xf32> -> vector<64x128xf32>
    %162 = arith.addf %156, %161 : vector<64x128xf32>
    %c2_120 = arith.constant 2 : index
    %c0_121 = arith.constant 0 : index
    %c0_122 = arith.constant 0 : index
    %163 = vector.load %arg13[%c2_120, %c0_121, %c0_122] : memref<10x10x128xbf16, #tpu.memory_space<vmem>>, vector<8x8x128xbf16>
    %164 = vector.shape_cast %163 : vector<8x8x128xbf16> to vector<64x128xbf16>
    %c6_123 = arith.constant 6 : index
    %c0_124 = arith.constant 0 : index
    %c0_125 = arith.constant 0 : index
    %165 = vector.load %arg8[%c6_123, %c0_124, %c0_125] : memref<9x128x128xbf16, #tpu.memory_space<vmem>>, vector<1x128x128xbf16>
    %166 = vector.shape_cast %165 : vector<1x128x128xbf16> to vector<128x128xbf16>
    %cst_126 = arith.constant dense<0.000000e+00> : vector<64x128xf32>
    %167 = tpu.matmul %164, %166, %cst_126 {dimension_numbers = #tpu.dot_dimension_numbers<[1], [0], [0], [1], [0, 0, 1, 1], [], []>} : vector<64x128xbf16>, vector<128x128xbf16>, vector<64x128xf32> -> vector<64x128xf32>
    %168 = arith.addf %162, %167 : vector<64x128xf32>
    %c2_127 = arith.constant 2 : index
    %c1_128 = arith.constant 1 : index
    %c0_129 = arith.constant 0 : index
    %169 = vector.load %arg13[%c2_127, %c1_128, %c0_129] : memref<10x10x128xbf16, #tpu.memory_space<vmem>>, vector<8x8x128xbf16>
    %170 = vector.shape_cast %169 : vector<8x8x128xbf16> to vector<64x128xbf16>
    %c7_130 = arith.constant 7 : index
    %c0_131 = arith.constant 0 : index
    %c0_132 = arith.constant 0 : index
    %171 = vector.load %arg8[%c7_130, %c0_131, %c0_132] : memref<9x128x128xbf16, #tpu.memory_space<vmem>>, vector<1x128x128xbf16>
    %172 = vector.shape_cast %171 : vector<1x128x128xbf16> to vector<128x128xbf16>
    %cst_133 = arith.constant dense<0.000000e+00> : vector<64x128xf32>
    %173 = tpu.matmul %170, %172, %cst_133 {dimension_numbers = #tpu.dot_dimension_numbers<[1], [0], [0], [1], [0, 0, 1, 1], [], []>} : vector<64x128xbf16>, vector<128x128xbf16>, vector<64x128xf32> -> vector<64x128xf32>
    %174 = arith.addf %168, %173 : vector<64x128xf32>
    %c2_134 = arith.constant 2 : index
    %c2_135 = arith.constant 2 : index
    %c0_136 = arith.constant 0 : index
    %175 = vector.load %arg13[%c2_134, %c2_135, %c0_136] : memref<10x10x128xbf16, #tpu.memory_space<vmem>>, vector<8x8x128xbf16>
    %176 = vector.shape_cast %175 : vector<8x8x128xbf16> to vector<64x128xbf16>
    %c8_137 = arith.constant 8 : index
    %c0_138 = arith.constant 0 : index
    %c0_139 = arith.constant 0 : index
    %177 = vector.load %arg8[%c8_137, %c0_138, %c0_139] : memref<9x128x128xbf16, #tpu.memory_space<vmem>>, vector<1x128x128xbf16>
    %178 = vector.shape_cast %177 : vector<1x128x128xbf16> to vector<128x128xbf16>
    %cst_140 = arith.constant dense<0.000000e+00> : vector<64x128xf32>
    %179 = tpu.matmul %176, %178, %cst_140 {dimension_numbers = #tpu.dot_dimension_numbers<[1], [0], [0], [1], [0, 0, 1, 1], [], []>} : vector<64x128xbf16>, vector<128x128xbf16>, vector<64x128xf32> -> vector<64x128xf32>
    %180 = arith.addf %174, %179 : vector<64x128xf32>
    %c3_141 = arith.constant 3 : index
    %c0_142 = arith.constant 0 : index
    %c0_143 = arith.constant 0 : index
    %c0_144 = arith.constant 0 : index
    %181 = vector.load %arg1[%c3_141, %c0_142, %c0_143, %c0_144] : memref<4x9x9x4xf32, #tpu.memory_space<vmem>>, vector<1x9x9x4xf32>
    %182 = vector.shape_cast %181 : vector<1x9x9x4xf32> to vector<9x9x4xf32>
    %183 = vector.extract_strided_slice %182 {offsets = [0, 0, 0], sizes = [8, 8, 4], strides = [1, 1, 1]} : vector<9x9x4xf32> to vector<8x8x4xf32>
    %184 = vector.shape_cast %183 : vector<8x8x4xf32> to vector<64x4xf32>
    %185 = arith.truncf %184 : vector<64x4xf32> to vector<64x4xbf16>
    %c0_145 = arith.constant 0 : index
    %c0_146 = arith.constant 0 : index
    %186 = vector.load %arg9[%c0_145, %c0_146] : memref<4x128xbf16, #tpu.memory_space<vmem>>, vector<4x128xbf16>
    %cst_147 = arith.constant dense<0.000000e+00> : vector<64x128xf32>
    %187 = tpu.matmul %185, %186, %cst_147 {dimension_numbers = #tpu.dot_dimension_numbers<[1], [0], [0], [1], [0, 0, 1, 1], [], []>} : vector<64x4xbf16>, vector<4x128xbf16>, vector<64x128xf32> -> vector<64x128xf32>
    %c0_148 = arith.constant 0 : index
    %c0_149 = arith.constant 0 : index
    %188 = vector.load %arg10[%c0_148, %c0_149] : memref<1x128xf32, #tpu.memory_space<vmem>>, vector<1x128xf32>
    %189 = vector.broadcast %188 : vector<1x128xf32> to vector<64x128xf32>
    %190 = arith.mulf %187, %189 : vector<64x128xf32>
    %191 = arith.addf %180, %190 : vector<64x128xf32>
    %c0_150 = arith.constant 0 : index
    %c0_151 = arith.constant 0 : index
    %192 = vector.load %arg11[%c0_150, %c0_151] : memref<1x128xf32, #tpu.memory_space<vmem>>, vector<1x128xf32>
    %193 = vector.broadcast %192 : vector<1x128xf32> to vector<64x128xf32>
    %194 = arith.addf %191, %193 : vector<64x128xf32>
    %c0_152 = arith.constant 0 : index
    %c0_153 = arith.constant 0 : index
    %c0_154 = arith.constant 0 : index
    %195 = vector.load %arg12[%c0_152, %c0_153, %c0_154] : memref<1x64x128xf32, #tpu.memory_space<vmem>>, vector<1x64x128xf32>
    %196 = vector.shape_cast %195 : vector<1x64x128xf32> to vector<64x128xf32>
    %197 = vector.shape_cast %194 : vector<64x128xf32> to vector<1x64x128xf32>
    tpu.vector_store %arg12[%c0_152, %c0_153, %c0_154], %197 {strides = array<i32>} : memref<1x64x128xf32, #tpu.memory_space<vmem>>, vector<1x64x128xf32>,
    return
  }
  func.func @transform_0(%arg0: i32) -> (i32, i32, i32, i32) {
    %c0_i32 = arith.constant 0 : i32
    %c0_i32_0 = arith.constant 0 : i32
    %c0_i32_1 = arith.constant 0 : i32
    %c0_i32_2 = arith.constant 0 : i32
    return %arg0, %c0_i32, %c0_i32_0, %c0_i32_1 : i32, i32, i32, i32
  }
  func.func @transform_1(%arg0: i32) -> (i32, i32, i32, i32) {
    %c0_i32 = arith.constant 0 : i32
    %c0_i32_0 = arith.constant 0 : i32
    %c0_i32_1 = arith.constant 0 : i32
    %c0_i32_2 = arith.constant 0 : i32
    %c0_i32_3 = arith.constant 0 : i32
    return %c0_i32, %c0_i32_0, %c0_i32_1, %c0_i32_2 : i32, i32, i32, i32
  }
  func.func @transform_2(%arg0: i32) -> (i32, i32) {
    %c0_i32 = arith.constant 0 : i32
    %c0_i32_0 = arith.constant 0 : i32
    %c0_i32_1 = arith.constant 0 : i32
    return %c0_i32, %c0_i32_0 : i32, i32
  }
  func.func @transform_3(%arg0: i32) -> (i32, i32) {
    %c0_i32 = arith.constant 0 : i32
    %c0_i32_0 = arith.constant 0 : i32
    %c0_i32_1 = arith.constant 0 : i32
    return %c0_i32, %c0_i32_0 : i32, i32
  }
  func.func @transform_4(%arg0: i32) -> (i32, i32, i32) {
    %c0_i32 = arith.constant 0 : i32
    %c0_i32_0 = arith.constant 0 : i32
    %c0_i32_1 = arith.constant 0 : i32
    %c0_i32_2 = arith.constant 0 : i32
    return %c0_i32, %c0_i32_0, %c0_i32_1 : i32, i32, i32
  }
  func.func @transform_5(%arg0: i32) -> (i32, i32) {
    %c0_i32 = arith.constant 0 : i32
    %c0_i32_0 = arith.constant 0 : i32
    %c0_i32_1 = arith.constant 0 : i32
    return %c0_i32, %c0_i32_0 : i32, i32
  }
  func.func @transform_6(%arg0: i32) -> (i32, i32) {
    %c0_i32 = arith.constant 0 : i32
    %c0_i32_0 = arith.constant 0 : i32
    %c0_i32_1 = arith.constant 0 : i32
    return %c0_i32, %c0_i32_0 : i32, i32
  }
  func.func @transform_7(%arg0: i32) -> (i32, i32, i32) {
    %c0_i32 = arith.constant 0 : i32
    %c0_i32_0 = arith.constant 0 : i32
    %c0_i32_1 = arith.constant 0 : i32
    %c0_i32_2 = arith.constant 0 : i32
    return %c0_i32, %c0_i32_0, %c0_i32_1 : i32, i32, i32
  }
  func.func @transform_8(%arg0: i32) -> (i32, i32) {
    %c0_i32 = arith.constant 0 : i32
    %c0_i32_0 = arith.constant 0 : i32
    %c0_i32_1 = arith.constant 0 : i32
    return %c0_i32, %c0_i32_0 : i32, i32
  }
  func.func @transform_9(%arg0: i32) -> (i32, i32) {
    %c0_i32 = arith.constant 0 : i32
    %c0_i32_0 = arith.constant 0 : i32
    %c0_i32_1 = arith.constant 0 : i32
    return %c0_i32, %c0_i32_0 : i32, i32
  }
  func.func @transform_10(%arg0: i32) -> (i32, i32) {
    %c0_i32 = arith.constant 0 : i32
    %c0_i32_0 = arith.constant 0 : i32
    %c0_i32_1 = arith.constant 0 : i32
    return %c0_i32, %c0_i32_0 : i32, i32
  }
  func.func @transform_11(%arg0: i32) -> (i32, i32, i32) {
    %c0_i32 = arith.constant 0 : i32
    %c0_i32_0 = arith.constant 0 : i32
    %c0_i32_1 = arith.constant 0 : i32
    return %arg0, %c0_i32, %c0_i32_0 : i32, i32, i32
  }
}

</mosaic_0001>

<bundles_post_ra>
// kernel: wide_basic_block.1
= control target key start
LH: loop header
LB: loop body
LE: loop exit
PB: predicated region body
PF: predicated region fallthrough
CT: control target
= control target key end

     0   :  { %s6016_s17 = smov 0   ;;  %s7549_s0 = inlined_call_operand.vmem [shape: f32[8,9,9,4], index: 0, kind: input, shape index: {}]   ;;  %s7550_s1 = inlined_call_operand.vmem [shape: f32[4,9,9,1], index: 1, kind: input, shape index: {}]   ;;  %s7551_s2 = inlined_call_operand.vmem [shape: f32[1,4], index: 2, kind: input, shape index: {}]   ;;  %s7552_s3 = inlined_call_operand.vmem [shape: f32[1,4], index: 3, kind: input, shape index: {}]   ;;  %s7553_s4 = inlined_call_operand.vmem [shape: bf16[9,4,128], index: 4, kind: input, shape index: {}]   ;;  %s7554_s5 = inlined_call_operand.vmem [shape: f32[1,128], index: 5, kind: input, shape index: {}]   ;;  %s7555_s6 = inlined_call_operand.vmem [shape: f32[1,128], index: 6, kind: input, shape index: {}]   ;;  %s7556_s7 = inlined_call_operand.vmem [shape: bf16[9,128,128], index: 7, kind: input, shape index: {}]   ;;  %s7557_s8 = inlined_call_operand.vmem [shape: bf16[4,128], index: 8, kind: input, shape index: {}]   ;;  %s7558_s9 = inlined_call_operand.vmem [shape: f32[1,128], index: 9, kind: input, shape index: {}]   ;;  %s7559_s10 = inlined_call_operand.vmem [shape: f32[1,128], index: 10, kind: input, shape index: {}]   ;;  %s7560_s11 = inlined_call_operand.vmem [shape: f32[2,64,128], index: 11, kind: output, shape index: {}]  }
   0x1 LB: > { %s6022_s18 = sadd.s32 4294967295, %s5953_s17   ;;  %p4791_p0 = scmp.ge.s32.totalorder %s5953_s17, 1  ;;  %s5953_s17 = sphi %s6016_s17, %s21_s17  }
   0x2   : > { %p339_p1 = scmp.lt.s32.totalorder %s5953_s17, 3 }
   0x4   : > { %p340_p2 = pnand %p4791_p0, %p339_p1 }
   0x6   : > { %343 = sbr.rel (%p340_p2) target bundleno = 833 (0x341), region = 64 }
   0xb   : > { %v4820_v0 = vld [vmem:[%s7550_s1 + $0xb0] sm:$0xff]  ;;  %v5955_v2 = vmov 0   ;;  %v4822_v3 = vld [vmem:[%s7550_s1 + $0xc0] sm:$0xff]  ;;  %vm1231_vm0 = vcmask 1041408   ;;  %v482_v11 = vld [vmem:[%s7550_s1 + $0x18] sm:$0x1] }
   0xc   : > { %v4816_v1 = vld [vmem:[%s7550_s1 + $0x90] sm:$0xff]  ;;  %5860 = vset.pattern.permute.xlu1 %v5955_v2  ;;  %2441 = vst [vmem:[#allocation2] sm:$0xf] %v5955_v2  ;;  %2442 = vst [vmem:[#allocation2 + $0x4] sm:$0x1] %v5955_v2  ;;  %5859 = vset.pattern.permute.xlu0 %v5955_v2  ;;  %v4818_v4 = vld [vmem:[%s7550_s1 + $0xa0] sm:$0xff] }
   0xd   : > { %2443 = vst [vmem:[#allocation2 + $0x8] sm:$0xf] %v5955_v2  ;;  %2444 = vst [vmem:[#allocation2 + $0xc] sm:$0x1] %v5955_v2  ;;  %728 = vperm.xlu1 %5860, %v4820_v0   ;;  %708 = vperm.xlu0 %5859, %v4816_v1   ;;  %v481_v5 = vld [vmem:[%s7550_s1 + $0x10] sm:$0xff]  ;;  %v479_v6 = vld [vmem:[%s7550_s1] sm:$0xff] }
   0xe   : > { %2445 = vst [vmem:[#allocation2 + $0x10] sm:$0xf] %v5955_v2  ;;  %2446 = vst [vmem:[#allocation2 + $0x14] sm:$0x1] %v5955_v2  ;;  %v485_v7 = vld [vmem:[%s7550_s1 + $0x30] sm:$0xff]  ;;  %v483_v8 = vld [vmem:[%s7550_s1 + $0x20] sm:$0xff] }
   0xf   : > { %2447 = vst [vmem:[#allocation2 + $0x18] sm:$0xf] %v5955_v2  ;;  %2448 = vst [vmem:[#allocation2 + $0x1c] sm:$0x1] %v5955_v2  ;;  %v4826_v9 = vld [vmem:[%s7550_s1 + $0xe0] sm:$0xff]  ;;  %v4824_v10 = vld [vmem:[%s7550_s1 + $0xd0] sm:$0xff] }
  0x10   : > { %2449 = vst [vmem:[#allocation2 + $0x20] sm:$0xf] %v5955_v2  ;;  %2450 = vst [vmem:[#allocation2 + $0x24] sm:$0x1] %v5955_v2  ;;  %v480_v12 = vld [vmem:[%s7550_s1 + $0x8] sm:$0x1] }
  0x11   : > { %2451 = vst [vmem:[#allocation2 + $0x28] sm:$0xf] %v5955_v2  ;;  %2452 = vst [vmem:[#allocation2 + $0x2c] sm:$0x1] %v5955_v2  ;;  %738 = vperm.xlu1 %5860, %v4822_v3   ;;  %718 = vperm.xlu0 %5859, %v4818_v4   ;;  %v4898_v13 = vld [vmem:[%s7553_s4 + $0x2] sm:$0x3] }
  0x12   : > { %2453 = vst [vmem:[#allocation2 + $0x30] sm:$0xf] %v5955_v2  ;;  %2454 = vst [vmem:[#allocation2 + $0x34] sm:$0x1] %v5955_v2  ;;  %5839 = vmatprep.subr.msk.bf16.mxu0 %vm1231_vm0, %v4898_v13  ;;  %v1233_v14 = vsel %vm1231_vm0, %v4898_v13, 0  ;;  %v4830_v16 = vld [vmem:[%s7550_s1 + $0x100] sm:$0xff] }
  0x13   : > { %2455 = vst [vmem:[#allocation2 + $0x38] sm:$0xf] %v5955_v2  ;;  %2456 = vst [vmem:[#allocation2 + $0x3c] sm:$0x1] %v5955_v2  ;;  %v1195_v15 = vld [vmem:[%s7553_s4] sm:$0x3]  ;;  %5524 = vmatpush3.bf16.msra.mxu0 %v1233_v14 }
  0x14   : > { %2457 = vst [vmem:[#allocation2 + $0x40] sm:$0xf] %v5955_v2  ;;  %2458 = vst [vmem:[#allocation2 + $0x44] sm:$0x1] %v5955_v2  ;;  %v4828_v17 = vld [vmem:[%s7550_s1 + $0xf0] sm:$0xff]  ;;  %5840 = vmatprep.subr.msk.bf16.mxu1 %vm1231_vm0, %v1195_v15  ;;  %v1333_v18 = vsel %vm1231_vm0, %v1195_v15, 0 }
  0x15   : > { %2459 = vst [vmem:[#allocation2 + $0x48] sm:$0xf] %v5955_v2  ;;  %2460 = vst [vmem:[#allocation2 + $0x4c] sm:$0x1] %v5955_v2  ;;  %509 = vperm.xlu1 %5860, %v481_v5   ;;  %499 = vperm.xlu0 %5859, %v479_v6   ;;  %v486_v19 = vld [vmem:[%s7550_s1 + $0x38] sm:$0x1] }
  0x16   : > { %5534 = vmatpush3.bf16.msra.mxu1 %v1333_v18  ;;  %v484_v20 = vld [vmem:[%s7550_s1 + $0x28] sm:$0x1]  ;;  %v489_v21 = vld [vmem:[%s7550_s1 + $0x50] sm:$0xff]  ;;  %v487_v22 = vld [vmem:[%s7550_s1 + $0x40] sm:$0xff]  ;;  %s4792_s25 = sshll.u32 %s6022_s18, 2  ;;  %vm1218_vm1 = vcmask 31744  }
  0x17   : > { %v6093_v23 = vld [vmem:[%s7553_s4 + $0x4] sm:$0x3]  ;;  %v493_v24 = vld [vmem:[%s7550_s1 + $0x70] sm:$0xff]  ;;  %v490_v26 = vld [vmem:[%s7550_s1 + $0x58] sm:$0x1]  ;;  %p381_p3 = scmp.lt.s32.totalorder %s4792_s25, 7 }
  0x18   : > { %v491_v25 = vld [vmem:[%s7550_s1 + $0x60] sm:$0xff]  ;;  %5841 = vmatprep.subr.msk.bf16.mxu0 %vm1231_vm0, %v6093_v23  ;;  %v488_v27 = vld [vmem:[%s7550_s1 + $0x48] sm:$0x1]  ;;  %v494_v28 = vld [vmem:[%s7550_s1 + $0x78] sm:$0x1]  ;;  %vm2574_vm5 = vcmask 1043456  }
  0x19   : > { %529 = vperm.xlu1 %5860, %v485_v7   ;;  %519 = vperm.xlu0 %5859, %v483_v8   ;;  %v492_v29 = vld [vmem:[%s7550_s1 + $0x68] sm:$0x1]  ;;  %v4852_v30 = vld [vmem:[%s7550_s1 + $0x130] sm:$0xff]  ;;  %v4850_v31 = vld [vmem:[%s7550_s1 + $0x120] sm:$0xff]  ;;  %s7632_s25 = smov (!%p381_p3, %s4792_s25), 7  ;;  %vm2580_vm7 = vcmask 1040384  }
  0x1a   : > { %v4856_v32 = vld [vmem:[%s7550_s1 + $0x150] sm:$0xff]  ;;  %v4854_v33 = vld [vmem:[%s7550_s1 + $0x140] sm:$0xff]  ;;  %v4853_v41 = vld [vmem:[%s7550_s1 + $0x138] sm:$0x1]  ;;  %s5849_s28 = smul.u32 144, %s7632_s25  ;;  %vm3079_vm11 = vcmask 1042432  }
  0x1b   : > { %v4884_v34 = vld [vmem:[%s7550_s1 + $0x1c0] sm:$0xff]  ;;  %v4882_v36 = vld [vmem:[%s7550_s1 + $0x1b0] sm:$0xff]  ;;  %v4851_v42 = vld [vmem:[%s7550_s1 + $0x128] sm:$0x1]  ;;  %vm1424_vm2 = vsmask.f32 3328 }
  0x1c   : > { %v6133_v35 = vld [vmem:[%s7553_s4 + $0x6] sm:$0x3]  ;;  %v4886_v38 = vld [vmem:[%s7550_s1 + $0x1d0] sm:$0xff]  ;;  %v4857_v45 = vld [vmem:[%s7550_s1 + $0x158] sm:$0x1]  ;;  %s6207_s12 = scalar_lea.vmem %s7549_s0, %s5849_s28  ;;  %vm3080_vm12 = vcmask 1046532  }
  0x1d   : > { %758 = vperm.xlu1 %5860, %v4826_v9   ;;  %748 = vperm.xlu0 %5859, %v4824_v10   ;;  %v4888_v37 = vld [vmem:[%s7550_s1 + $0x1e0] sm:$0xff]  ;;  %v4860_v39 = vld [vmem:[%s7550_s1 + $0x170] sm:$0xff]  ;;  %v4855_v46 = vld [vmem:[%s7550_s1 + $0x148] sm:$0x1]  ;;  %vm1425_vm3 = vsmask.f32 7440 }
  0x1e   : > { %5842 = vmatprep.subr.msk.bf16.mxu1 %vm1231_vm0, %v6133_v35  ;;  %v4858_v40 = vld [vmem:[%s7550_s1 + $0x160] sm:$0xff]  ;;  %v4864_v43 = vld [vmem:[%s7550_s1 + $0x190] sm:$0xff]  ;;  %v4861_v51 = vld [vmem:[%s7550_s1 + $0x178] sm:$0x1]  ;;  %vm2575_vm6 = vsmask.f32 7938 }
  0x1f   : > { %v4862_v44 = vld [vmem:[%s7550_s1 + $0x180] sm:$0xff]  ;;  %v4890_v48 = vld [vmem:[%s7550_s1 + $0x1f0] sm:$0xff]  ;;  %v4859_v52 = vld [vmem:[%s7550_s1 + $0x168] sm:$0x1]  ;;  %vm2581_vm8 = vsmask.f32 256 }
  0x20   : > { %v4892_v47 = vld [vmem:[%s7550_s1 + $0x200] sm:$0xff]  ;;  %v4894_v50 = vld [vmem:[%s7550_s1 + $0x210] sm:$0xff]  ;;  %v4865_v53 = vld [vmem:[%s7550_s1 + $0x198] sm:$0x1]  ;;  %p387_p4 = scmp.lt.s32.totalorder %s6022_s18, 1 }
  0x21   : > { %514 = vperm.xlu1 %5860, %v482_v11   ;;  %504 = vperm.xlu0 %5859, %v480_v12   ;;  %v4896_v49 = vld [vmem:[%s7550_s1 + $0x220] sm:$0xff]  ;;  %v4863_v54 = vld [vmem:[%s7550_s1 + $0x188] sm:$0x1]  ;;  %v4832_v57 = vld [vmem:[%s7550_s1 + $0x110] sm:$0xff] }
  0x22   : > { %v496_v55 = vld [vmem:[%s7550_s1 + $0x88] sm:$0x1]  ;;  %v495_v56 = vld [vmem:[%s7550_s1 + $0x80] sm:$0xff]  ;;  %v4802_v59 = vld [vmem:[%s6207_s12 + $0xb0] sm:$0xff]  ;;  %s7634_s18 = smov (!%p387_p4, %s6022_s18), 1 }
  0x23   : > { %v6212_v58 = vld [vmem:[%s7551_s2] ss:$0 sm:$0xff]  ;;  %v4798_v60 = vld [vmem:[%s6207_s12 + $0x90] sm:$0xff]  ;;  %v398_v15 = vld [vmem:[%s6207_s12 + $0x18] sm:$0x1]  ;;  %s5298_s24 = sshll.u32 %s7634_s18, 6 }
  0x24   : > { %v4804_v61 = vld [vmem:[%s6207_s12 + $0xc0] sm:$0xff]  ;;  %v397_v63 = vld [vmem:[%s6207_s12 + $0x10] sm:$0xff]  ;;  %v637_v1 = vmul.f32 %v4802_v59, %v6212_v58  ;;  %v633_v6 = vmul.f32 %v4798_v60, %v6212_v58  ;;  %v396_v18 = vld [vmem:[%s6207_s12 + $0x8] sm:$0x1]  ;;  %s7524_s28 = scalar_lea.vmem %s7560_s11, %s5298_s24 }
  0x25   : > { %778 = vperm.xlu1 %5860, %v4830_v16   ;;  %768 = vperm.xlu0 %5859, %v4828_v17   ;;  %v4800_v62 = vld [vmem:[%s6207_s12 + $0xa0] sm:$0xff]  ;;  %v401_v2 = vld [vmem:[%s6207_s12 + $0x30] sm:$0xff]  ;;  %v639_v7 = vmul.f32 %v4804_v61, %v6212_v58  ;;  %v421_v9 = vmul.f32 %v6212_v58, %v397_v63  ;;  %vm6436_vm4 = vmor %vm1424_vm2, %vm1425_vm3 }
  0x26   : > { %v395_v0 = vld [vmem:[%s6207_s12] sm:$0xff]  ;;  %v635_v8 = vmul.f32 %v4800_v62, %v6212_v58  ;;  %v4806_v10 = vld [vmem:[%s6207_s12 + $0xd0] sm:$0xff]  ;;  %v425_v12 = vmul.f32 %v6212_v58, %v401_v2  ;;  %vm6970_vm9 = vmand %vm2574_vm5, %vm2575_vm6 }
  0x27   : > { %v399_v3 = vld [vmem:[%s6207_s12 + $0x20] sm:$0xff]  ;;  %v419_v11 = vmul.f32 %v6212_v58, %v395_v0  ;;  %v641_v17 = vmul.f32 %v4806_v10, %v6212_v58  ;;  %v409_v2 = vld [vmem:[%s6207_s12 + $0x70] sm:$0xff]  ;;  %vm6976_vm10 = vmand %vm2580_vm7, %vm2581_vm8 }
  0x28   : > { %v4808_v4 = vld [vmem:[%s6207_s12 + $0xe0] sm:$0xff]  ;;  %v423_v13 = vmul.f32 %v6212_v58, %v399_v3  ;;  %vm7105_vm13 = vmor %vm3079_vm11, %vm3080_vm12 }
  0x29   : > { %534 = vperm.xlu1 %5860, %v486_v19   ;;  %524 = vperm.xlu0 %5859, %v484_v20   ;;  %v6227_v5 = vld [vmem:[%s7552_s3] ss:$0 sm:$0xff]  ;;  %v643_v14 = vmul.f32 %v4808_v4, %v6212_v58 }
  0x2a   : > { %v655_v16 = vadd.f32 %v6227_v5, %v637_v1  ;;  %v651_v19 = vadd.f32 %v6227_v5, %v633_v6  ;;  %v657_v20 = vadd.f32 %v6227_v5, %v639_v7  ;;  %v407_v3 = vld [vmem:[%s6207_s12 + $0x60] sm:$0xff] }
  0x2d   : > { %549 = vperm.xlu1 %5860, %v489_v21   ;;  %539 = vperm.xlu0 %5859, %v487_v22   ;;  %v653_v21 = vadd.f32 %v6227_v5, %v635_v8  ;;  %v445_v22 = vadd.f32 %v6227_v5, %v421_v9 }
  0x31   : > { %569 = vperm.xlu1 %5860, %v493_v24   ;;  %559 = vperm.xlu0 %5859, %v491_v25   ;;  %v4812_v24 = vld [vmem:[%s6207_s12 + $0x100] sm:$0xff]  ;;  %v4810_v25 = vld [vmem:[%s6207_s12 + $0xf0] sm:$0xff] }
  0x35   : > { %554 = vperm.xlu1 %5860, %v490_v26   ;;  %544 = vperm.xlu0 %5859, %v488_v27   ;;  %v443_v26 = vadd.f32 %v6227_v5, %v419_v11  ;;  %v422_v27 = vmul.f32 %v6212_v58, %v398_v15 }
  0x39   : > { %574 = vperm.xlu1 %5860, %v494_v28   ;;  %564 = vperm.xlu0 %5859, %v492_v29   ;;  %v6251_v28 = vadd.f32 %v6227_v5, %v425_v12  ;;  %v6254_v29 = vadd.f32 %v6227_v5, %v423_v13  ;;  %v406_v13 = vld [vmem:[%s6207_s12 + $0x58] sm:$0x1] }
  0x3d   : > { %917 = vperm.xlu1 %5860, %v4852_v30   ;;  %907 = vperm.xlu0 %5859, %v4850_v31   ;;  %v6257_v30 = vadd.f32 %v6227_v5, %v643_v14  ;;  %v420_v31 = vmul.f32 %v6212_v58, %v396_v18  ;;  %v431_v18 = vmul.f32 %v6212_v58, %v407_v3 }
  0x41   : > { %937 = vperm.xlu1 %5860, %v4856_v32   ;;  %927 = vperm.xlu0 %5859, %v4854_v33   ;;  %v402_v32 = vld [vmem:[%s6207_s12 + $0x38] sm:$0x1]  ;;  %v400_v33 = vld [vmem:[%s6207_s12 + $0x28] sm:$0x1] }
  0x45   : > { %1103 = vperm.xlu1 %5860, %v4884_v34   ;;  %1093 = vperm.xlu0 %5859, %v4882_v36   ;;  %v673_v36 = vmax.f32 %v655_v16, 0.0 }
  0x49   : > { %1123 = vperm.xlu1 %5860, %v4888_v37   ;;  %1113 = vperm.xlu0 %5859, %v4886_v38   ;;  %v6263_v38 = vadd.f32 %v6227_v5, %v641_v17  ;;  %v433_v17 = vmul.f32 %v6212_v58, %v409_v2 }
  0x4d   : > { %957 = vperm.xlu1 %5860, %v4860_v39   ;;  %947 = vperm.xlu0 %5859, %v4858_v40   ;;  %v647_v39 = vmul.f32 %v4812_v24, %v6212_v58  ;;  %v645_v40 = vmul.f32 %v4810_v25, %v6212_v58 }
  0x4f   : > { %v6282_v59 = vadd.f32 %v6227_v5, %v647_v39  ;;  %v6285_v60 = vadd.f32 %v6227_v5, %v645_v40 }
  0x51   : > { %922 = vperm.xlu1 %5860, %v4853_v41   ;;  %912 = vperm.xlu0 %5859, %v4851_v42   ;;  %v669_v41 = vmax.f32 %v651_v19, 0.0  ;;  %v675_v42 = vmax.f32 %v657_v20, 0.0  ;;  %v1566_v19 = vsel %vm1231_vm0, %v6093_v23, 0  ;;  %v404_v20 = vld [vmem:[%s6207_s12 + $0x48] sm:$0x1]  ;;  %v683_v24 = vmax.f32 %v6282_v59, 0.0 }
  0x52   : > { %v681_v25 = vmax.f32 %v6285_v60, 0.0 }
  0x55   : > { %977 = vperm.xlu1 %5860, %v4864_v43   ;;  %967 = vperm.xlu0 %5859, %v4862_v44   ;;  %v671_v43 = vmax.f32 %v653_v21, 0.0  ;;  %v463_v44 = vmax.f32 %v445_v22, 0.0 }
  0x59   : > { %942 = vperm.xlu1 %5860, %v4857_v45   ;;  %932 = vperm.xlu0 %5859, %v4855_v46   ;;  %v405_v45 = vld [vmem:[%s6207_s12 + $0x50] sm:$0xff]  ;;  %v461_v46 = vmax.f32 %v443_v26, 0.0  ;;  %v410_v26 = vld [vmem:[%s6207_s12 + $0x78] sm:$0x1] }
  0x5a   : > { %v429_v61 = vmul.f32 %v6212_v58, %v405_v45 }
  0x5c   : > { %v6312_v16 = vadd.f32 %v6227_v5, %v429_v61  ;;  %v408_v61 = vld [vmem:[%s6207_s12 + $0x68] sm:$0x1] }
  0x5d   : > { %1143 = vperm.xlu1 %5860, %v4892_v47   ;;  %1133 = vperm.xlu0 %5859, %v4890_v48   ;;  %v6269_v47 = vadd.f32 %v6227_v5, %v422_v27  ;;  %v426_v48 = vmul.f32 %v6212_v58, %v402_v32  ;;  %v6328_v27 = vld [vmem:[%s7553_s4 + $0x8] sm:$0x3] }
  0x5e   : > { %v471_v40 = vmax.f32 %v6312_v16, 0.0 }
  0x5f   : > { %v464_v4 = vmax.f32 %v6269_v47, 0.0  ;;  %v6298_v6 = vadd.f32 %v6227_v5, %v426_v48 }
  0x61   : > { %1163 = vperm.xlu1 %5860, %v4896_v49   ;;  %1153 = vperm.xlu0 %5859, %v4894_v50   ;;  %v424_v49 = vmul.f32 %v6212_v58, %v400_v33  ;;  %v467_v50 = vmax.f32 %v6251_v28, 0.0  ;;  %v468_v23 = vmax.f32 %v6298_v6, 0.0 }
  0x63   : > { %v6301_v7 = vadd.f32 %v6227_v5, %v424_v49 }
  0x65   : > { %962 = vperm.xlu1 %5860, %v4861_v51   ;;  %952 = vperm.xlu0 %5859, %v4859_v52   ;;  %v465_v51 = vmax.f32 %v6254_v29, 0.0  ;;  %v679_v52 = vmax.f32 %v6257_v30, 0.0  ;;  %v466_v28 = vmax.f32 %v6301_v7, 0.0 }
  0x69   : > { %982 = vperm.xlu1 %5860, %v4865_v53   ;;  %972 = vperm.xlu0 %5859, %v4863_v54   ;;  %v6277_v53 = vadd.f32 %v6227_v5, %v420_v31  ;;  %v403_v54 = vld [vmem:[%s6207_s12 + $0x40] sm:$0xff]  ;;  %v430_v31 = vmul.f32 %v6212_v58, %v406_v13 }
  0x6a   : > { %v427_v8 = vmul.f32 %v6212_v58, %v403_v54 }
  0x6b   : > { %v462_v12 = vmax.f32 %v6277_v53, 0.0 }
  0x6c   : > { %v6334_v29 = vadd.f32 %v6227_v5, %v427_v8 }
  0x6d   : > { %584 = vperm.xlu1 %5860, %v496_v55   ;;  %579 = vperm.xlu0 %5859, %v495_v56  }
  0x71   : > { %788 = vperm.xlu0 %5859, %v4832_v57   ;;  %v677_v57 = vmax.f32 %v6263_v38, 0.0 }
  0x88   : > { %v729_v34 = vpop.permute.xlu1 %728  ;;  %v709_v37 = vpop.permute.xlu0 %708 }
  0x89   : > { %v6288_v62 = vmul.f32 %v729_v34, %v673_v36  ;;  %v796_v63 = vmul.f32 %v709_v37, %v669_v41  ;;  %v428_v36 = vmul.f32 %v6212_v58, %v404_v20  ;;  %v6343_v41 = vadd.f32 %v6227_v5, %v433_v17  ;;  %v4834_v17 = vld [vmem:[%s6207_s12 + $0x120] sm:$0xff] }
  0x8a   : > { %v432_v20 = vmul.f32 %v6212_v58, %v408_v61 }
  0x8b   : > { %v6362_v3 = vadd.f32 %v6227_v5, %v428_v36  ;;  %v475_v38 = vmax.f32 %v6343_v41, 0.0 }
  0x8c   : > { %v739_v55 = vpop.permute.xlu1 %738  ;;  %v719_v56 = vpop.permute.xlu0 %718  ;;  %v6413_v61 = vadd.f32 %v6227_v5, %v432_v20 }
  0x8d   : > { %v6290_v0 = vmul.f32 %v739_v55, %v675_v42  ;;  %v6292_v1 = vmul.f32 %v719_v56, %v671_v43  ;;  %v6346_v42 = vadd.f32 %v6227_v5, %v431_v18  ;;  %v434_v43 = vmul.f32 %v6212_v58, %v410_v26 }
  0x8e   : > { %v469_v55 = vmax.f32 %v6334_v29, 0.0  ;;  %v6358_v56 = vadd.f32 %v6227_v5, %v430_v31 }
  0x8f   : > { %v5300_v9 = vpack.c.bf16 %v6290_v0, %v6288_v62  ;;  %v5299_v11 = vpack.c.bf16 %v6292_v1, %v796_v63 }
  0x90   : > { %v510_v14 = vpop.permute.xlu1 %509  ;;  %v500_v15 = vpop.permute.xlu0 %499 }
  0x91   : > { %v6319_v21 = vmul.f32 %v510_v14, %v463_v44  ;;  %v587_v22 = vmul.f32 %v500_v15, %v461_v46  ;;  %5525 = vmatprep.mubr.msk.bf16.mxu0 %vm1218_vm1, %v5299_v11  ;;  %v4836_v15 = vld [vmem:[%s6207_s12 + $0x130] sm:$0xff] }
  0x92   : > { %5526 = vmatmul.mubr.msk.bf16.vlgmr.msra.gmra.mxu0 %vm1218_vm1, %v5300_v9 }
  0x93   : > { %v5309_v32 = vpack.c.bf16 %v6319_v21, %v6319_v21  ;;  %v5307_v33 = vpack.c.bf16 %v587_v22, %v587_v22  ;;  %v5303_v34 = vpack.c.bf16 %v6319_v21, %v587_v22  ;;  %5544 = vmatpush3.bf16.msra.mxu0 %v1566_v19  ;;  %v6387_v22 = vld [vmem:[%s7553_s4 + $0xa] sm:$0x3] }
  0x94   : > { %v530_v37 = vpop.permute.xlu1 %529  ;;  %v520_v39 = vpop.permute.xlu0 %519  ;;  %5843 = vmatprep.subr.msk.bf16.mxu0 %vm1231_vm0, %v6328_v27 }
  0x95   : > { %v1442_v44 = vshrl.u32 %v5309_v32, 16  ;;  %v1445_v45 = vshll.u32 %v5309_v32, 16  ;;  %v1428_v46 = vshrl.u32 %v5307_v33, 16  ;;  %v1431_v48 = vshll.u32 %v5307_v33, 16  ;;  %5535 = vmatprep.mubr.msk.bf16.mxu1 %vm1218_vm1, %v5303_v34 }
  0x96   : > { %v6352_v49 = vmul.f32 %v530_v37, %v467_v50  ;;  %v6354_v54 = vmul.f32 %v520_v39, %v465_v51  ;;  %v1676_v50 = vsel %vm1231_vm0, %v6133_v35, 0  ;;  %v6381_v35 = vadd.f32 %v6227_v5, %v434_v43 }
  0x97   : > { %v1444_v63 = vrot.slane %v1442_v44, 4  ;;  %v1447_v2 = vrot.slane %v1445_v45, 5  ;;  %v1430_v51 = vrot.slane %v1428_v46, 4  ;;  %v1433_v8 = vrot.slane %v1431_v48, 5 }
  0x98   : > { %v5304_v9 = vpack.c.bf16 %v6352_v49, %v6354_v54  ;;  %v759_v13 = vpop.permute.xlu1 %758  ;;  %v749_v14 = vpop.permute.xlu0 %748  ;;  %v5313_v26 = vpack.c.bf16 %v6352_v49, %v6352_v49  ;;  %v5311_v30 = vpack.c.bf16 %v6354_v54, %v6354_v54  ;;  %v842_v32 = vmul.f32 %v4836_v15, %v6212_v58 }
  0x99   : > { %v6374_v18 = vmul.f32 %v759_v13, %v679_v52  ;;  %v6378_v19 = vmul.f32 %v749_v14, %v677_v57  ;;  %v473_v52 = vmax.f32 %v6346_v42, 0.0  ;;  %v840_v33 = vmul.f32 %v4834_v17, %v6212_v58 }
  0x9a   : > { %5536 = vmatmul.mubr.msk.bf16.vlgmr.msra.gmra.mxu1 %vm1218_vm1, %v5304_v9  ;;  %v1448_v34 = vor.u32 %v1447_v2, %v1444_v63  ;;  %v1434_v36 = vor.u32 %v1433_v8, %v1430_v51  ;;  %v472_v43 = vmax.f32 %v6358_v56, 0.0  ;;  %v470_v44 = vmax.f32 %v6362_v3, 0.0  ;;  %v4840_v63 = vld [vmem:[%s6207_s12 + $0x150] sm:$0xff]  ;;  %v4838_v2 = vld [vmem:[%s6207_s12 + $0x140] sm:$0xff] }
  0x9b   : > { %7568 = vst [vmem:[#allocation3_spill] sm:$0xff] %v6374_v18  ;;  %v5301_v57 = vpack.c.bf16 %v6374_v18, %v6378_v19  ;;  %5554 = vmatpush3.bf16.msra.mxu1 %v1676_v50  ;;  %v476_v48 = vmax.f32 %v6381_v35, 0.0  ;;  %v1470_v50 = vshrl.u32 %v5313_v26, 16  ;;  %v1473_v51 = vshll.u32 %v5313_v26, 16 }
  0x9c   : > { %v515_v37 = vpop.permute.xlu1 %514  ;;  %v505_v39 = vpop.permute.xlu0 %504  ;;  %5844 = vmatprep.subr.msk.bf16.mxu1 %vm1231_vm0, %v6387_v22  ;;  %v1456_v8 = vshrl.u32 %v5311_v30, 16  ;;  %v1459_v9 = vshll.u32 %v5311_v30, 16  ;;  %v6421_v53 = vadd.f32 %v6227_v5, %v840_v33  ;;  %v1435_v14 = vrot.slane %v1434_v36, 4  ;;  %v4868_v33 = vld [vmem:[%s6207_s12 + $0x1c0] sm:$0xff] }
  0x9d   : > { %v590_v45 = vmul.f32 %v515_v37, %v464_v4  ;;  %v588_v46 = vmul.f32 %v505_v39, %v462_v12  ;;  %5529 = vmatprep.mubr.msk.bf16.mxu0 %vm1218_vm1, %v5301_v57  ;;  %v6418_v4 = vadd.f32 %v6227_v5, %v842_v32  ;;  %v1449_v12 = vrot.slane %v1448_v34, 4 }
  0x9e   : > { %v846_v20 = vmul.f32 %v4840_v63, %v6212_v58  ;;  %v844_v26 = vmul.f32 %v4838_v2, %v6212_v58  ;;  %v1472_v34 = vrot.slane %v1470_v50, 4  ;;  %v1475_v36 = vrot.slane %v1473_v51, 5 }
  0x9f   : > { %v5310_v13 = vpack.c.bf16 %v590_v45, %v590_v45  ;;  %v5308_v47 = vpack.c.bf16 %v588_v46, %v588_v46  ;;  %v1458_v39 = vrot.slane %v1456_v8, 4  ;;  %v1461_v45 = vrot.slane %v1459_v9, 5  ;;  %v5937_v46 = vld [vmem:[%s7556_s7 + $0x230] sm:$0xff]  }
  0xa0   : > { %v779_v15 = vpop.permute.xlu1 %778  ;;  %v769_v17 = vpop.permute.xlu0 %768  ;;  %v474_v51 = vmax.f32 %v6413_v61, 0.0  ;;  %v6447_v8 = vadd.f32 %v6227_v5, %v846_v20  ;;  %v6450_v9 = vadd.f32 %v6227_v5, %v844_v26  ;;  %v4872_v20 = vld [vmem:[%s6207_s12 + $0x1e0] sm:$0xff]  ;;  %v4870_v26 = vld [vmem:[%s6207_s12 + $0x1d0] sm:$0xff]  ;;  %v872_v6 = vmax.f32 %v6421_v53, 0.0  ;;  %v4835_v61 = vld [vmem:[%s6207_s12 + $0x128] sm:$0x1] }
  0xa1   : > { %v1451_v57 = vshll.u32 %v5310_v13, 16  ;;  %v1437_v37 = vshll.u32 %v5308_v47, 16  ;;  %v6427_v30 = vmul.f32 %v779_v15, %v683_v24  ;;  %v6431_v32 = vmul.f32 %v769_v17, %v681_v25  ;;  %v4866_v25 = vld [vmem:[%s6207_s12 + $0x1b0] sm:$0xff] }
  0xa2   : > { %v1028_v13 = vmul.f32 %v4868_v33, %v6212_v58  ;;  %v1462_v24 = vor.u32 %v1461_v45, %v1458_v39 }
  0xa3   : > { %7569 = vst [vmem:[#allocation4_spill] sm:$0xff] %v6427_v30  ;;  %7570 = vst [vmem:[#allocation5_spill] sm:$0xff] %v6431_v32  ;;  %v1453_v63 = vrot.slane %v1451_v57, 5  ;;  %v1439_v59 = vrot.slane %v1437_v37, 5  ;;  %v5302_v60 = vpack.c.bf16 %v6427_v30, %v6431_v32  ;;  %v1476_v37 = vor.u32 %v1475_v36, %v1472_v34 }
  0xa4   : > { %v535_v2 = vpop.permute.xlu1 %534  ;;  %v525_v50 = vpop.permute.xlu0 %524  ;;  %v1032_v34 = vmul.f32 %v4872_v20, %v6212_v58  ;;  %v1030_v36 = vmul.f32 %v4870_v26, %v6212_v58  ;;  %v1786_v26 = vsel %vm1231_vm0, %v6328_v27, 0 }
  0xa5   : > { %v6455_v47 = vsel %vm6436_vm4, %v1449_v12, %v1453_v63  ;;  %v1440_v15 = vsel %vm6436_vm4, %v1435_v14, %v1439_v59  ;;  %v594_v17 = vmul.f32 %v535_v2, %v468_v23  ;;  %v592_v57 = vmul.f32 %v525_v50, %v466_v28  ;;  %5530 = vmatmul.mubr.msk.bf16.gmra.mxu0 %vm1218_vm1, %v5302_v60 }
  0xa6   : > { %v4932_v33 = vcombine.low %v1440_v15, %v6455_v47  ;;  %v1026_v12 = vmul.f32 %v4866_v25, %v6212_v58  ;;  %v874_v14 = vmax.f32 %v6418_v4, 0.0  ;;  %v1477_v2 = vrot.slane %v1476_v37, 4 }
  0xa7   : > { %v5314_v63 = vpack.c.bf16 %v594_v17, %v594_v17  ;;  %v5312_v31 = vpack.c.bf16 %v592_v57, %v592_v57  ;;  %v1463_v50 = vrot.slane %v1462_v24, 4  ;;  %v6484_v15 = vadd.f32 %v6227_v5, %v1028_v13 }
  0xa8   : > { %v550_v23 = vpop.permute.xlu1 %549  ;;  %v540_v59 = vpop.permute.xlu0 %539  ;;  %5545 = vmatprep.mubr.msk.bf16.mxu0 %vm1218_vm1, %v4932_v33  ;;  %v6487_v17 = vadd.f32 %v6227_v5, %v1026_v12  ;;  %v6496_v24 = vadd.f32 %v6227_v5, %v1032_v34  ;;  %v6499_v13 = vadd.f32 %v6227_v5, %v1030_v36  ;;  %v841_v4 = vmul.f32 %v4835_v61, %v6212_v58 }
  0xa9   : > { %v1479_v39 = vshll.u32 %v5314_v63, 16  ;;  %v1465_v45 = vshll.u32 %v5312_v31, 16  ;;  %v6477_v60 = vmul.f32 %v550_v23, %v471_v40  ;;  %v6481_v25 = vmul.f32 %v540_v59, %v469_v55 }
  0xab   : > { %v1481_v57 = vrot.slane %v1479_v39, 5  ;;  %v1467_v20 = vrot.slane %v1465_v45, 5  ;;  %v5317_v31 = vpack.c.bf16 %v6477_v60, %v6477_v60  ;;  %v5305_v16 = vpack.c.bf16 %v6477_v60, %v6481_v25 }
  0xac   : > { %v5315_v29 = vpack.c.bf16 %v6481_v25, %v6481_v25  ;;  %v570_v40 = vpop.permute.xlu1 %569  ;;  %v560_v55 = vpop.permute.xlu0 %559 }
  0xad   : > { %v6505_v37 = vsel %vm6436_vm4, %v1477_v2, %v1481_v57  ;;  %v6509_v33 = vsel %vm6436_vm4, %v1463_v50, %v1467_v20  ;;  %v1498_v12 = vshrl.u32 %v5317_v31, 16  ;;  %v1501_v63 = vshll.u32 %v5317_v31, 16  ;;  %5539 = vmatprep.mubr.msk.bf16.mxu1 %vm1218_vm1, %v5305_v16  ;;  %v6526_v2 = vld [vmem:[%s7553_s4 + $0xc] sm:$0x3]  ;;  %v4844_v31 = vld [vmem:[%s6207_s12 + $0x170] sm:$0xff] }
  0xae   : > { %v4933_v23 = vcombine.low %v6509_v33, %v6505_v37  ;;  %v1484_v59 = vshrl.u32 %v5315_v29, 16  ;;  %v1487_v34 = vshll.u32 %v5315_v29, 16  ;;  %v6516_v27 = vmul.f32 %v570_v40, %v475_v38 }
  0xaf   : > { %v1500_v36 = vrot.slane %v1498_v12, 4  ;;  %v6520_v39 = vmul.f32 %v560_v55, %v473_v52  ;;  %v1503_v57 = vrot.slane %v1501_v63, 5  ;;  %v4842_v12 = vld [vmem:[%s6207_s12 + $0x160] sm:$0xff] }
  0xb0   : > { %v1486_v41 = vrot.slane %v1484_v59, 4  ;;  %v1489_v38 = vrot.slane %v1487_v34, 5  ;;  %v5321_v20 = vpack.c.bf16 %v6516_v27, %v6516_v27  ;;  %v555_v42 = vpop.permute.xlu1 %554  ;;  %v545_v52 = vpop.permute.xlu0 %544  ;;  %5546 = vmatmul.mubr.msk.bf16.vlgmr.msra.gmra.mxu0 %vm1218_vm1, %v4933_v23 }
  0xb1   : > { %v5306_v16 = vpack.c.bf16 %v6516_v27, %v6520_v39  ;;  %v5319_v29 = vpack.c.bf16 %v6520_v39, %v6520_v39  ;;  %5564 = vmatpush3.bf16.msra.mxu0 %v1786_v26  ;;  %v598_v34 = vmul.f32 %v555_v42, %v472_v43  ;;  %v596_v11 = vmul.f32 %v545_v52, %v470_v44  ;;  %v4837_v42 = vld [vmem:[%s6207_s12 + $0x138] sm:$0x1] }
  0xb2   : > { %v1526_v63 = vshrl.u32 %v5321_v20, 16  ;;  %v1529_v59 = vshll.u32 %v5321_v20, 16  ;;  %5845 = vmatprep.subr.msk.bf16.mxu0 %vm1231_vm0, %v6526_v2  ;;  %v850_v26 = vmul.f32 %v4844_v31, %v6212_v58  ;;  %v1504_v55 = vor.u32 %v1503_v57, %v1500_v36 }
  0xb3   : > { %v1512_v50 = vshrl.u32 %v5319_v29, 16  ;;  %v1515_v10 = vshll.u32 %v5319_v29, 16  ;;  %5540 = vmatmul.mubr.msk.bf16.gmra.mxu1 %vm1218_vm1, %v5306_v16  ;;  %v1490_v40 = vor.u32 %v1489_v38, %v1486_v41  ;;  %v5318_v20 = vpack.c.bf16 %v598_v34, %v598_v34 }
  0xb4   : > { %v575_v45 = vpop.permute.xlu1 %574  ;;  %v565_v56 = vpop.permute.xlu0 %564  ;;  %v848_v43 = vmul.f32 %v4842_v12, %v6212_v58  ;;  %v1528_v23 = vrot.slane %v1526_v63, 4  ;;  %v1531_v28 = vrot.slane %v1529_v59, 5  ;;  %v5316_v7 = vpack.c.bf16 %v596_v11, %v596_v11 }
  0xb5   : > { %v602_v3 = vmul.f32 %v575_v45, %v476_v48  ;;  %v1514_v44 = vrot.slane %v1512_v50, 4  ;;  %v1517_v52 = vrot.slane %v1515_v10, 5  ;;  %v1507_v16 = vshll.u32 %v5318_v20, 16  ;;  %v4846_v20 = vld [vmem:[%s6207_s12 + $0x180] sm:$0xff] }
  0xb6   : > { %v600_v36 = vmul.f32 %v565_v56, %v474_v51  ;;  %v1493_v57 = vshll.u32 %v5316_v7, 16  ;;  %v6557_v38 = vadd.f32 %v6227_v5, %v850_v26  ;;  %v843_v31 = vmul.f32 %v4837_v42, %v6212_v58  ;;  %v4848_v26 = vld [vmem:[%s6207_s12 + $0x190] sm:$0xff]  ;;  %v4841_v56 = vld [vmem:[%s6207_s12 + $0x158] sm:$0x1] }
  0xb7   : > { %v5322_v41 = vpack.c.bf16 %v602_v3, %v602_v3  ;;  %v1505_v29 = vrot.slane %v1504_v55, 4  ;;  %v1509_v11 = vrot.slane %v1507_v16, 5  ;;  %v6561_v10 = vadd.f32 %v6227_v5, %v848_v43 }
  0xb8   : > { %v5320_v35 = vpack.c.bf16 %v600_v36, %v600_v36  ;;  %v918_v48 = vpop.permute.xlu1 %917  ;;  %v908_v45 = vpop.permute.xlu0 %907  ;;  %v1491_v51 = vrot.slane %v1490_v40, 4  ;;  %v1495_v7 = vrot.slane %v1493_v57, 5  ;;  %v1532_v63 = vor.u32 %v1531_v28, %v1528_v23 }
  0xb9   : > { %v1535_v50 = vshll.u32 %v5322_v41, 16  ;;  %v987_v12 = vmul.f32 %v918_v48, %v874_v14  ;;  %v1518_v59 = vor.u32 %v1517_v52, %v1514_v44  ;;  %v985_v34 = vmul.f32 %v908_v45, %v872_v6  ;;  %v4839_v14 = vld [vmem:[%s6207_s12 + $0x148] sm:$0x1]  ;;  %v4876_v52 = vld [vmem:[%s6207_s12 + $0x200] sm:$0xff] }
  0xba   : > { %v1521_v55 = vshll.u32 %v5320_v35, 16  ;;  %v6573_v43 = vsel %vm6436_vm4, %v1505_v29, %v1509_v11  ;;  %v882_v40 = vmax.f32 %v6557_v38, 0.0  ;;  %v6577_v42 = vadd.f32 %v6227_v5, %v843_v31 }
  0xbb   : > { %v6583_v53 = vsel %vm6436_vm4, %v1491_v51, %v1495_v7  ;;  %v1537_v6 = vrot.slane %v1535_v50, 5  ;;  %v5323_v23 = vpack.c.bf16 %v987_v12, %v985_v34  ;;  %v7573_v16 = vmax.f32 %v6447_v8, 0.0  ;;  %v4874_v50 = vld [vmem:[%s6207_s12 + $0x1f0] sm:$0xff] }
  0xbc   : > { %v1523_v28 = vrot.slane %v1521_v55, 5  ;;  %v938_v3 = vpop.permute.xlu1 %937  ;;  %v928_v44 = vpop.permute.xlu0 %927  ;;  %v854_v57 = vmul.f32 %v4848_v26, %v6212_v58  ;;  %v852_v41 = vmul.f32 %v4846_v20, %v6212_v58  ;;  %v847_v31 = vmul.f32 %v4841_v56, %v6212_v58 }
  0xbd   : > { %v6588_v36 = vmul.f32 %v938_v3, %v7573_v16  ;;  %v1533_v29 = vrot.slane %v1532_v63, 4  ;;  %v1519_v11 = vrot.slane %v1518_v59, 4  ;;  %v7574_v35 = vmax.f32 %v6450_v9, 0.0  ;;  %5555 = vmatprep.mubr.msk.bf16.mxu1 %vm1218_vm1, %v5323_v23  ;;  %v4878_v23 = vld [vmem:[%s6207_s12 + $0x210] sm:$0xff] }
  0xbe   : > { %v845_v45 = vmul.f32 %v4839_v14, %v6212_v58  ;;  %v4934_v8 = vcombine.low %v6583_v53, %v6573_v43  ;;  %v880_v61 = vmax.f32 %v6561_v10, 0.0  ;;  %v6603_v51 = vadd.f32 %v6227_v5, %v841_v4 }
  0xbf   : > { %v6595_v48 = vmul.f32 %v928_v44, %v7574_v35  ;;  %v1036_v7 = vmul.f32 %v4876_v52, %v6212_v58  ;;  %v6609_v9 = vsel %vm6436_vm4, %v1533_v29, %v1537_v6  ;;  %v6613_v63 = vsel %vm6436_vm4, %v1519_v11, %v1523_v28  ;;  %v4880_v28 = vld [vmem:[%s6207_s12 + $0x220] sm:$0xff]  ;;  %v4845_v11 = vld [vmem:[%s6207_s12 + $0x178] sm:$0x1] }
  0xc0   : > { %7575 = vst [vmem:[#allocation6_spill] sm:$0xff] %v6609_v9  ;;  %v1104_v55 = vpop.permute.xlu1 %1103  ;;  %v1094_v10 = vpop.permute.xlu0 %1093  ;;  %v2024_v26 = vsel %vm1231_vm0, %v6387_v22, 0  ;;  %5549 = vmatprep.mubr.msk.bf16.mxu0 %vm1218_vm1, %v4934_v8  ;;  %v7576_v20 = vmax.f32 %v6484_v15, 0.0  ;;  %v875_v4 = vmax.f32 %v6577_v42, 0.0  ;;  %v6624_v14 = vadd.f32 %v6227_v5, %v854_v57  ;;  %v6634_v22 = vld [vmem:[%s7553_s4 + $0xe] sm:$0x3] }
  0xc1   : > { %v5324_v59 = vpack.c.bf16 %v6588_v36, %v6595_v48  ;;  %v6627_v6 = vadd.f32 %v6227_v5, %v852_v41  ;;  %v7577_v3 = vmax.f32 %v6487_v17, 0.0  ;;  %v6640_v44 = vadd.f32 %v6227_v5, %v847_v31 }
  0xc2   : > { %v1173_v56 = vmul.f32 %v1104_v55, %v7576_v20  ;;  %v6643_v52 = vadd.f32 %v6227_v5, %v845_v45  ;;  %v1034_v16 = vmul.f32 %v4874_v50, %v6212_v58  ;;  %v5333_v57 = vpack.c.bf16 %v987_v12, %v987_v12  ;;  %v4843_v50 = vld [vmem:[%s6207_s12 + $0x168] sm:$0x1] }
  0xc3   : > { %v1171_v15 = vmul.f32 %v1094_v10, %v7577_v3  ;;  %5556 = vmatmul.mubr.msk.bf16.vlgmr.msra.gmra.mxu1 %vm1218_vm1, %v5324_v59  ;;  %v4935_v41 = vcombine.low %v6613_v63, %v6609_v9  ;;  %v873_v29 = vmax.f32 %v6603_v51, 0.0  ;;  %v6650_v17 = vadd.f32 %v6227_v5, %v1036_v7 }
  0xc4   : > { %5574 = vmatpush3.bf16.msra.mxu1 %v2024_v26  ;;  %v5331_v35 = vpack.c.bf16 %v985_v34, %v985_v34  ;;  %v1124_v31 = vpop.permute.xlu1 %1123  ;;  %v1114_v59 = vpop.permute.xlu0 %1113  ;;  %v1040_v45 = vmul.f32 %v4880_v28, %v6212_v58  ;;  %v1038_v55 = vmul.f32 %v4878_v23, %v6212_v58  ;;  %v7578_v12 = vmax.f32 %v6496_v24, 0.0 }
  0xc5   : > { %v5327_v8 = vpack.c.bf16 %v1173_v56, %v1171_v15  ;;  %5846 = vmatprep.subr.msk.bf16.mxu1 %vm1231_vm0, %v6634_v22  ;;  %5550 = vmatmul.mubr.msk.bf16.gmra.mxu0 %vm1218_vm1, %v4935_v41  ;;  %v7579_v7 = vmax.f32 %v6499_v13, 0.0  ;;  %v886_v34 = vmax.f32 %v6624_v14, 0.0  ;;  %v884_v26 = vmax.f32 %v6627_v6, 0.0 }
  0xc6   : > { %v1177_v51 = vmul.f32 %v1124_v31, %v7578_v12  ;;  %v6669_v28 = vadd.f32 %v6227_v5, %v1034_v16  ;;  %v851_v23 = vmul.f32 %v4845_v11, %v6212_v58  ;;  %v1900_v24 = vshrl.u32 %v5333_v57, 16 }
  0xc7   : > { %v1175_v10 = vmul.f32 %v1114_v59, %v7579_v7  ;;  %5565 = vmatprep.mubr.msk.bf16.mxu0 %vm1218_vm1, %v5327_v8  ;;  %v1903_v3 = vshll.u32 %v5333_v57, 16  ;;  %v849_v15 = vmul.f32 %v4843_v50, %v6212_v58  ;;  %v1886_v14 = vshrl.u32 %v5331_v35, 16 }
  0xc8   : > { %v1889_v41 = vshll.u32 %v5331_v35, 16  ;;  %v958_v6 = vpop.permute.xlu1 %957  ;;  %v948_v31 = vpop.permute.xlu0 %947  ;;  %v6675_v8 = vadd.f32 %v6227_v5, %v1040_v45  ;;  %v6678_v59 = vadd.f32 %v6227_v5, %v1038_v55  ;;  %v5337_v16 = vpack.c.bf16 %v6588_v36, %v6588_v36 }
  0xc9   : > { %v5328_v11 = vpack.c.bf16 %v1177_v51, %v1175_v10  ;;  %v995_v57 = vmul.f32 %v958_v6, %v882_v40  ;;  %v993_v12 = vmul.f32 %v948_v31, %v880_v61  ;;  %v5335_v35 = vpack.c.bf16 %v6595_v48, %v6595_v48  ;;  %v4849_v48 = vld [vmem:[%s6207_s12 + $0x198] sm:$0x1]  ;;  %v6699_v6 = vld [vmem:[%s7553_s4 + $0x10] sm:$0x3] }
  0xca   : > { %v2120_v45 = vsel %vm1231_vm0, %v6526_v2, 0  ;;  %v6690_v55 = vadd.f32 %v6227_v5, %v851_v23  ;;  %v1902_v7 = vrot.slane %v1900_v24, 4  ;;  %v1905_v36 = vrot.slane %v1903_v3, 5 }
  0xcb   : > { %v5325_v13 = vpack.c.bf16 %v995_v57, %v993_v12  ;;  %v6693_v51 = vadd.f32 %v6227_v5, %v849_v15  ;;  %v1888_v38 = vrot.slane %v1886_v14, 4  ;;  %v1891_v40 = vrot.slane %v1889_v41, 5  ;;  %v4847_v15 = vld [vmem:[%s6207_s12 + $0x188] sm:$0x1] }
  0xcc   : > { %v923_v61 = vpop.permute.xlu1 %922  ;;  %v913_v10 = vpop.permute.xlu0 %912  ;;  %v1928_v2 = vshrl.u32 %v5337_v16, 16  ;;  %v1931_v23 = vshll.u32 %v5337_v16, 16  ;;  %v1914_v14 = vshrl.u32 %v5335_v35, 16  ;;  %v1917_v41 = vshll.u32 %v5335_v35, 16 }
  0xcd   : > { %5566 = vmatmul.mubr.msk.bf16.vlgmr.msra.gmra.mxu0 %vm1218_vm1, %v5328_v11  ;;  %5559 = vmatprep.mubr.msk.bf16.mxu1 %vm1218_vm1, %v5325_v13  ;;  %v988_v31 = vmul.f32 %v923_v61, %v875_v4  ;;  %v986_v50 = vmul.f32 %v913_v10, %v873_v29  ;;  %v1906_v56 = vor.u32 %v1905_v36, %v1902_v7 }
  0xce   : > { %5584 = vmatpush3.bf16.msra.mxu0 %v2120_v45  ;;  %v855_v11 = vmul.f32 %v4849_v48, %v6212_v58  ;;  %v1892_v13 = vor.u32 %v1891_v40, %v1888_v38  ;;  %v853_v42 = vmul.f32 %v4847_v15, %v6212_v58  ;;  %v1930_v4 = vrot.slane %v1928_v2, 4  ;;  %v411_v48 = vld [vmem:[%s6207_s12 + $0x80] sm:$0xff] }
  0xcf   : > { %5847 = vmatprep.subr.msk.bf16.mxu0 %vm1231_vm0, %v6699_v6  ;;  %v5334_v3 = vpack.c.bf16 %v988_v31, %v988_v31  ;;  %v5332_v24 = vpack.c.bf16 %v986_v50, %v986_v50  ;;  %v1933_v29 = vrot.slane %v1931_v23, 5  ;;  %v1916_v36 = vrot.slane %v1914_v14, 4 }
  0xd0   : > { %v978_v35 = vpop.permute.xlu1 %977  ;;  %v968_v9 = vpop.permute.xlu0 %967  ;;  %v1919_v61 = vrot.slane %v1917_v41, 5  ;;  %v1907_v20 = vrot.slane %v1906_v56, 4  ;;  %v5341_v30 = vpack.c.bf16 %v995_v57, %v995_v57  ;;  %v6716_v38 = vadd.f32 %v6227_v5, %v855_v11 }
  0xd1   : > { %v999_v45 = vmul.f32 %v978_v35, %v886_v34  ;;  %v997_v7 = vmul.f32 %v968_v9, %v884_v26  ;;  %v1909_v10 = vshll.u32 %v5334_v3, 16  ;;  %v1895_v16 = vshll.u32 %v5332_v24, 16 }
  0xd2   : > { %v1893_v50 = vrot.slane %v1892_v13, 4  ;;  %v5339_v40 = vpack.c.bf16 %v993_v12, %v993_v12  ;;  %v7580_v34 = vmax.f32 %v6640_v44, 0.0  ;;  %v7581_v26 = vmax.f32 %v6643_v52, 0.0 }
  0xd3   : > { %v5326_v18 = vpack.c.bf16 %v999_v45, %v997_v7  ;;  %v1911_v31 = vrot.slane %v1909_v10, 5  ;;  %v1897_v32 = vrot.slane %v1895_v16, 5  ;;  %v6724_v56 = vadd.f32 %v6227_v5, %v853_v42 }
  0xd4   : > { %v943_v15 = vpop.permute.xlu1 %942  ;;  %v933_v2 = vpop.permute.xlu0 %932  ;;  %v435_v57 = vmul.f32 %v6212_v58, %v411_v48  ;;  %v1934_v24 = vor.u32 %v1933_v29, %v1930_v4  ;;  %v1920_v3 = vor.u32 %v1919_v61, %v1916_v36  ;;  %v1956_v44 = vshrl.u32 %v5341_v30, 16 }
  0xd5   : > { %v992_v9 = vmul.f32 %v943_v15, %v7580_v34  ;;  %v990_v23 = vmul.f32 %v933_v2, %v7581_v26  ;;  %5560 = vmatmul.mubr.msk.bf16.gmra.mxu1 %vm1218_vm1, %v5326_v18  ;;  %v1912_v12 = vsel %vm6436_vm4, %v1907_v20, %v1911_v31  ;;  %v1898_v14 = vsel %vm6436_vm4, %v1893_v50, %v1897_v32 }
  0xd6   : > { %v1959_v41 = vshll.u32 %v5341_v30, 16  ;;  %v1942_v11 = vshrl.u32 %v5339_v40, 16  ;;  %v1945_v13 = vshll.u32 %v5339_v40, 16  ;;  %v5345_v18 = vpack.c.bf16 %v999_v45, %v999_v45 }
  0xd7   : > { %v5338_v16 = vpack.c.bf16 %v992_v9, %v992_v9  ;;  %v5336_v52 = vpack.c.bf16 %v990_v23, %v990_v23  ;;  %v4975_v10 = vcombine.low %v1898_v14, %v1912_v12  ;;  %v7582_v4 = vmax.f32 %v6650_v17, 0.0 }
  0xd8   : > { %v1144_v35 = vpop.permute.xlu1 %1143  ;;  %v1134_v42 = vpop.permute.xlu0 %1133  ;;  %v2216_v20 = vsel %vm1231_vm0, %v6634_v22, 0  ;;  %v1935_v36 = vrot.slane %v1934_v24, 4  ;;  %v1921_v32 = vrot.slane %v1920_v3, 4  ;;  %v5343_v61 = vpack.c.bf16 %v997_v7, %v997_v7 }
  0xd9   : > { %v1937_v15 = vshll.u32 %v5338_v16, 16  ;;  %v1923_v48 = vshll.u32 %v5336_v52, 16  ;;  %v1181_v29 = vmul.f32 %v1144_v35, %v7582_v4  ;;  %v7583_v30 = vmax.f32 %v6669_v28, 0.0  ;;  %5575 = vmatprep.mubr.msk.bf16.mxu1 %vm1218_vm1, %v4975_v10 }
  0xda   : > { %v1958_v45 = vrot.slane %v1956_v44, 4  ;;  %v1961_v40 = vrot.slane %v1959_v41, 5  ;;  %v1944_v34 = vrot.slane %v1942_v11, 4  ;;  %v1947_v9 = vrot.slane %v1945_v13, 5  ;;  %v412_v44 = vld [vmem:[%s6207_s12 + $0x88] sm:$0x1] }
  0xdb   : > { %v1179_v50 = vmul.f32 %v1134_v42, %v7583_v30  ;;  %v1939_v31 = vrot.slane %v1937_v15, 5  ;;  %v1925_v2 = vrot.slane %v1923_v48, 5  ;;  %v1984_v17 = vshrl.u32 %v5345_v18, 16 }
  0xdc   : > { %v1164_v23 = vpop.permute.xlu1 %1163  ;;  %v1154_v12 = vpop.permute.xlu0 %1153  ;;  %v7584_v7 = vmax.f32 %v6675_v8, 0.0  ;;  %v7585_v3 = vmax.f32 %v6678_v59, 0.0  ;;  %v1987_v41 = vshll.u32 %v5345_v18, 16  ;;  %v1970_v16 = vshrl.u32 %v5343_v61, 16 }
  0xdd   : > { %v5329_v26 = vpack.c.bf16 %v1181_v29, %v1179_v50  ;;  %v1940_v22 = vsel %vm6436_vm4, %v1935_v36, %v1939_v31  ;;  %v1926_v28 = vsel %vm6436_vm4, %v1921_v32, %v1925_v2  ;;  %v1973_v52 = vshll.u32 %v5343_v61, 16 }
  0xde   : > { %v1185_v24 = vmul.f32 %v1164_v23, %v7584_v7  ;;  %v1183_v14 = vmul.f32 %v1154_v12, %v7585_v3  ;;  %v4976_v11 = vcombine.low %v1926_v28, %v1940_v22  ;;  %v1962_v35 = vor.u32 %v1961_v40, %v1958_v45 }
  0xdf   : > { %5569 = vmatprep.mubr.msk.bf16.mxu0 %vm1218_vm1, %v5329_v26  ;;  %v887_v15 = vmax.f32 %v6716_v38, 0.0  ;;  %v436_v8 = vmul.f32 %v6212_v58, %v412_v44  ;;  %v459_v59 = vadd.f32 %v6227_v5, %v435_v57  ;;  %v1948_v48 = vor.u32 %v1947_v9, %v1944_v34 }
  0xe0   : > { %v5330_v13 = vpack.c.bf16 %v1185_v24, %v1183_v14  ;;  %v963_v42 = vpop.permute.xlu1 %962  ;;  %v953_v10 = vpop.permute.xlu0 %952  ;;  %5576 = vmatmul.mubr.msk.bf16.vlgmr.msra.gmra.mxu1 %vm1218_vm1, %v4976_v11  ;;  %v7586_v18 = vmax.f32 %v6690_v55, 0.0  ;;  %v7587_v29 = vmax.f32 %v6693_v51, 0.0  ;;  %v885_v32 = vmax.f32 %v6724_v56, 0.0  ;;  %v5945_v56 = vld [vmem:[%s7552_s3] ss:$0 sm:$0xff] }
  0xe1   : > { %5594 = vmatpush3.bf16.msra.mxu1 %v2216_v20  ;;  %v1986_v61 = vrot.slane %v1984_v17, 4  ;;  %v1989_v30 = vrot.slane %v1987_v41, 5  ;;  %v1972_v50 = vrot.slane %v1970_v16, 4  ;;  %v1975_v38 = vrot.slane %v1973_v52, 5  ;;  %v4814_v16 = vld [vmem:[%s6207_s12 + $0x110] sm:$0xff] }
  0xe2   : > { %v996_v4 = vmul.f32 %v963_v42, %v7586_v18  ;;  %v994_v36 = vmul.f32 %v953_v10, %v7587_v29  ;;  %5570 = vmatmul.mubr.msk.bf16.gmra.mxu0 %vm1218_vm1, %v5330_v13  ;;  %v7588_v58 = vpack.c.bf16 %v6354_v54, %v6319_v21  ;;  %v5348_v51 = vpack.c.bf16 %v6481_v25, %v6352_v49 }
  0xe3   : > { %v460_v20 = vadd.f32 %v5945_v56, %v436_v8  ;;  %v477_v40 = vmax.f32 %v459_v59, 0.0  ;;  %v2328_v31 = vsel %vm1231_vm0, %v6699_v6, 0  ;;  %v1963_v9 = vrot.slane %v1962_v35, 4  ;;  %v5946_v8 = vld [vmem:[%s7551_s2] ss:$0 sm:$0xff] }
  0xe4   : > { %5585 = vmatprep.mubr.msk.bf16.mxu0 %vm1218_vm1, %v7588_v58  ;;  %v5342_v5 = vpack.c.bf16 %v996_v4, %v996_v4  ;;  %v5340_v55 = vpack.c.bf16 %v994_v36, %v994_v36  ;;  %v983_v57 = vpop.permute.xlu1 %982  ;;  %v973_v45 = vpop.permute.xlu0 %972  ;;  %v1949_v17 = vrot.slane %v1948_v48, 4  ;;  %v1990_v26 = vor.u32 %v1989_v30, %v1986_v61 }
  0xe5   : > { %v1000_v54 = vmul.f32 %v983_v57, %v887_v15  ;;  %v998_v34 = vmul.f32 %v973_v45, %v885_v32  ;;  %v1976_v23 = vor.u32 %v1975_v38, %v1972_v50  ;;  %v5349_v28 = vpack.c.bf16 %v6520_v39, %v6477_v60 }
  0xe6   : > { %v1965_v2 = vshll.u32 %v5342_v5, 16  ;;  %v1951_v21 = vshll.u32 %v5340_v55, 16  ;;  %v478_v44 = vmax.f32 %v460_v20, 0.0  ;;  %v1991_v11 = vrot.slane %v1990_v26, 4  ;;  %v5869_v26 = vld [vmem:[%s7556_s7 + $0x10] sm:$0xff]  }
  0xe7   : > { %v5346_v12 = vpack.c.bf16 %v1000_v54, %v1000_v54  ;;  %v5344_v22 = vpack.c.bf16 %v998_v34, %v998_v34  ;;  %v1977_v60 = vrot.slane %v1976_v23, 4  ;;  %v649_v59 = vmul.f32 %v5946_v8, %v4814_v16  ;;  %v5865_v54 = vld [vmem:[%s7556_s7 + $0x20] sm:$0xff]   ;;  %v5866_v34 = vld [vmem:[%s7556_s7 + $0x70] sm:$0xff]  }
  0xe8   : > { %v1967_v49 = vrot.slane %v1965_v2, 5  ;;  %v1953_v25 = vrot.slane %v1951_v21, 5  ;;  %v580_v7 = vpop.permute.xlu0 %579  ;;  %v585_v35 = vpop.permute.xlu1 %584  ;;  %v7589_v30 = vpack.c.bf16 %v6288_v62, %v6292_v1  ;;  %v7590_v58 = vcombine.low %v6455_v47, %v6509_v33  ;;  %v7593_v47 = vld [vmem:[#allocation3_spill] sm:$0xff]  ;;  %v5863_v2 = vld [vmem:[%s7556_s7 + $0x28] sm:$0xff]   ;;  %v5864_v21 = vld [vmem:[%s7556_s7 + $0x78] sm:$0xff]  }
  0xe9   : > { %v1993_v3 = vshll.u32 %v5346_v12, 16  ;;  %v1979_v14 = vshll.u32 %v5344_v22, 16  ;;  %v603_v41 = vmul.f32 %v580_v7, %v477_v40  ;;  %v604_v48 = vmul.f32 %v585_v35, %v478_v44  ;;  %5613 = vmatprep.subr.bf16.mxu1 %v5864_v21  ;;  %v5870_v23 = vld [vmem:[%s7556_s7 + $0x60] sm:$0xff]   ;;  %v5872_v12 = vld [vmem:[%s7556_s7 + $0x58] sm:$0xff]   ;;  %v5874_v7 = vld [vmem:[%s7556_s7 + $0x50] sm:$0xff]  }
  0xea   : > { %v1968_v6 = vsel %vm6436_vm4, %v1963_v9, %v1967_v49  ;;  %v1954_v24 = vsel %vm6436_vm4, %v1949_v17, %v1953_v25  ;;  %5586 = vmatmul.mubr.msk.bf16.vlgmr.msra.gmra.mxu0 %vm1218_vm1, %v5348_v51  ;;  %v667_v38 = vadd.f32 %v5945_v56, %v649_v59  ;;  %v5005_v51 = vcombine.low %v6505_v37, %v6583_v53  ;;  %v7592_v56 = vld [vmem:[#allocation5_spill] sm:$0xff]  ;;  %v7596_v53 = vld [vmem:[#allocation6_spill] sm:$0xff]  ;;  %v5867_v9 = vld [vmem:[%s7556_s7 + $0x18] sm:$0xff]  }
  0xeb   : > { %5589 = vmatprep.mubr.msk.bf16.mxu0 %vm1218_vm1, %v5349_v28  ;;  %5604 = vmatpush3.bf16.msra.mxu0 %v2328_v31  ;;  %v4977_v52 = vcombine.low %v1954_v24, %v1968_v6  ;;  %v1995_v39 = vrot.slane %v1993_v3, 5  ;;  %v1981_v13 = vrot.slane %v1979_v14, 5  ;;  %v5355_v42 = vpack.c.bf16 %v603_v41, %v603_v41  ;;  %v5868_v17 = vld [vmem:[%s7556_s7 + $0x68] sm:$0xff]   ;;  %v5873_v22 = vld [vmem:[%s7556_s7] sm:$0xff]   ;;  %v6864_v6 = vld [vmem:[%s7556_s7 + $0xf8] sm:$0xff]  }
  0xec   : > { %v5350_v36 = vpack.c.bf16 %v603_v41, %v6516_v27  ;;  %v5356_v50 = vpack.c.bf16 %v604_v48, %v604_v48  ;;  %v685_v55 = vmax.f32 %v667_v38, 0.0  ;;  %v789_v57 = vpop.permute.xlu0 %788  ;;  %v7591_v62 = vpack.c.bf16 %v6378_v19, %v6290_v0  ;;  %v7595_v0 = vld [vmem:[#allocation4_spill] sm:$0xff]  ;;  %v5871_v49 = vld [vmem:[%s7556_s7 + $0x8] sm:$0xff]   ;;  %7597 = vst [vmem:[#allocation5_spill] sm:$0xff] %v6864_v6  ;;  %v5880_v14 = vld [vmem:[%s7556_s7 + $0x40] sm:$0xff]  }
  0xed   : > { %5579 = vmatprep.mubr.msk.bf16.mxu1 %vm1218_vm1, %v4977_v52  ;;  %v1996_v10 = vsel %vm6436_vm4, %v1991_v11, %v1995_v39  ;;  %v1982_v15 = vsel %vm6436_vm4, %v1977_v60, %v1981_v13  ;;  %v2295_v18 = vshrl.u32 %v5355_v42, 16  ;;  %v2298_v4 = vshll.u32 %v5355_v42, 16  ;;  %v5877_v3 = vld [vmem:[%s7556_s7 + $0x48] sm:$0xff]   ;;  %v6878_v52 = vld [vmem:[%s7556_s7 + $0xb8] sm:$0xff]  }
  0xee   : > { %v4978_v29 = vcombine.low %v1982_v15, %v1996_v10  ;;  %v2304_v27 = vshll.u32 %v5356_v50, 16  ;;  %v5006_v1 = vcombine.low %v6573_v43, %v6613_v63  ;;  %v7594_v33 = vpack.c.bf16 %v7592_v56, %v7593_v47  ;;  %v5861_v43 = vld [vmem:[%s7556_s7 + $0x38] sm:$0xff]   ;;  %v5862_v63 = vld [vmem:[%s7556_s7 + $0x30] sm:$0xff]   ;;  %7598 = vst [vmem:[#allocation3_spill] sm:$0xff] %v6878_v52 }
  0xef   : > { %v2297_v32 = vrot.slane %v2295_v18, 4  ;;  %v2300_v61 = vrot.slane %v2298_v4, 5  ;;  %v812_v40 = vmul.f32 %v789_v57, %v685_v55  ;;  %5637 = vmatprep.subr.bf16.mxu0 %v5861_v43 }
  0xf0   : > { %5580 = vmatmul.mubr.msk.bf16.gmra.mxu1 %vm1218_vm1, %v4978_v29  ;;  %v2306_v20 = vrot.slane %v2304_v27, 5 }
  0xf1   : > { %5595 = vmatprep.mubr.msk.bf16.mxu1 %vm1218_vm1, %v7589_v30  ;;  %v2301_v5 = vor.u32 %v2300_v61, %v2297_v32  ;;  %v5354_v19 = vpack.c.bf16 %v812_v40, %v7595_v0 }
  0xf2   : > { %5590 = vmatmul.mubr.msk.bf16.gmra.mxu0 %vm1218_vm1, %v5350_v36 }
  0xf3   : > { %5605 = vmatprep.mubr.msk.bf16.mxu0 %vm1218_vm1, %v7590_v58  ;;  %v2302_v45 = vrot.slane %v2301_v5, 4 }
  0xf5   : > { %v2307_v37 = vsel %vm6436_vm4, %v2302_v45, %v2306_v20 }
  0xf6   : > { %v5007_v31 = vcombine.low %v7596_v53, %v2307_v37 }
  0xf8   : > { %5596 = vmatmul.mubr.msk.bf16.vlgmr.msra.gmra.mxu1 %vm1218_vm1, %v7591_v62 }
  0xf9   : > { %5599 = vmatprep.mubr.msk.bf16.mxu1 %vm1218_vm1, %v7594_v33  ;;  %5614 = vmatpush3.bf16.msra.mxu1 %v5864_v21 }
  0xfa   : > { %5606 = vmatmul.mubr.msk.bf16.vlgmr.msra.gmra.mxu0 %vm1218_vm1, %v5005_v51  ;;  %5615 = vmatprep.subr.bf16.mxu1 %v5866_v34 }
  0xfb   : > { %5609 = vmatprep.mubr.msk.bf16.mxu0 %vm1218_vm1, %v5006_v1  ;;  %5638 = vmatpush3.bf16.msra.mxu0 %v5861_v43 }
  0xfc   : > { %5639 = vmatprep.subr.bf16.mxu0 %v5862_v63 }
  0xfd   : > { %5616 = vmatpush3.bf16.msra.mxu1 %v5866_v34 }
  0xfe   : > { %5617 = vmatprep.subr.bf16.mxu1 %v5868_v17 }
  0xff   : > { %5640 = vmatpush3.bf16.msra.mxu0 %v5862_v63 }
 0x100   : > { %5600 = vmatmul.mubr.msk.bf16.gmra.mxu1 %vm1218_vm1, %v5354_v19  ;;  %5641 = vmatprep.subr.bf16.mxu0 %v5863_v2 }
 0x101   : > { %5618 = vmatpush3.bf16.msra.mxu1 %v5868_v17 }
 0x102   : > { %5610 = vmatmul.mubr.msk.bf16.gmra.mxu0 %vm1218_vm1, %v5007_v31  ;;  %5619 = vmatprep.subr.bf16.mxu1 %v5870_v23 }
 0x103   : > { %5642 = vmatpush3.bf16.msra.mxu0 %v5863_v2 }
 0x104   : > { %5643 = vmatprep.subr.bf16.mxu0 %v5865_v54 }
 0x105   : > { %5620 = vmatpush3.bf16.msra.mxu1 %v5870_v23 }
 0x106   : > { %5621 = vmatprep.subr.bf16.mxu1 %v5872_v12 }
 0x107   : > { %5644 = vmatpush3.bf16.msra.mxu0 %v5865_v54 }
 0x108   : > { %5645 = vmatprep.subr.bf16.mxu0 %v5867_v9 }
 0x109   : > { %5622 = vmatpush3.bf16.msra.mxu1 %v5872_v12 }
 0x10a   : > { %5623 = vmatprep.subr.bf16.mxu1 %v5874_v7 }
 0x10b   : > { %5646 = vmatpush3.bf16.msra.mxu0 %v5867_v9  ;;  %v6908_v9 = vld [vmem:[#allocation2] sm:$0xf] }
 0x10c   : > { %5647 = vmatprep.subr.bf16.mxu0 %v5869_v26  ;;  %7599 = vst [vmem:[#allocation4_spill] sm:$0xff] %v6908_v9 }
 0x10d   : > { %5624 = vmatpush3.bf16.msra.mxu1 %v5874_v7  ;;  %v2661_v7 = vshrl.u32 %v6908_v9, 16 }
 0x10e   : > { %5625 = vmatprep.subr.bf16.mxu1 %v5877_v3 }
 0x10f   : > { %5648 = vmatpush3.bf16.msra.mxu0 %v5869_v26 }
 0x110   : > { %5649 = vmatprep.subr.bf16.mxu0 %v5871_v49 }
 0x111   : > { %5626 = vmatpush3.bf16.msra.mxu1 %v5877_v3  ;;  %v2664_v3 = vshll.u32 %v6908_v9, 16  ;;  %v6920_v9 = vrot.slane %v2661_v7, 4 }
 0x112   : > { %5627 = vmatprep.subr.bf16.mxu1 %v5880_v14 }
 0x113   : > { %5650 = vmatpush3.bf16.msra.mxu0 %v5871_v49 }
 0x114   : > { %5651 = vmatprep.subr.bf16.mxu0 %v5873_v22 }
 0x115   : > { %5628 = vmatpush3.bf16.msra.mxu1 %v5880_v14 }
 0x116   : > { %5661 = vmatprep.subr.bf16.mxu1 %v6878_v52 }
 0x117   : > { %5652 = vmatpush3.bf16.msra.mxu0 %v5873_v22 }
 0x118   : > { %5685 = vmatprep.subr.bf16.mxu0 %v6864_v6 }
 0x152   : > { %v6850_v25 = vpop.f32.mrf.mxu0 }
 0x154   : > { %v1269_v28 = vpop.f32.mrf.mxu0 }
 0x156   : > { %v5528_v24 = vpop.f32.mrf.mxu0 }
 0x158   : > { %v1272_v44 = vpop.f32.mrf.mxu0 }
 0x15a   : > { %v5537_v16 = vpop.f32.mrf.mxu1 }
 0x15b   : > { %v1378_v43 = vadd.f32 %v5537_v16, %v6850_v25 }
 0x15c   : > { %v1369_v60 = vpop.f32.mrf.mxu1 }
 0x15d   : > { %v1370_v21 = vadd.f32 %v1369_v60, %v1269_v28 }
 0x15e   : > { %v5538_v13 = vpop.f32.mrf.mxu1 }
 0x15f   : > { %v1381_v26 = vadd.f32 %v5538_v13, %v5528_v24 }
 0x160   : > { %v1372_v42 = vpop.f32.mrf.mxu1 }
 0x161   : > { %v1373_v14 = vadd.f32 %v1372_v42, %v1272_v44  ;;  %v6922_v44 = vrot.slane %v2664_v3, 5 }
 0x163   : > { %v2667_v3 = vor.u32 %v6922_v44, %v6920_v9 }
 0x165   : > { %v6873_v41 = vpop.f32.mrf.mxu0 }
 0x167   : > { %v6880_v11 = vpop.f32.mrf.mxu0 }
 0x169   : > { %v6883_v39 = vpop.f32.mrf.mxu0 }
 0x16b   : > { %v6885_v35 = vpop.f32.mrf.mxu0 }
 0x170   : > { %v5547_v10 = vpop.f32.mrf.mxu0 }
 0x171   : > { %v1635_v54 = vadd.f32 %v5547_v10, %v1378_v43 }
 0x172   : > { %v1602_v8 = vpop.f32.mrf.mxu0 }
 0x173   : > { %v5541_v15 = vpop.f32.mrf.mxu1  ;;  %v1633_v23 = vadd.f32 %v1602_v8, %v1370_v21 }
 0x174   : > { %v5548_v48 = vpop.f32.mrf.mxu0  ;;  %v1394_v60 = vadd.f32 %v5541_v15, %v6873_v41 }
 0x175   : > { %v1385_v59 = vpop.f32.mrf.mxu1  ;;  %v1636_v25 = vadd.f32 %v5548_v48, %v1381_v26 }
 0x176   : > { %v1605_v4 = vpop.f32.mrf.mxu0  ;;  %v1386_v21 = vadd.f32 %v1385_v59, %v6880_v11 }
 0x177   : > { %v6887_v18 = vpop.f32.mrf.mxu1  ;;  %v1634_v43 = vadd.f32 %v1605_v4, %v1373_v14 }
 0x178   : > { %v1397_v15 = vadd.f32 %v6887_v18, %v6883_v39  ;;  %v6936_v39 = vld [vmem:[%s7554_s5] ss:$0 sm:$0xff] }
 0x179   : > { %v6889_v29 = vpop.f32.mrf.mxu1 }
 0x183   : > { %v5557_v32 = vpop.f32.mrf.mxu1 }
 0x184   : > { %v1745_v49 = vadd.f32 %v5557_v32, %v1635_v54 }
 0x185   : > { %v5551_v36 = vpop.f32.mrf.mxu0  ;;  %v1712_v30 = vpop.f32.mrf.mxu1 }
 0x186   : > { %v1743_v16 = vadd.f32 %v1712_v30, %v1633_v23  ;;  %v1639_v54 = vadd.f32 %v5551_v36, %v1394_v60 }
 0x187   : > { %v1618_v61 = vpop.f32.mrf.mxu0  ;;  %v5558_v38 = vpop.f32.mrf.mxu1 }
 0x188   : > { %v1746_v24 = vadd.f32 %v5558_v38, %v1636_v25  ;;  %v1637_v4 = vadd.f32 %v1618_v61, %v1386_v21 }
 0x189   : > { %v6891_v50 = vpop.f32.mrf.mxu0  ;;  %v1715_v5 = vpop.f32.mrf.mxu1 }
 0x18a   : > { %v1744_v42 = vadd.f32 %v1715_v5, %v1634_v43  ;;  %v1640_v5 = vadd.f32 %v6891_v50, %v1397_v15 }
 0x18b   : > { %v6893_v58 = vpop.f32.mrf.mxu0 }
 0x18d   : > { %v5567_v27 = vpop.f32.mrf.mxu0 }
 0x18e   : > { %v1855_v52 = vadd.f32 %v5567_v27, %v1745_v49 }
 0x18f   : > { %v1822_v51 = vpop.f32.mrf.mxu0 }
 0x190   : > { %v1853_v13 = vadd.f32 %v1822_v51, %v1743_v16 }
 0x191   : > { %v5568_v45 = vpop.f32.mrf.mxu0 }
 0x192   : > { %v1856_v48 = vadd.f32 %v5568_v45, %v1746_v24 }
 0x193   : > { %v1825_v1 = vpop.f32.mrf.mxu0 }
 0x194   : > { %v1854_v36 = vadd.f32 %v1825_v1, %v1744_v42 }
 0x195   : > { %v5561_v55 = vpop.f32.mrf.mxu1 }
 0x196   : > { %v1749_v11 = vadd.f32 %v5561_v55, %v1639_v54  ;;  %v6956_v54 = vld [vmem:[#allocation2 + $0x4] sm:$0x1] }
 0x197   : > { %v6895_v57 = vpop.f32.mrf.mxu1 }
 0x199   : > { %v6897_v62 = vpop.f32.mrf.mxu1 }
 0x19b   : > { %v6899_v56 = vpop.f32.mrf.mxu1 }
 0x1a0   : > { %v5577_v33 = vpop.f32.mrf.mxu1 }
 0x1a1   : > { %v2093_v8 = vadd.f32 %v5577_v33, %v1855_v52  ;;  %v1389_v52 = vadd.f32 %v6889_v29, %v6885_v35 }
 0x1a2   : > { %v5571_v47 = vpop.f32.mrf.mxu0  ;;  %v2060_v37 = vpop.f32.mrf.mxu1 }
 0x1a3   : > { %v2091_v30 = vadd.f32 %v2060_v37, %v1853_v13  ;;  %v1638_v45 = vadd.f32 %v6893_v58, %v1389_v52  ;;  %v1747_v37 = vadd.f32 %v6895_v57, %v1637_v4  ;;  %v6944_v57 = vld [vmem:[%s7555_s6] ss:$0 sm:$0xff] }
 0x1a4   : > { %v6901_v20 = vpop.f32.mrf.mxu0  ;;  %v5578_v53 = vpop.f32.mrf.mxu1 }
 0x1a5   : > { %v2094_v38 = vadd.f32 %v5578_v53, %v1856_v48  ;;  %v1750_v53 = vadd.f32 %v6897_v62, %v1640_v5  ;;  %v1748_v50 = vadd.f32 %v6899_v56, %v1638_v45  ;;  %v1857_v58 = vadd.f32 %v6901_v20, %v1747_v37 }
 0x1a6   : > { %v6903_v40 = vpop.f32.mrf.mxu0  ;;  %v2063_v2 = vpop.f32.mrf.mxu1 }
 0x1a7   : > { %v2092_v18 = vadd.f32 %v2063_v2, %v1854_v36  ;;  %v1860_v56 = vadd.f32 %v6903_v40, %v1750_v53  ;;  %v2595_v53 = vld [vmem:[#allocation2 + $0x1c] sm:$0x1] }
 0x1a8   : > { %v6905_v0 = vpop.f32.mrf.mxu0 }
 0x1a9   : > { %v1858_v20 = vadd.f32 %v6905_v0, %v1748_v50 }
 0x1aa   : > { %v5587_v19 = vpop.f32.mrf.mxu0 }
 0x1ab   : > { %v2189_v27 = vadd.f32 %v5587_v19, %v2093_v8  ;;  %v1859_v19 = vadd.f32 %v5571_v47, %v1749_v11 }
 0x1ac   : > { %v2156_v31 = vpop.f32.mrf.mxu0 }
 0x1ad   : > { %v2187_v51 = vadd.f32 %v2156_v31, %v2091_v30  ;;  %v6959_v30 = vrot.slane %v2667_v3, 4 }
 0x1ae   : > { %v5588_v63 = vpop.f32.mrf.mxu0 }
 0x1af   : > { %v2190_v29 = vadd.f32 %v5588_v63, %v2094_v38 }
 0x1b0   : > { %v2159_v34 = vpop.f32.mrf.mxu0  ;;  %v5581_v17 = vpop.f32.mrf.mxu1 }
 0x1b1   : > { %v2097_v31 = vadd.f32 %v5581_v17, %v1859_v19  ;;  %v2188_v2 = vadd.f32 %v2159_v34, %v2092_v18 }
 0x1b2   : > { %v6910_v12 = vpop.f32.mrf.mxu0  ;;  %v2076_v22 = vpop.f32.mrf.mxu1 }
 0x1b3   : > { %v2095_v17 = vadd.f32 %v2076_v22, %v1857_v58  ;;  %v2193_v43 = vadd.f32 %v6910_v12, %v2097_v31  ;;  %v2670_v12 = vshll.u32 %v6956_v54, 16 }
 0x1b4   : > { %v6914_v28 = vpop.f32.mrf.mxu0  ;;  %v5582_v10 = vpop.f32.mrf.mxu1 }
 0x1b5   : > { %v2098_v24 = vadd.f32 %v5582_v10, %v1860_v56  ;;  %v2191_v44 = vadd.f32 %v6914_v28, %v2095_v17  ;;  %v2583_v56 = vld [vmem:[#allocation2 + $0xc] sm:$0x1] }
 0x1b6   : > { %v6917_v32 = vpop.f32.mrf.mxu0  ;;  %v2079_v6 = vpop.f32.mrf.mxu1 }
 0x1b7   : > { %v2096_v13 = vadd.f32 %v2079_v6, %v1858_v20  ;;  %v2194_v4 = vadd.f32 %v6917_v32, %v2098_v24 }
 0x1b8   : > { %v6924_v41 = vpop.f32.mrf.mxu0  ;;  %v5597_v59 = vpop.f32.mrf.mxu1 }
 0x1b9   : > { %v2285_v33 = vadd.f32 %v5597_v59, %v2189_v27  ;;  %v2192_v11 = vadd.f32 %v6924_v41, %v2096_v13 }
 0x1ba   : > { %v5607_v26 = vpop.f32.mrf.mxu0  ;;  %v2252_v35 = vpop.f32.mrf.mxu1 }
 0x1bb   : > { %v2397_v61 = vadd.f32 %v5607_v26, %v2285_v33  ;;  %v2283_v55 = vadd.f32 %v2252_v35, %v2187_v51 }
 0x1bc   : > { %v2364_v1 = vpop.f32.mrf.mxu0  ;;  %v5598_v47 = vpop.f32.mrf.mxu1 }
 0x1bd   : > { %v2412_v63 = vmul.f32 %v6936_v39, %v2397_v61  ;;  %v2395_v23 = vadd.f32 %v2364_v1, %v2283_v55  ;;  %v2286_v49 = vadd.f32 %v5598_v47, %v2190_v29  ;;  %v2592_v1 = vld [vmem:[#allocation2 + $0x18] sm:$0xf]  ;;  %v5886_v55 = vld [vmem:[%s7556_s7 + $0xe0] sm:$0xff]  }
 0x1be   : > { %v5608_v62 = vpop.f32.mrf.mxu0  ;;  %v2255_v7 = vpop.f32.mrf.mxu1 }
 0x1bf   : > { %v2427_v14 = vadd.f32 %v6944_v57, %v2412_v63  ;;  %v2410_v25 = vmul.f32 %v6936_v39, %v2395_v23  ;;  %v2398_v34 = vadd.f32 %v5608_v62, %v2286_v49  ;;  %v2284_v16 = vadd.f32 %v2255_v7, %v2188_v2  ;;  %v2577_v62 = vld [vmem:[#allocation2 + $0x8] sm:$0xf] }
 0x1c0   : > { %v2367_v60 = vpop.f32.mrf.mxu0  ;;  %v5601_v40 = vpop.f32.mrf.mxu1 }
 0x1c1   : > { %v2435_v8 = vmax.f32 %v2427_v14, 0.0  ;;  %v2425_v0 = vadd.f32 %v6944_v57, %v2410_v25  ;;  %v2413_v22 = vmul.f32 %v6936_v39, %v2398_v34  ;;  %v2396_v21 = vadd.f32 %v2367_v60, %v2284_v16 }
 0x1c2   : > { %v5611_v9 = vpop.f32.mrf.mxu0  ;;  %v2289_v42 = vadd.f32 %v5601_v40, %v2193_v43  ;;  %v2268_v48 = vpop.f32.mrf.mxu1 }
 0x1c3   : > { %v5359_v6 = vpack.c.bf16 %v2435_v8, %v2435_v8  ;;  %v2433_v10 = vmax.f32 %v2425_v0, 0.0  ;;  %v2428_v27 = vadd.f32 %v6944_v57, %v2413_v22  ;;  %v2411_v15 = vmul.f32 %v6936_v39, %v2396_v21  ;;  %v2598_v22 = vld [vmem:[#allocation2 + $0x20] sm:$0xf]  ;;  %v2601_v21 = vld [vmem:[#allocation2 + $0x24] sm:$0x1] }
 0x1c4   : > { %v2380_v52 = vpop.f32.mrf.mxu0  ;;  %v2401_v59 = vadd.f32 %v5611_v9, %v2289_v42  ;;  %v2287_v36 = vadd.f32 %v2268_v48, %v2191_v44  ;;  %v5602_v28 = vpop.f32.mrf.mxu1 }
 0x1c5   : > { %v2510_v38 = vshrl.u32 %v5359_v6, 16  ;;  %v2513_v51 = vshll.u32 %v5359_v6, 16  ;;  %v5357_v33 = vpack.c.bf16 %v2433_v10, %v2433_v10  ;;  %v2436_v26 = vmax.f32 %v2428_v27, 0.0  ;;  %v2586_v27 = vld [vmem:[#allocation2 + $0x10] sm:$0xf] }
 0x1c6   : > { %v5612_v5 = vpop.f32.mrf.mxu0  ;;  %v2426_v45 = vadd.f32 %v6944_v57, %v2411_v15  ;;  %v2416_v37 = vmul.f32 %v6936_v39, %v2401_v59  ;;  %v2399_v19 = vadd.f32 %v2380_v52, %v2287_v36  ;;  %v2290_v35 = vadd.f32 %v5602_v28, %v2194_v4  ;;  %v2271_v40 = vpop.f32.mrf.mxu1  ;;  %v2589_v15 = vld [vmem:[#allocation2 + $0x14] sm:$0x1] }
 0x1c7   : > { %v2512_v18 = vrot.slane %v2510_v38, 7  ;;  %v2494_v41 = vshrl.u32 %v5357_v33, 16  ;;  %v2497_v29 = vshll.u32 %v5357_v33, 16  ;;  %v5360_v61 = vpack.c.bf16 %v2436_v26, %v2436_v26 }
 0x1c8   : > { %v2434_v50 = vmax.f32 %v2426_v45, 0.0  ;;  %v2431_v58 = vadd.f32 %v6944_v57, %v2416_v37  ;;  %v2414_v31 = vmul.f32 %v6936_v39, %v2399_v19  ;;  %v2402_v47 = vadd.f32 %v5612_v5, %v2290_v35  ;;  %v2383_v36 = vpop.f32.mrf.mxu0  ;;  %v2616_v35 = vld [vmem:[#allocation2 + $0x38] sm:$0xf] }
 0x1c9   : > { %v2515_v2 = vor.u32 %v2513_v51, %v2512_v18  ;;  %v2516_v63 = vrot.slane %v2512_v18, 4  ;;  %v2496_v23 = vrot.slane %v2494_v41, 7  ;;  %v2518_v49 = vshrl.u32 %v5360_v61, 16  ;;  %v2619_v18 = vld [vmem:[#allocation2 + $0x3c] sm:$0x1] }
 0x1ca   : > { %v2521_v20 = vshll.u32 %v5360_v61, 16  ;;  %v5358_v17 = vpack.c.bf16 %v2434_v50, %v2434_v50  ;;  %v2439_v7 = vmax.f32 %v2431_v58, 0.0  ;;  %v2429_v3 = vadd.f32 %v6944_v57, %v2414_v31  ;;  %v2604_v50 = vld [vmem:[#allocation2 + $0x28] sm:$0xf] }
 0x1cb   : > { %v2593_v14 = vsel %vm6970_vm9, %v2515_v2, %v2592_v1  ;;  %v2596_v25 = vsel %vm6976_vm10, %v2516_v63, %v2595_v53  ;;  %v2499_v34 = vor.u32 %v2497_v29, %v2496_v23  ;;  %v2500_v16 = vrot.slane %v2496_v23, 4 }
 0x1cc   : > { %2594 = vst [vmem:[#allocation2 + $0x18] sm:$0xf] %v2593_v14  ;;  %2597 = vst [vmem:[#allocation2 + $0x1c] sm:$0x1] %v2596_v25  ;;  %v2520_v60 = vrot.slane %v2518_v49, 7  ;;  %v2502_v43 = vshrl.u32 %v5358_v17, 16  ;;  %v5363_v13 = vpack.c.bf16 %v2439_v7, %v2439_v7  ;;  %v2417_v44 = vmul.f32 %v6936_v39, %v2402_v47 }
 0x1cd   : > { %v2505_v24 = vshll.u32 %v5358_v17, 16  ;;  %v2578_v8 = vsel %vm6970_vm9, %v2499_v34, %v2577_v62  ;;  %v2584_v0 = vsel %vm6976_vm10, %v2500_v16, %v2583_v56  ;;  %v2437_v9 = vmax.f32 %v2429_v3, 0.0  ;;  %v2607_v47 = vld [vmem:[#allocation2 + $0x2c] sm:$0x1]  ;;  %v2622_v16 = vld [vmem:[#allocation2 + $0x40] sm:$0xf] }
 0x1ce   : > { %2579 = vst [vmem:[#allocation2 + $0x8] sm:$0xf] %v2578_v8  ;;  %2585 = vst [vmem:[#allocation2 + $0xc] sm:$0x1] %v2584_v0  ;;  %v2523_v42 = vor.u32 %v2521_v20, %v2520_v60  ;;  %v2524_v48 = vrot.slane %v2520_v60, 4  ;;  %v2504_v6 = vrot.slane %v2502_v43, 7  ;;  %v2432_v4 = vadd.f32 %v6944_v57, %v2417_v44 }
 0x1cf   : > { %v2542_v10 = vshrl.u32 %v5363_v13, 16  ;;  %v5361_v52 = vpack.c.bf16 %v2437_v9, %v2437_v9  ;;  %v2288_v59 = vadd.f32 %v2271_v40, %v2192_v11  ;;  %v6995_v28 = vrot.slane %v2670_v12, 5  ;;  %v2625_v60 = vld [vmem:[#allocation2 + $0x44] sm:$0x1] }
 0x1d0   : > { %v2599_v38 = vsel %vm6970_vm9, %v2523_v42, %v2598_v22  ;;  %v2602_v51 = vsel %vm6976_vm10, %v2524_v48, %v2601_v21  ;;  %v2507_v33 = vor.u32 %v2505_v24, %v2504_v6  ;;  %v2508_v26 = vrot.slane %v2504_v6, 4  ;;  %v7604_v24 = vld [vmem:[#allocation4_spill] sm:$0xff] }
 0x1d1   : > { %2600 = vst [vmem:[#allocation2 + $0x20] sm:$0xf] %v2599_v38  ;;  %2603 = vst [vmem:[#allocation2 + $0x24] sm:$0x1] %v2602_v51  ;;  %v2544_v5 = vrot.slane %v2542_v10, 7  ;;  %v2545_v45 = vshll.u32 %v5363_v13, 16  ;;  %v2400_v29 = vadd.f32 %v2383_v36, %v2288_v59  ;;  %v2673_v23 = vsel %vm6436_vm4, %v6959_v30, %v6995_v28 }
 0x1d2   : > { %v2526_v37 = vshrl.u32 %v5361_v52, 16  ;;  %v2440_v19 = vmax.f32 %v2432_v4, 0.0  ;;  %v2587_v11 = vsel %vm6970_vm9, %v2507_v33, %v2586_v27  ;;  %v2590_v12 = vsel %vm6976_vm10, %v2508_v26, %v2589_v15  ;;  %v5879_v33 = vld [vmem:[%s7556_s7 + $0xf0] sm:$0xff]  }
 0x1d3   : > { %v2529_v41 = vshll.u32 %v5361_v52, 16  ;;  %2588 = vst [vmem:[#allocation2 + $0x10] sm:$0xf] %v2587_v11  ;;  %2591 = vst [vmem:[#allocation2 + $0x14] sm:$0x1] %v2590_v12  ;;  %v2547_v61 = vor.u32 %v2545_v45, %v2544_v5  ;;  %v2548_v1 = vrot.slane %v2544_v5, 4  ;;  %v2415_v2 = vmul.f32 %v6936_v39, %v2400_v29 }
 0x1d4   : > { %v2528_v53 = vrot.slane %v2526_v37, 7  ;;  %v5364_v58 = vpack.c.bf16 %v2440_v19, %v2440_v19  ;;  %v2631_v31 = vld [vmem:[#allocation2 + $0x18] sm:$0xf]  ;;  %v7024_v6 = vld [vmem:[#allocation2 + $0x1c] sm:$0x1] }
 0x1d5   : > { %v2703_v63 = vshrl.u32 %v2631_v31, 16  ;;  %v2617_v49 = vsel %vm6970_vm9, %v2547_v61, %v2616_v35  ;;  %v2620_v62 = vsel %vm6976_vm10, %v2548_v1, %v2619_v18  ;;  %v2629_v17 = vld [vmem:[#allocation2 + $0x8] sm:$0xf]  ;;  %v2430_v39 = vadd.f32 %v6944_v57, %v2415_v2  ;;  %v7020_v40 = vld [vmem:[#allocation2 + $0xc] sm:$0x1] }
 0x1d6   : > { %v2531_v56 = vor.u32 %v2529_v41, %v2528_v53  ;;  %v2532_v20 = vrot.slane %v2528_v53, 4  ;;  %2618 = vst [vmem:[#allocation2 + $0x38] sm:$0xf] %v2617_v49  ;;  %2621 = vst [vmem:[#allocation2 + $0x3c] sm:$0x1] %v2620_v62  ;;  %v2550_v7 = vshrl.u32 %v5364_v58, 16  ;;  %v5050_v13 = vcombine.low %v7604_v24, %v2629_v17 }
 0x1d7   : > { %v2675_v3 = vshrl.u32 %v2629_v17, 16  ;;  %v2706_v14 = vshll.u32 %v2631_v31, 16  ;;  %v2678_v43 = vshll.u32 %v2629_v17, 16  ;;  %v2553_v0 = vshll.u32 %v5364_v58, 16  ;;  %v2610_v11 = vld [vmem:[#allocation2 + $0x30] sm:$0xf] }
 0x1d8   : > { %v2605_v25 = vsel %vm6970_vm9, %v2531_v56, %v2604_v50  ;;  %v2608_v34 = vsel %vm6976_vm10, %v2532_v20, %v2607_v47  ;;  %v2552_v8 = vrot.slane %v2550_v7, 7  ;;  %v2438_v57 = vmax.f32 %v2430_v39, 0.0  ;;  %v2632_v21 = vld [vmem:[#allocation2 + $0x20] sm:$0xf]  ;;  %5653 = vmatprep.mubr.bf16.mxu0 %v5050_v13  ;;  %v2613_v12 = vld [vmem:[#allocation2 + $0x34] sm:$0x1] }
 0x1d9   : > { %2606 = vst [vmem:[#allocation2 + $0x28] sm:$0xf] %v2605_v25  ;;  %2609 = vst [vmem:[#allocation2 + $0x2c] sm:$0x1] %v2608_v34  ;;  %v2677_v22 = vrot.slane %v2675_v3, 4  ;;  %v2680_v9 = vrot.slane %v2678_v43, 5 }
 0x1da   : > { %v7022_v44 = vrot.slane %v2703_v63, 4  ;;  %v2717_v42 = vshrl.u32 %v2632_v21, 16  ;;  %v2720_v48 = vshll.u32 %v2632_v21, 16  ;;  %v2555_v10 = vor.u32 %v2553_v0, %v2552_v8  ;;  %v2630_v52 = vld [vmem:[#allocation2 + $0x10] sm:$0xf]  ;;  %v7605_v53 = vld [vmem:[#allocation5_spill] sm:$0xff] }
 0x1db   : > { %v2556_v27 = vrot.slane %v2552_v8, 4  ;;  %v5362_v15 = vpack.c.bf16 %v2438_v57, %v2438_v57  ;;  %v2684_v4 = vshll.u32 %v7020_v40, 16  ;;  %v2689_v59 = vshrl.u32 %v2630_v52, 16  ;;  %v7034_v37 = vld [vmem:[#allocation2 + $0x14] sm:$0x1]  ;;  %v5882_v63 = vld [vmem:[%s7556_s7 + $0xe8] sm:$0xff]  }
 0x1dc   : > { %v2692_v36 = vshll.u32 %v2630_v52, 16  ;;  %v2708_v38 = vrot.slane %v2706_v14, 5  ;;  %v5051_v51 = vcombine.low %v2630_v52, %v2631_v31  ;;  %v2623_v26 = vsel %vm6970_vm9, %v2555_v10, %v2622_v16  ;;  %v7045_v3 = vld [vmem:[#allocation2 + $0x24] sm:$0x1] }
 0x1dd   : > { %v2626_v5 = vsel %vm6976_vm10, %v2556_v27, %v2625_v60  ;;  %v2534_v45 = vshrl.u32 %v5362_v15, 16  ;;  %v2712_v19 = vshll.u32 %v7024_v6, 16  ;;  %2624 = vst [vmem:[#allocation2 + $0x40] sm:$0xf] %v2623_v26  ;;  %v2691_v35 = vrot.slane %v2689_v59, 4 }
 0x1de   : > { %2627 = vst [vmem:[#allocation2 + $0x44] sm:$0x1] %v2626_v5  ;;  %v2694_v18 = vrot.slane %v2692_v36, 5  ;;  %5654 = vmatmul.mubr.bf16.vlgmr.msra.gmra.mxu0 %v5051_v51  ;;  %v2719_v41 = vrot.slane %v2717_v42, 4  ;;  %v2681_v29 = vor.u32 %v2680_v9, %v2677_v22  ;;  %v2537_v1 = vshll.u32 %v5362_v15, 16 }
 0x1df   : > { %v2536_v61 = vrot.slane %v2534_v45, 7  ;;  %5686 = vmatpush3.bf16.msra.mxu0 %v7605_v53  ;;  %v2722_v50 = vrot.slane %v2720_v48, 5  ;;  %v2686_v58 = vrot.slane %v2684_v4, 5  ;;  %v7038_v31 = vld [vmem:[#allocation2 + $0x38] sm:$0xf]  ;;  %v2698_v62 = vshll.u32 %v7034_v37, 16 }
 0x1e0   : > { %5687 = vmatprep.subr.bf16.mxu0 %v5879_v33  ;;  %v2633_v47 = vld [vmem:[#allocation2 + $0x28] sm:$0xf]  ;;  %v2682_v2 = vrot.slane %v2681_v29, 4  ;;  %v2695_v49 = vor.u32 %v2694_v18, %v2691_v35  ;;  %v2709_v56 = vor.u32 %v2708_v38, %v7022_v44  ;;  %v2759_v34 = vshrl.u32 %v7038_v31, 16  ;;  %v7055_v8 = vld [vmem:[#allocation2 + $0x2c] sm:$0x1] }
 0x1e1   : > { %v2539_v20 = vor.u32 %v2537_v1, %v2536_v61  ;;  %v2540_v17 = vrot.slane %v2536_v61, 4  ;;  %v2731_v7 = vshrl.u32 %v2633_v47, 16  ;;  %v2734_v39 = vshll.u32 %v2633_v47, 16  ;;  %v5887_v4 = vld [vmem:[%s7556_s7 + $0xb0] sm:$0xff]   ;;  %v5888_v38 = vld [vmem:[%s7556_s7 + $0xd8] sm:$0xff]   ;;  %v5889_v29 = vld [vmem:[%s7556_s7 + $0xa8] sm:$0xff]  }
 0x1e2   : > { %v5052_v14 = vcombine.low %v2632_v21, %v2633_v47  ;;  %v2687_v25 = vsel %vm6436_vm4, %v2682_v2, %v2686_v58  ;;  %v2762_v16 = vshll.u32 %v7038_v31, 16  ;;  %v2696_v32 = vrot.slane %v2695_v49, 4  ;;  %v7081_v26 = vld [vmem:[#allocation2 + $0x3c] sm:$0x1]  ;;  %v3055_v5 = vld [vmem:[#allocation2] sm:$0xe] }
 0x1e3   : > { %v2611_v60 = vsel %vm6970_vm9, %v2539_v20, %v2610_v11  ;;  %v2614_v43 = vsel %vm6976_vm10, %v2540_v17, %v2613_v12  ;;  %v2733_v24 = vrot.slane %v2731_v7, 4  ;;  %v2736_v13 = vrot.slane %v2734_v39, 5  ;;  %5688 = vmatpush3.bf16.msra.mxu0 %v5879_v33  ;;  %v3056_v1 = vld [vmem:[#allocation2 + $0x8] sm:$0xe]  ;;  %v5891_v7 = vld [vmem:[%s7556_s7 + $0xa0] sm:$0xff]  }
 0x1e4   : > { %2612 = vst [vmem:[#allocation2 + $0x30] sm:$0xf] %v2611_v60  ;;  %2615 = vst [vmem:[#allocation2 + $0x34] sm:$0x1] %v2614_v43  ;;  %5657 = vmatprep.mubr.bf16.mxu0 %v5052_v14  ;;  %v5038_v0 = vcombine.low %v2673_v23, %v2687_v25  ;;  %5689 = vmatprep.subr.bf16.mxu0 %v5882_v63  ;;  %v2700_v57 = vrot.slane %v2698_v62, 5  ;;  %v2710_v22 = vrot.slane %v2709_v56, 4 }
 0x1e5   : > { %v2714_v21 = vrot.slane %v2712_v19, 5  ;;  %v2723_v9 = vor.u32 %v2722_v50, %v2719_v41  ;;  %v2726_v44 = vshll.u32 %v7045_v3, 16  ;;  %v2737_v42 = vor.u32 %v2736_v13, %v2733_v24  ;;  %v7606_v19 = vld [vmem:[#allocation3_spill] sm:$0xff]  ;;  %v5892_v39 = vld [vmem:[%s7556_s7 + $0xc8] sm:$0xff]   ;;  %v5893_v13 = vld [vmem:[%s7556_s7 + $0x98] sm:$0xff]  }
 0x1e6   : > { %5629 = vmatprep.mubr.bf16.mxu1 %v5038_v0  ;;  %v2701_v48 = vsel %vm6436_vm4, %v2696_v32, %v2700_v57  ;;  %v2740_v30 = vshll.u32 %v7055_v8, 16  ;;  %v2761_v28 = vrot.slane %v2759_v34, 4  ;;  %v2764_v15 = vrot.slane %v2762_v16, 5  ;;  %v5885_v53 = vld [vmem:[#allocation2 + $0x8] ss:$8 sps:$4 sm:$0xff]   ;;  %v5894_v32 = vld [vmem:[%s7556_s7 + $0xc0] sm:$0xff]  }
 0x1e7   : > { %5690 = vmatpush3.bf16.msra.mxu0 %v5882_v63  ;;  %v2715_v23 = vsel %vm6436_vm4, %v2710_v22, %v2714_v21  ;;  %v2724_v10 = vrot.slane %v2723_v9, 4  ;;  %v2738_v27 = vrot.slane %v2737_v42, 4  ;;  %v2728_v59 = vrot.slane %v2726_v44, 5  ;;  %v5890_v50 = vld [vmem:[%s7556_s7 + $0xd0] sm:$0xff]   ;;  %v5897_v22 = vld [vmem:[%s7556_s7 + $0x178] sm:$0xff]   ;;  %v5898_v21 = vld [vmem:[%s7556_s7 + $0x88] sm:$0xff]  }
 0x1e8   : > { %v5039_v52 = vcombine.low %v2701_v48, %v2715_v23  ;;  %5691 = vmatprep.subr.bf16.mxu0 %v5886_v55  ;;  %v2742_v36 = vrot.slane %v2740_v30, 5  ;;  %v2765_v61 = vor.u32 %v2764_v15, %v2761_v28  ;;  %v2768_v2 = vshll.u32 %v7081_v26, 16  ;;  %v5895_v57 = vld [vmem:[%s7556_s7 + $0x90] sm:$0xff]   ;;  %v7137_v28 = vld [vmem:[#allocation2 + $0xc] sm:$0x1] }
 0x1e9   : > { %v2729_v51 = vsel %vm6436_vm4, %v2724_v10, %v2728_v59  ;;  %v5062_v63 = vrot.slane %v3055_v5, 9  ;;  %v3084_v49 = vrot.slane %v6956_v54, 5  ;;  %v5063_v62 = vrot.slane %v3056_v1, 9  ;;  %v3440_v9 = vld [vmem:[#allocation2 + $0x10] sm:$0xf] }
 0x1ea   : > { %5630 = vmatmul.mubr.bf16.vlgmr.msra.gmra.mxu1 %v5039_v52  ;;  %v2743_v33 = vsel %vm6436_vm4, %v2738_v27, %v2742_v36  ;;  %v3088_v56 = vrot.slane %v7020_v40, 5  ;;  %v2766_v17 = vrot.slane %v2765_v61, 4  ;;  %v2770_v34 = vrot.slane %v2768_v2, 5  ;;  %v5900_v44 = vld [vmem:[%s7556_s7 + $0x170] sm:$0xff]   ;;  %v3438_v23 = vld [vmem:[#allocation2 + $0x8] sm:$0xf] }
 0x1eb   : > { %v2634_v45 = vld [vmem:[#allocation2 + $0x30] sm:$0xf]  ;;  %5662 = vmatpush3.bf16.msra.mxu1 %v7606_v19  ;;  %5692 = vmatpush3.bf16.msra.mxu0 %v5886_v55  ;;  %v5040_v11 = vcombine.low %v2729_v51, %v2743_v33  ;;  %v7084_v12 = vld [vmem:[#allocation2 + $0x34] sm:$0x1]  ;;  %v3085_v40 = vsel %vm7105_vm13, %v5062_v63, %v3084_v49  ;;  %v5896_v55 = vld [vmem:[#allocation2 + $0x18] ss:$8 sps:$4 sm:$0xff]  }
 0x1ec   : > { %v2745_v35 = vshrl.u32 %v2634_v45, 16  ;;  %v2748_v18 = vshll.u32 %v2634_v45, 16  ;;  %v5053_v41 = vcombine.low %v2634_v45, %v7038_v31  ;;  %5663 = vmatprep.subr.bf16.mxu1 %v5887_v4  ;;  %5693 = vmatprep.subr.bf16.mxu0 %v5888_v38  ;;  %v2754_v31 = vshll.u32 %v7084_v12, 16  ;;  %v3057_v42 = vld [vmem:[#allocation2 + $0x10] sm:$0xe] }
 0x1ed   : > { %5633 = vmatprep.mubr.bf16.mxu1 %v5040_v11  ;;  %v3089_v16 = vsel %vm7105_vm13, %v5063_v62, %v3088_v56  ;;  %v2771_v43 = vsel %vm6436_vm4, %v2766_v17, %v2770_v34  ;;  %v7135_v48 = vld [vmem:[#allocation2 + $0x14] sm:$0x1]  ;;  %v3721_v30 = vld [vmem:[#allocation2 + $0x10] sm:$0xe]  ;;  %v3720_v27 = vld [vmem:[#allocation2 + $0x8] sm:$0xe] }
 0x1ee   : > { %v2747_v58 = vrot.slane %v2745_v35, 4  ;;  %v2750_v47 = vrot.slane %v2748_v18, 5  ;;  %5658 = vmatmul.mubr.bf16.gmra.mxu0 %v5053_v41  ;;  %v2756_v25 = vrot.slane %v2754_v31, 5  ;;  %v5086_v0 = vcombine.low %v3085_v40, %v3089_v16  ;;  %v5899_v10 = vld [vmem:[#allocation2 + $0x28] ss:$8 sps:$4 sm:$0xff]   ;;  %v5905_v17 = vld [vmem:[%s7556_s7 + $0x160] sm:$0xff]  }
 0x1ef   : > { %5701 = vmatprep.mubr.bf16.mxu0 %v5885_v53  ;;  %5664 = vmatpush3.bf16.msra.mxu1 %v5887_v4  ;;  %v3469_v15 = vshrl.u32 %v3440_v9, 16  ;;  %v3472_v52 = vshll.u32 %v3440_v9, 16  ;;  %v5155_v4 = vrot.slane %v3721_v30, 9  ;;  %v3750_v59 = vrot.slane %v7135_v48, 5  ;;  %v3060_v36 = vld [vmem:[#allocation2 + $0x28] sm:$0xe] }
 0x1f0   : > { %5665 = vmatprep.subr.bf16.mxu1 %v5889_v29  ;;  %5694 = vmatpush3.bf16.msra.mxu0 %v5888_v38  ;;  %v2751_v20 = vor.u32 %v2750_v47, %v2747_v58  ;;  %v5901_v38 = vld [vmem:[%s7556_s7 + $0x80] sm:$0xff]   ;;  %v3058_v51 = vld [vmem:[#allocation2 + $0x18] sm:$0xe]  ;;  %v3455_v33 = vshrl.u32 %v3438_v23, 16  ;;  %v3458_v5 = vshll.u32 %v3438_v23, 16  ;;  %v5064_v45 = vrot.slane %v3057_v42, 9 }
 0x1f1   : > { %5695 = vmatprep.subr.bf16.mxu0 %v5890_v50  ;;  %v3092_v19 = vrot.slane %v7034_v37, 5  ;;  %v5154_v11 = vrot.slane %v3720_v27, 9  ;;  %v3746_v35 = vrot.slane %v7137_v28, 5  ;;  %v3059_v18 = vld [vmem:[#allocation2 + $0x20] sm:$0xe]  ;;  %v5903_v41 = vld [vmem:[%s7556_s7 + $0x168] sm:$0xff]   ;;  %v3751_v37 = vsel %vm7105_vm13, %v5155_v4, %v3750_v59 }
 0x1f2   : > { %v2752_v14 = vrot.slane %v2751_v20, 4  ;;  %v3104_v61 = vrot.slane %v7055_v8, 5  ;;  %v3471_v1 = vrot.slane %v3469_v15, 4  ;;  %v3474_v53 = vrot.slane %v3472_v52, 5  ;;  %v5904_v47 = vld [vmem:[%s7556_s7 + $0x138] sm:$0xff]   ;;  %v5906_v34 = vld [vmem:[%s7556_s7 + $0x130] sm:$0xff]  }
 0x1f3   : > { %5666 = vmatpush3.bf16.msra.mxu1 %v5889_v29  ;;  %v5067_v29 = vrot.slane %v3060_v36, 9  ;;  %v3096_v58 = vrot.slane %v7024_v6, 5  ;;  %v5066_v31 = vrot.slane %v3059_v18, 9  ;;  %v3100_v2 = vrot.slane %v7045_v3, 5  ;;  %v5902_v8 = vld [vmem:[#allocation2 + $0x38] ss:$8 sps:$4 sm:$0xff]  }
 0x1f4   : > { %v2757_v60 = vsel %vm6436_vm4, %v2752_v14, %v2756_v25  ;;  %5667 = vmatprep.subr.bf16.mxu1 %v5891_v7  ;;  %5696 = vmatpush3.bf16.msra.mxu0 %v5890_v50  ;;  %v5065_v50 = vrot.slane %v3058_v51, 9  ;;  %v3457_v63 = vrot.slane %v3455_v33, 4  ;;  %v3460_v49 = vrot.slane %v3458_v5, 5  ;;  %v3061_v3 = vld [vmem:[#allocation2 + $0x30] sm:$0xe]  ;;  %v5910_v15 = vld [vmem:[%s7556_s7 + $0x120] sm:$0xff]  }
 0x1f5   : > { %v5041_v24 = vcombine.low %v2757_v60, %v2771_v43  ;;  %5697 = vmatprep.subr.bf16.mxu0 %v5892_v39  ;;  %v3093_v62 = vsel %vm7105_vm13, %v5064_v45, %v3092_v19  ;;  %v3747_v6 = vsel %vm7105_vm13, %v5154_v11, %v3746_v35  ;;  %v3105_v20 = vsel %vm7105_vm13, %v5067_v29, %v3104_v61  ;;  %v3062_v40 = vld [vmem:[#allocation2 + $0x38] sm:$0xe]  ;;  %v7184_v42 = vld [vmem:[#allocation2 + $0x1c] sm:$0x1]  ;;  %v7191_v23 = vld [vmem:[#allocation2 + $0x24] sm:$0x1] }
 0x1f6   : > { %v5178_v56 = vcombine.low %v3747_v6, %v3751_v37  ;;  %v3101_v25 = vsel %vm7105_vm13, %v5066_v31, %v3100_v2  ;;  %v3461_v16 = vor.u32 %v3460_v49, %v3457_v63  ;;  %v3478_v60 = vshll.u32 %v7135_v48, 16  ;;  %v3722_v48 = vld [vmem:[#allocation2 + $0x18] sm:$0xe]  ;;  %v5911_v59 = vld [vmem:[%s7556_s7 + $0x148] sm:$0xff]   ;;  %v7204_v51 = vld [vmem:[#allocation2 + $0x34] sm:$0x1] }
 0x1f7   : > { %5634 = vmatmul.mubr.bf16.gmra.mxu1 %v5041_v24  ;;  %v5088_v43 = vcombine.low %v3101_v25, %v3105_v20  ;;  %v5068_v24 = vrot.slane %v3061_v3, 9  ;;  %v5156_v36 = vrot.slane %v3722_v48, 9  ;;  %v3725_v33 = vld [vmem:[#allocation2 + $0x30] sm:$0xe]  ;;  %v3758_v19 = vrot.slane %v7191_v23, 5 }
 0x1f8   : > { %5677 = vmatprep.mubr.bf16.mxu1 %v5086_v0  ;;  %5668 = vmatpush3.bf16.msra.mxu1 %v5891_v7  ;;  %v3475_v7 = vor.u32 %v3474_v53, %v3471_v1  ;;  %v5907_v0 = vld [vmem:[%s7556_s7 + $0x158] sm:$0xff]   ;;  %v3480_v9 = vrot.slane %v3478_v60, 5  ;;  %v7207_v11 = vld [vmem:[#allocation2 + $0x28] sm:$0xe]  ;;  %v4101_v35 = vld [vmem:[#allocation2 + $0x10] sm:$0xf] }
 0x1f9   : > { %5669 = vmatprep.subr.bf16.mxu1 %v5893_v13  ;;  %5698 = vmatpush3.bf16.msra.mxu0 %v5892_v39  ;;  %v3097_v39 = vsel %vm7105_vm13, %v5065_v50, %v3096_v58  ;;  %v7209_v18 = vld [vmem:[#allocation2 + $0x2c] sm:$0x1]  ;;  %v3444_v29 = vld [vmem:[#allocation2 + $0x20] sm:$0xf]  ;;  %v5159_v61 = vrot.slane %v3725_v33, 9  ;;  %v3766_v1 = vrot.slane %v7204_v51, 5 }
 0x1fa   : > { %5699 = vmatprep.subr.bf16.mxu0 %v5894_v32  ;;  %v5087_v14 = vcombine.low %v3093_v62, %v3097_v39  ;;  %v4103_v53 = vld [vmem:[#allocation2 + $0x18] sm:$0xf]  ;;  %v3448_v50 = vld [vmem:[#allocation2 + $0x30] sm:$0xf]  ;;  %v7222_v31 = vld [vmem:[#allocation2 + $0x44] sm:$0x1] }
 0x1fb   : > { %v5912_v58 = vld [vmem:[%s7556_s7 + $0x118] sm:$0xff]   ;;  %v4118_v63 = vshrl.u32 %v4101_v35, 16  ;;  %v4121_v49 = vshll.u32 %v4101_v35, 16  ;;  %v3762_v6 = vrot.slane %v7209_v18, 5  ;;  %v3500_v20 = vshll.u32 %v3444_v29, 16 }
 0x1fc   : > { %5670 = vmatpush3.bf16.msra.mxu1 %v5893_v13  ;;  %v3108_v13 = vrot.slane %v7084_v12, 5  ;;  %v3462_v12 = vrot.slane %v3461_v16, 4  ;;  %v3442_v2 = vld [vmem:[#allocation2 + $0x18] sm:$0xf]  ;;  %v3727_v3 = vld [vmem:[#allocation2 + $0x40] sm:$0xe] }
 0x1fd   : > { %5671 = vmatprep.subr.bf16.mxu1 %v5895_v57  ;;  %5700 = vmatpush3.bf16.msra.mxu0 %v5894_v32  ;;  %v3464_v32 = vshll.u32 %v7137_v28, 16  ;;  %v4135_v39 = vshll.u32 %v4103_v53, 16  ;;  %v3528_v25 = vshll.u32 %v3448_v50, 16  ;;  %v3483_v60 = vshrl.u32 %v3442_v2, 16  ;;  %v7254_v35 = vld [vmem:[#allocation2 + $0x1c] sm:$0x1] }
 0x1fe   : > { %5733 = vmatprep.subr.bf16.mxu0 %v5897_v22 }
 0x1ff   : > { %v3466_v30 = vrot.slane %v3464_v32, 5  ;;  %v4137_v48 = vrot.slane %v4135_v39, 5  ;;  %v5919_v39 = vld [vmem:[%s7556_s7 + $0x1e8] sm:$0xff]  }
 0x200   : > { %5672 = vmatpush3.bf16.msra.mxu1 %v5895_v57  ;;  %5702 = vmatmul.mubr.bf16.vlgmr.msra.gmra.mxu0 %v5896_v55  ;;  %v3476_v57 = vrot.slane %v3475_v7, 4  ;;  %v3112_v55 = vrot.slane %v7081_v26, 5  ;;  %v5909_v26 = vld [vmem:[%s7556_s7 + $0x150] sm:$0xff]   ;;  %v4132_v7 = vshrl.u32 %v4103_v53, 16 }
 0x201   : > { %5673 = vmatprep.subr.bf16.mxu1 %v5898_v21  ;;  %5705 = vmatprep.mubr.bf16.mxu0 %v5899_v10  ;;  %v3723_v10 = vld [vmem:[#allocation2 + $0x20] sm:$0xe]  ;;  %v3467_v4 = vsel %vm6436_vm4, %v3462_v12, %v3466_v30 }
 0x202   : > { %5734 = vmatpush3.bf16.msra.mxu0 %v5897_v22  ;;  %v5069_v22 = vrot.slane %v3062_v40, 9  ;;  %v3481_v28 = vsel %vm6436_vm4, %v3476_v57, %v3480_v9  ;;  %v5157_v45 = vrot.slane %v3723_v10, 9  ;;  %v3767_v40 = vsel %vm7105_vm13, %v5159_v61, %v3766_v1  ;;  %v5917_v1 = vld [vmem:[%s7556_s7 + $0x1f0] sm:$0xff]  }
 0x203   : > { %5735 = vmatprep.subr.bf16.mxu0 %v5900_v44  ;;  %v5142_v5 = vcombine.low %v3467_v4, %v3481_v28  ;;  %v3502_v9 = vrot.slane %v3500_v20, 5  ;;  %v3530_v28 = vrot.slane %v3528_v25, 5  ;;  %v7247_v4 = vld [vmem:[#allocation2 + $0x14] sm:$0x1]  ;;  %v3534_v20 = vshll.u32 %v7204_v51, 16 }
 0x204   : > { %5674 = vmatpush3.bf16.msra.mxu1 %v5898_v21  ;;  %v5908_v21 = vld [vmem:[%s7556_s7 + $0x128] sm:$0xff]   ;;  %v3113_v27 = vsel %vm7105_vm13, %v5069_v22, %v3112_v55  ;;  %v7229_v62 = vsel %vm7105_vm13, %v5157_v45, %v3758_v19  ;;  %v5915_v22 = vld [vmem:[%s7556_s7 + $0x1f8] sm:$0xff]   ;;  %v5161_v55 = vrot.slane %v3727_v3, 9 }
 0x205   : > { %5675 = vmatprep.subr.bf16.mxu1 %v5901_v38  ;;  %v3450_v45 = vld [vmem:[#allocation2 + $0x38] sm:$0xf] }
 0x206   : > { %5736 = vmatpush3.bf16.msra.mxu0 %v5900_v44  ;;  %v3109_v44 = vsel %vm7105_vm13, %v5068_v24, %v3108_v13  ;;  %v7238_v24 = vld [vmem:[#allocation2 + $0x3c] sm:$0x1]  ;;  %v4120_v13 = vrot.slane %v4118_v63, 4  ;;  %v3539_v63 = vshrl.u32 %v3450_v45, 16 }
 0x207   : > { %5737 = vmatprep.subr.bf16.mxu0 %v5903_v41  ;;  %v5089_v52 = vcombine.low %v3109_v44, %v3113_v27  ;;  %v4134_v44 = vrot.slane %v4132_v7, 4  ;;  %v3770_v27 = vrot.slane %v7238_v24, 5 }
 0x208   : > { %5676 = vmatpush3.bf16.msra.mxu1 %v5901_v38  ;;  %5706 = vmatmul.mubr.bf16.gmra.mxu0 %v5902_v8  ;;  %v3754_v38 = vrot.slane %v7184_v42, 5  ;;  %v5913_v8 = vld [vmem:[%s7556_s7 + $0x140] sm:$0xff]  }
 0x209   : > { %5709 = vmatprep.subr.bf16.mxu1 %v5904_v47  ;;  %5749 = vmatprep.mubr.bf16.mxu0 %v5178_v56  ;;  %v3497_v56 = vshrl.u32 %v3444_v29, 16 }
 0x20a   : > { %5738 = vmatpush3.bf16.msra.mxu0 %v5903_v41  ;;  %v7211_v41 = vld [vmem:[#allocation2 + $0x38] sm:$0xe]  ;;  %v7219_v37 = vsel %vm7105_vm13, %v5156_v36, %v3754_v38 }
 0x20b   : > { %5678 = vmatmul.mubr.bf16.vlgmr.msra.gmra.mxu1 %v5087_v14  ;;  %5739 = vmatprep.subr.bf16.mxu0 %v5905_v17  ;;  %v3525_v14 = vshrl.u32 %v3448_v50, 16  ;;  %v5160_v16 = vrot.slane %v7211_v41, 9  ;;  %v3499_v12 = vrot.slane %v3497_v56, 4  ;;  %v5179_v10 = vcombine.low %v7219_v37, %v7229_v62  ;;  %v5921_v41 = vld [vmem:[%s7556_s7 + $0x1e0] sm:$0xff]  }
 0x20c   : > { %5681 = vmatprep.mubr.bf16.mxu1 %v5088_v43  ;;  %5710 = vmatpush3.bf16.msra.mxu1 %v5904_v47  ;;  %v5158_v47 = vrot.slane %v7207_v11, 9  ;;  %v3486_v43 = vshll.u32 %v3442_v2, 16  ;;  %v4127_v50 = vshll.u32 %v7247_v4, 16  ;;  %v3506_v2 = vshll.u32 %v7191_v23, 16 }
 0x20d   : > { %5711 = vmatprep.subr.bf16.mxu1 %v5906_v34  ;;  %v3527_v30 = vrot.slane %v3525_v14, 4  ;;  %v3503_v11 = vor.u32 %v3502_v9, %v3499_v12 }
 0x20e   : > { %5740 = vmatpush3.bf16.msra.mxu0 %v5905_v17  ;;  %v3446_v17 = vld [vmem:[#allocation2 + $0x28] sm:$0xf]  ;;  %v3763_v36 = vsel %vm7105_vm13, %v5158_v47, %v3762_v6  ;;  %v4141_v6 = vshll.u32 %v7254_v35, 16  ;;  %v4129_v14 = vrot.slane %v4127_v50, 5  ;;  %v3508_v51 = vrot.slane %v3506_v2, 5 }
 0x20f   : > { %5741 = vmatprep.subr.bf16.mxu0 %v5907_v0  ;;  %v3511_v32 = vshrl.u32 %v3446_v17, 16  ;;  %v3514_v57 = vshll.u32 %v3446_v17, 16  ;;  %v5180_v19 = vcombine.low %v3763_v36, %v3767_v40  ;;  %v3531_v37 = vor.u32 %v3530_v28, %v3527_v30 }
 0x210   : > { %5712 = vmatpush3.bf16.msra.mxu1 %v5906_v34  ;;  %v5914_v34 = vld [vmem:[%s7556_s7 + $0x110] sm:$0xff]   ;;  %v3492_v17 = vshll.u32 %v7184_v42, 16  ;;  %v3504_v3 = vrot.slane %v3503_v11, 4  ;;  %v5920_v42 = vld [vmem:[%s7556_s7 + $0x1b8] sm:$0xff]  }
 0x211   : > { %5713 = vmatprep.subr.bf16.mxu1 %v5908_v21  ;;  %v3513_v33 = vrot.slane %v3511_v32, 4  ;;  %v3532_v40 = vrot.slane %v3531_v37, 4  ;;  %v4143_v32 = vrot.slane %v4141_v6, 5 }
 0x212   : > { %5742 = vmatpush3.bf16.msra.mxu0 %v5907_v0  ;;  %v4123_v0 = vrot.slane %v4121_v49, 5  ;;  %v3542_v49 = vshll.u32 %v3450_v45, 16  ;;  %v4105_v45 = vld [vmem:[#allocation2 + $0x20] sm:$0xf] }
 0x213   : > { %5682 = vmatmul.mubr.bf16.gmra.mxu1 %v5089_v52  ;;  %5743 = vmatprep.subr.bf16.mxu0 %v5909_v26  ;;  %v3488_v52 = vrot.slane %v3486_v43, 5  ;;  %v3541_v43 = vrot.slane %v3539_v63, 4  ;;  %v4149_v2 = vshll.u32 %v4105_v45, 16  ;;  %v5926_v63 = vld [vmem:[%s7556_s7 + $0x1d0] sm:$0xff]  }
 0x214   : > { %5714 = vmatpush3.bf16.msra.mxu1 %v5908_v21  ;;  %5725 = vmatprep.mubr.bf16.mxu1 %v5142_v5  ;;  %v3774_v21 = vrot.slane %v7222_v31, 5  ;;  %v4124_v38 = vor.u32 %v4123_v0, %v4120_v13  ;;  %v3516_v5 = vrot.slane %v3514_v57, 5  ;;  %v3544_v13 = vrot.slane %v3542_v49, 5 }
 0x215   : > { %5715 = vmatprep.subr.bf16.mxu1 %v5910_v15 }
 0x216   : > { %5744 = vmatpush3.bf16.msra.mxu0 %v5909_v26  ;;  %v3452_v26 = vld [vmem:[#allocation2 + $0x40] sm:$0xf]  ;;  %v3775_v53 = vsel %vm7105_vm13, %v5161_v55, %v3774_v21  ;;  %v4125_v62 = vrot.slane %v4124_v38, 4  ;;  %v3517_v56 = vor.u32 %v3516_v5, %v3513_v33  ;;  %v3494_v55 = vrot.slane %v3492_v17, 5  ;;  %v4109_v5 = vld [vmem:[#allocation2 + $0x30] sm:$0xf] }
 0x217   : > { %5745 = vmatprep.subr.bf16.mxu0 %v5911_v59  ;;  %v3553_v29 = vshrl.u32 %v3452_v26, 16  ;;  %v3556_v61 = vshll.u32 %v3452_v26, 16  ;;  %v3509_v21 = vsel %vm6436_vm4, %v3504_v3, %v3508_v51  ;;  %v3545_v26 = vor.u32 %v3544_v13, %v3541_v43  ;;  %v5927_v3 = vld [vmem:[%s7556_s7 + $0x1a0] sm:$0xff]   ;;  %v7319_v51 = vld [vmem:[#allocation2 + $0x2c] sm:$0x1] }
 0x218   : > { %5716 = vmatpush3.bf16.msra.mxu1 %v5910_v15  ;;  %v3485_v15 = vrot.slane %v3483_v60, 4  ;;  %v4130_v0 = vsel %vm6436_vm4, %v4125_v62, %v4129_v14  ;;  %v3518_v57 = vrot.slane %v3517_v56, 4  ;;  %v3548_v38 = vshll.u32 %v7238_v24, 16  ;;  %v5924_v24 = vld [vmem:[%s7556_s7 + $0x1a8] sm:$0xff]   ;;  %v5925_v14 = vld [vmem:[#allocation2 + $0x10] ss:$8 sps:$4 sm:$0xff]  }
 0x219   : > { %5717 = vmatprep.subr.bf16.mxu1 %v5912_v58  ;;  %v3555_v23 = vrot.slane %v3553_v29, 4  ;;  %v3558_v7 = vrot.slane %v3556_v61, 5  ;;  %v4177_v50 = vshll.u32 %v4109_v5, 16  ;;  %v4115_v62 = vld [vmem:[#allocation2 + $0x48] sm:$0xf] }
 0x21a   : > { %5746 = vmatpush3.bf16.msra.mxu0 %v5911_v59  ;;  %v5916_v59 = vld [vmem:[%s7556_s7 + $0x108] sm:$0xff]   ;;  %v3489_v47 = vor.u32 %v3488_v52, %v3485_v15  ;;  %v5922_v52 = vld [vmem:[%s7556_s7 + $0x1b0] sm:$0xff]  }
 0x21b   : > { %5747 = vmatprep.subr.bf16.mxu0 %v5913_v8  ;;  %v3559_v12 = vor.u32 %v3558_v7, %v3555_v23  ;;  %v4179_v7 = vrot.slane %v4177_v50, 5  ;;  %v5932_v50 = vld [vmem:[%s7556_s7 + $0x188] sm:$0xff]  }
 0x21c   : > { %5718 = vmatpush3.bf16.msra.mxu1 %v5912_v58  ;;  %v4138_v58 = vor.u32 %v4137_v48, %v4134_v44  ;;  %v3490_v60 = vrot.slane %v3489_v47, 4  ;;  %v4146_v47 = vshrl.u32 %v4105_v45, 16  ;;  %v7340_v45 = vld [vmem:[#allocation2 + $0x44] sm:$0x1] }
 0x21d   : > { %5719 = vmatprep.subr.bf16.mxu1 %v5914_v34  ;;  %v3560_v33 = vrot.slane %v3559_v12, 4 }
 0x21e   : > { %5748 = vmatpush3.bf16.msra.mxu0 %v5913_v8  ;;  %v5918_v8 = vld [vmem:[%s7556_s7 + $0x100] sm:$0xff]   ;;  %v4139_v25 = vrot.slane %v4138_v58, 4  ;;  %v3550_v58 = vrot.slane %v3548_v38, 5 }
 0x21f   : > { %5781 = vmatprep.subr.bf16.mxu0 %v5915_v22 }
 0x220   : > { %5720 = vmatpush3.bf16.msra.mxu1 %v5914_v34  ;;  %v3520_v34 = vshll.u32 %v7209_v18, 16  ;;  %v3771_v18 = vsel %vm7105_vm13, %v5160_v16, %v3770_v27  ;;  %v4144_v44 = vsel %vm6436_vm4, %v4139_v25, %v4143_v32  ;;  %v3495_v16 = vsel %vm6436_vm4, %v3490_v60, %v3494_v55  ;;  %v5928_v60 = vld [vmem:[%s7556_s7 + $0x1c8] sm:$0xff]   ;;  %v7321_v32 = vld [vmem:[#allocation2 + $0x34] sm:$0x1]  ;;  %v7326_v55 = vld [vmem:[#allocation2 + $0x24] sm:$0x1] }
 0x221   : > { %5750 = vmatmul.mubr.bf16.vlgmr.msra.gmra.mxu0 %v5179_v10  ;;  %5721 = vmatprep.subr.bf16.mxu1 %v5916_v59  ;;  %v5181_v9 = vcombine.low %v3771_v18, %v3775_v53  ;;  %v5234_v28 = vcombine.low %v4130_v0, %v4144_v44  ;;  %v3562_v10 = vshll.u32 %v7222_v31, 16  ;;  %v5143_v27 = vcombine.low %v3495_v16, %v3509_v21  ;;  %v5923_v31 = vld [vmem:[%s7556_s7 + $0x1d8] sm:$0xff]  }
 0x222   : > { %5753 = vmatprep.mubr.bf16.mxu0 %v5180_v19  ;;  %5782 = vmatpush3.bf16.msra.mxu0 %v5915_v22  ;;  %v3536_v22 = vrot.slane %v3534_v20, 5  ;;  %v3522_v48 = vrot.slane %v3520_v34, 5  ;;  %v3546_v19 = vrot.slane %v3545_v26, 4  ;;  %v4174_v53 = vshrl.u32 %v4109_v5, 16  ;;  %v5929_v18 = vld [vmem:[%s7556_s7 + $0x198] sm:$0xff]  }
 0x223   : > { %5783 = vmatprep.subr.bf16.mxu0 %v5917_v1  ;;  %v3564_v11 = vrot.slane %v3562_v10, 5  ;;  %v4148_v25 = vrot.slane %v4146_v47, 4  ;;  %v4151_v34 = vrot.slane %v4149_v2, 5  ;;  %v7329_v44 = vld [vmem:[#allocation2 + $0x3c] sm:$0x1]  ;;  %v4155_v26 = vshll.u32 %v7326_v55, 16 }
 0x224   : > { %5722 = vmatpush3.bf16.msra.mxu1 %v5916_v59  ;;  %v3537_v30 = vsel %vm6436_vm4, %v3532_v40, %v3536_v22  ;;  %v3523_v15 = vsel %vm6436_vm4, %v3518_v57, %v3522_v48  ;;  %v4107_v59 = vld [vmem:[#allocation2 + $0x28] sm:$0xf]  ;;  %v3551_v6 = vsel %vm6436_vm4, %v3546_v19, %v3550_v58  ;;  %v4176_v23 = vrot.slane %v4174_v53, 4  ;;  %v5930_v48 = vld [vmem:[%s7556_s7 + $0x1c0] sm:$0xff]   ;;  %v7342_v19 = vld [vmem:[#allocation2 + $0x4c] sm:$0x1] }
 0x225   : > { %5723 = vmatprep.subr.bf16.mxu1 %v5918_v8  ;;  %v5144_v36 = vcombine.low %v3523_v15, %v3537_v30  ;;  %v4160_v29 = vshrl.u32 %v4107_v59, 16  ;;  %v4163_v61 = vshll.u32 %v4107_v59, 16  ;;  %v3565_v37 = vsel %vm6436_vm4, %v3560_v33, %v3564_v11  ;;  %v4605_v53 = vld [vmem:[%s7557_s8] sm:$0x3] }
 0x226   : > { %5784 = vmatpush3.bf16.msra.mxu0 %v5917_v1  ;;  %v4111_v1 = vld [vmem:[#allocation2 + $0x38] sm:$0xf]  ;;  %v5145_v17 = vcombine.low %v3551_v6, %v3565_v37  ;;  %v4216_v40 = vshrl.u32 %v4115_v62, 16  ;;  %v4180_v21 = vor.u32 %v4179_v7, %v4176_v23  ;;  %v4152_v12 = vor.u32 %v4151_v34, %v4148_v25  ;;  %v5282_v23 = vld [vmem:[%s6207_s12 + $0x1b0] sm:$0xff]  ;;  %v5283_v7 = vld [vmem:[%s6207_s12 + $0x1c0] sm:$0xff] }
 0x227   : > { %5785 = vmatprep.subr.bf16.mxu0 %v5919_v39  ;;  %v4188_v49 = vshrl.u32 %v4111_v1, 16  ;;  %v4162_v56 = vrot.slane %v4160_v29, 4  ;;  %v4165_v20 = vrot.slane %v4163_v61, 5  ;;  %v4183_v30 = vshll.u32 %v7321_v32, 16  ;;  %v5935_v25 = vld [vmem:[%s7556_s7 + $0x238] sm:$0xff]  }
 0x228   : > { %5724 = vmatpush3.bf16.msra.mxu1 %v5918_v8  ;;  %v4191_v8 = vshll.u32 %v4111_v1, 16  ;;  %v4218_v16 = vrot.slane %v4216_v40, 4  ;;  %v4181_v59 = vrot.slane %v4180_v21, 4  ;;  %v4153_v38 = vrot.slane %v4152_v12, 4  ;;  %v5286_v21 = vld [vmem:[%s6207_s12 + $0x1f0] sm:$0xff]  ;;  %v5287_v12 = vld [vmem:[%s6207_s12 + $0x200] sm:$0xff] }
 0x229   : > { %5754 = vmatmul.mubr.bf16.gmra.mxu0 %v5181_v9  ;;  %5757 = vmatprep.subr.bf16.mxu1 %v5920_v42  ;;  %v4190_v43 = vrot.slane %v4188_v49, 4  ;;  %v4166_v0 = vor.u32 %v4165_v20, %v4162_v56  ;;  %v4169_v9 = vshll.u32 %v7319_v51, 16  ;;  %v4185_v5 = vrot.slane %v4183_v30, 5 }
 0x22a   : > { %5786 = vmatpush3.bf16.msra.mxu0 %v5919_v39  ;;  %5797 = vmatprep.mubr.bf16.mxu0 %v5234_v28  ;;  %v4113_v39 = vld [vmem:[#allocation2 + $0x40] sm:$0xf]  ;;  %v4193_v13 = vrot.slane %v4191_v8, 5  ;;  %v4157_v29 = vrot.slane %v4155_v26, 5  ;;  %v4211_v2 = vshll.u32 %v7340_v45, 16  ;;  %v4619_v8 = vsel %vm1231_vm0, %v4605_v53, 0 }
 0x22b   : > { %5726 = vmatmul.mubr.bf16.vlgmr.msra.gmra.mxu1 %v5143_v27  ;;  %5787 = vmatprep.subr.bf16.mxu0 %v5921_v41  ;;  %v4202_v57 = vshrl.u32 %v4113_v39, 16  ;;  %v4205_v22 = vshll.u32 %v4113_v39, 16  ;;  %v4167_v10 = vrot.slane %v4166_v0, 4  ;;  %v4171_v33 = vrot.slane %v4169_v9, 5  ;;  %v4384_v0 = vld [vmem:[#allocation2 + $0x18] sm:$0xe] }
 0x22c   : > { %5729 = vmatprep.mubr.bf16.mxu1 %v5144_v36  ;;  %5758 = vmatpush3.bf16.msra.mxu1 %v5920_v42  ;;  %v4219_v42 = vshll.u32 %v4115_v62, 16  ;;  %v4197_v36 = vshll.u32 %v7329_v44, 16  ;;  %v4186_v58 = vsel %vm6436_vm4, %v4181_v59, %v4185_v5  ;;  %v4158_v47 = vsel %vm6436_vm4, %v4153_v38, %v4157_v29  ;;  %v5939_v9 = vld [vmem:[%s7556_s7 + $0x228] sm:$0xff]   ;;  %v4387_v5 = vld [vmem:[#allocation2 + $0x30] sm:$0xe] }
 0x22d   : > { %5759 = vmatprep.subr.bf16.mxu1 %v5922_v52  ;;  %v4204_v27 = vrot.slane %v4202_v57, 4  ;;  %v4207_v15 = vrot.slane %v4205_v22, 5  ;;  %v4172_v61 = vsel %vm6436_vm4, %v4167_v10, %v4171_v33  ;;  %v4601_v34 = vpack.c.bf16 %v5283_v7, %v5282_v23  ;;  %v5285_v57 = vld [vmem:[%s6207_s12 + $0x1e0] sm:$0xff]  ;;  %v5943_v38 = vld [vmem:[%s7556_s7 + $0x208] sm:$0xff]  }
 0x22e   : > { %5788 = vmatpush3.bf16.msra.mxu0 %v5921_v41  ;;  %v4194_v41 = vor.u32 %v4193_v13, %v4190_v43  ;;  %v4221_v28 = vrot.slane %v4219_v42, 5  ;;  %v4199_v37 = vrot.slane %v4197_v36, 5  ;;  %v5934_v43 = vld [vmem:[#allocation2 + $0x20] ss:$8 sps:$4 sm:$0xff]   ;;  %v5284_v13 = vld [vmem:[%s6207_s12 + $0x1d0] sm:$0xff]  ;;  %v4413_v30 = vrot.slane %v7254_v35, 5 }
 0x22f   : > { %5789 = vmatprep.subr.bf16.mxu0 %v5923_v31  ;;  %v4208_v1 = vor.u32 %v4207_v15, %v4204_v27  ;;  %v5936_v42 = vld [vmem:[#allocation2 + $0x30] ss:$8 sps:$4 sm:$0xff]   ;;  %v5940_v10 = vld [vmem:[%s7556_s7 + $0x220] sm:$0xff]   ;;  %v4386_v33 = vld [vmem:[#allocation2 + $0x28] sm:$0xe] }
 0x230   : > { %5760 = vmatpush3.bf16.msra.mxu1 %v5922_v52  ;;  %v5931_v52 = vld [vmem:[%s7556_s7 + $0x190] sm:$0xff]   ;;  %v4222_v11 = vor.u32 %v4221_v28, %v4218_v16  ;;  %v4603_v16 = vpack.c.bf16 %v5287_v12, %v5286_v21  ;;  %v5289_v15 = vld [vmem:[%s6207_s12 + $0x220] sm:$0xff]  ;;  %v5249_v29 = vrot.slane %v4386_v33, 9 }
 0x231   : > { %5761 = vmatprep.subr.bf16.mxu1 %v5924_v24  ;;  %v4209_v6 = vrot.slane %v4208_v1, 4  ;;  %v5288_v35 = vld [vmem:[%s6207_s12 + $0x210] sm:$0xff]  ;;  %v4388_v1 = vld [vmem:[#allocation2 + $0x38] sm:$0xe] }
 0x232   : > { %5790 = vmatpush3.bf16.msra.mxu0 %v5923_v31  ;;  %v4195_v31 = vrot.slane %v4194_v41, 4  ;;  %v4223_v56 = vrot.slane %v4222_v11, 4  ;;  %v4602_v41 = vpack.c.bf16 %v5285_v57, %v5284_v13  ;;  %v4604_v59 = vpack.c.bf16 %v5289_v15, %v5288_v35  ;;  %v5942_v36 = vld [vmem:[%s7556_s7 + $0x210] sm:$0xff]   ;;  %v4385_v11 = vld [vmem:[#allocation2 + $0x20] sm:$0xe] }
 0x233   : > { %5730 = vmatmul.mubr.bf16.gmra.mxu1 %v5145_v17  ;;  %5791 = vmatprep.subr.bf16.mxu0 %v5926_v63  ;;  %v5933_v17 = vld [vmem:[%s7556_s7 + $0x180] sm:$0xff]  }
 0x234   : > { %5762 = vmatpush3.bf16.msra.mxu1 %v5924_v24  ;;  %5773 = vmatprep.mubr.bf16.mxu1 %v5925_v14  ;;  %v4225_v24 = vshll.u32 %v7342_v19, 16  ;;  %v4200_v49 = vsel %vm6436_vm4, %v4195_v31, %v4199_v37  ;;  %v5944_v31 = vld [vmem:[%s7556_s7 + $0x200] sm:$0xff]   ;;  %v5251_v37 = vrot.slane %v4388_v1, 9 }
 0x235   : > { %5763 = vmatprep.subr.bf16.mxu1 %v5927_v3  ;;  %v5236_v62 = vcombine.low %v4186_v58, %v4200_v49  ;;  %v4417_v58 = vrot.slane %v7326_v55, 5 }
 0x236   : > { %5792 = vmatpush3.bf16.msra.mxu0 %v5926_v63  ;;  %v5235_v63 = vcombine.low %v4158_v47, %v4172_v61  ;;  %v4227_v20 = vrot.slane %v4225_v24, 5  ;;  %v4421_v61 = vrot.slane %v7319_v51, 5  ;;  %v5250_v24 = vrot.slane %v4387_v5, 9  ;;  %v4389_v51 = vld [vmem:[#allocation2 + $0x40] sm:$0xe] }
 0x237   : > { %5793 = vmatprep.subr.bf16.mxu0 %v5928_v60  ;;  %v4429_v47 = vrot.slane %v7329_v44, 5  ;;  %v4433_v44 = vrot.slane %v7340_v45, 5 }
 0x238   : > { %5764 = vmatpush3.bf16.msra.mxu1 %v5927_v3  ;;  %v4213_v3 = vrot.slane %v4211_v2, 5  ;;  %v4228_v14 = vsel %vm6436_vm4, %v4223_v56, %v4227_v20  ;;  %v4422_v2 = vsel %vm7105_vm13, %v5249_v29, %v4421_v61  ;;  %v5252_v56 = vrot.slane %v4389_v51, 9 }
 0x239   : > { %5765 = vmatprep.subr.bf16.mxu1 %v5929_v18  ;;  %v4430_v55 = vsel %vm7105_vm13, %v5251_v37, %v4429_v47  ;;  %v4437_v20 = vrot.slane %v7342_v19, 5 }
 0x23a   : > { %5794 = vmatpush3.bf16.msra.mxu0 %v5928_v60  ;;  %v4214_v39 = vsel %vm6436_vm4, %v4209_v6, %v4213_v3  ;;  %v4383_v60 = vld [vmem:[#allocation2 + $0x10] sm:$0xe] }
 0x23b   : > { %5795 = vmatprep.subr.bf16.mxu0 %v5930_v48  ;;  %v5237_v40 = vcombine.low %v4214_v39, %v4228_v14  ;;  %v5246_v22 = vrot.slane %v4383_v60, 9 }
 0x23c   : > { %5766 = vmatpush3.bf16.msra.mxu1 %v5929_v18  ;;  %v4409_v18 = vrot.slane %v7247_v4, 5  ;;  %v5938_v4 = vld [vmem:[#allocation2 + $0x40] ss:$8 sps:$4 sm:$0xff]  }
 0x23d   : > { %5767 = vmatprep.subr.bf16.mxu1 %v5931_v52 }
 0x23e   : > { %5796 = vmatpush3.bf16.msra.mxu0 %v5930_v48  ;;  %v5247_v48 = vrot.slane %v4384_v0, 9  ;;  %v4410_v28 = vsel %vm7105_vm13, %v5246_v22, %v4409_v18 }
 0x23f   : > { %5848 = vmatprep.subr.msk.bf16.mxu0 %vm1231_vm0, %v4605_v53  ;;  %v4425_v53 = vrot.slane %v7321_v32, 5 }
 0x240   : > { %5768 = vmatpush3.bf16.msra.mxu1 %v5931_v52  ;;  %v4414_v26 = vsel %vm7105_vm13, %v5247_v48, %v4413_v30  ;;  %v5941_v52 = vld [vmem:[%s7556_s7 + $0x218] sm:$0xff]  }
 0x241   : > { %5798 = vmatmul.mubr.bf16.vlgmr.msra.gmra.mxu0 %v5235_v63  ;;  %5769 = vmatprep.subr.bf16.mxu1 %v5932_v50  ;;  %v5270_v27 = vcombine.low %v4410_v28, %v4414_v26  ;;  %v4390_v63 = vld [vmem:[#allocation2 + $0x48] sm:$0xe]  ;;  %v4426_v49 = vsel %vm7105_vm13, %v5250_v24, %v4425_v53 }
 0x242   : > { %5801 = vmatprep.mubr.bf16.mxu0 %v5236_v62  ;;  %5830 = vmatpush3.bf16.msra.mxu0 %v4619_v8  ;;  %v5253_v62 = vrot.slane %v4390_v63, 9  ;;  %v5272_v6 = vcombine.low %v4426_v49, %v4430_v55 }
 0x244   : > { %5770 = vmatpush3.bf16.msra.mxu1 %v5932_v50  ;;  %v5248_v50 = vrot.slane %v4385_v11, 9  ;;  %v4438_v3 = vsel %vm7105_vm13, %v5253_v62, %v4437_v20 }
 0x245   : > { %5771 = vmatprep.subr.bf16.mxu1 %v5933_v17 }
 0x246   : > { %v4418_v32 = vsel %vm7105_vm13, %v5248_v50, %v4417_v58 }
 0x247   : > { %v5271_v8 = vcombine.low %v4418_v32, %v4422_v2 }
 0x248   : > { %5772 = vmatpush3.bf16.msra.mxu1 %v5933_v17  ;;  %v4434_v17 = vsel %vm7105_vm13, %v5252_v56, %v4433_v44 }
 0x249   : > { %5802 = vmatmul.mubr.bf16.gmra.mxu0 %v5237_v40  ;;  %5805 = vmatprep.subr.bf16.mxu1 %v5935_v25  ;;  %v5273_v23 = vcombine.low %v4434_v17, %v4438_v3 }
 0x24a   : > { %5831 = vmatprep.mubr.msk.bf16.mxu0 %vm1218_vm1, %v4601_v34 }
 0x24b   : > { %5774 = vmatmul.mubr.bf16.vlgmr.msra.gmra.mxu1 %v5934_v43 }
 0x24c   : > { %5777 = vmatprep.mubr.bf16.mxu1 %v5936_v42  ;;  %5806 = vmatpush3.bf16.msra.mxu1 %v5935_v25 }
 0x24d   : > { %5807 = vmatprep.subr.bf16.mxu1 %v5937_v46 }
 0x250   : > { %5808 = vmatpush3.bf16.msra.mxu1 %v5937_v46 }
 0x251   : > { %5809 = vmatprep.subr.bf16.mxu1 %v5939_v9  ;;  %5832 = vmatmul.mubr.msk.bf16.vlgmr.msra.gmra.mxu0 %vm1218_vm1, %v4602_v41 }
 0x252   : > { %5835 = vmatprep.mubr.msk.bf16.mxu0 %vm1218_vm1, %v4603_v16 }
 0x253   : > { %5778 = vmatmul.mubr.bf16.gmra.mxu1 %v5938_v4 }
 0x254   : > { %5810 = vmatpush3.bf16.msra.mxu1 %v5939_v9  ;;  %5821 = vmatprep.mubr.bf16.mxu1 %v5270_v27 }
 0x255   : > { %5811 = vmatprep.subr.bf16.mxu1 %v5940_v10 }
 0x258   : > { %5812 = vmatpush3.bf16.msra.mxu1 %v5940_v10 }
 0x259   : > { %5813 = vmatprep.subr.bf16.mxu1 %v5941_v52  ;;  %5836 = vmatmul.mubr.msk.bf16.gmra.mxu0 %vm1218_vm1, %v4604_v59 }
 0x25c   : > { %5814 = vmatpush3.bf16.msra.mxu1 %v5941_v52 }
 0x25d   : > { %5815 = vmatprep.subr.bf16.mxu1 %v5942_v36 }
 0x260   : > { %5816 = vmatpush3.bf16.msra.mxu1 %v5942_v36 }
 0x261   : > { %5817 = vmatprep.subr.bf16.mxu1 %v5943_v38 }
 0x264   : > { %5818 = vmatpush3.bf16.msra.mxu1 %v5943_v38 }
 0x265   : > { %5819 = vmatprep.subr.bf16.mxu1 %v5944_v31 }
 0x268   : > { %5820 = vmatpush3.bf16.msra.mxu1 %v5944_v31 }
 0x26b   : > { %5822 = vmatmul.mubr.bf16.vlgmr.msra.gmra.mxu1 %v5271_v8 }
 0x26c   : > { %5825 = vmatprep.mubr.bf16.mxu1 %v5272_v6 }
 0x273   : > { %5826 = vmatmul.mubr.bf16.gmra.mxu1 %v5273_v23 }
 0x29e   : > { %v5655_v7 = vpop.f32.mrf.mxu0 }
 0x2a0   : > { %v3024_v39 = vpop.f32.mrf.mxu0 }
 0x2a2   : > { %v5656_v14 = vpop.f32.mrf.mxu0 }
 0x2a4   : > { %v7429_v25 = vpop.f32.mrf.mxu0 }
 0x2aa   : > { %v5631_v34 = vpop.f32.mrf.mxu1 }
 0x2ab   : > { %v3033_v56 = vadd.f32 %v5655_v7, %v5631_v34 }
 0x2ac   : > { %v2887_v45 = vpop.f32.mrf.mxu1 }
 0x2ad   : > { %v3025_v17 = vadd.f32 %v3024_v39, %v2887_v45 }
 0x2ae   : > { %v7431_v40 = vpop.f32.mrf.mxu0  ;;  %v5632_v60 = vpop.f32.mrf.mxu1 }
 0x2b0   : > { %v7433_v19 = vpop.f32.mrf.mxu0  ;;  %v2890_v46 = vpop.f32.mrf.mxu1 }
 0x2b2   : > { %v7435_v43 = vpop.f32.mrf.mxu0 }
 0x2b4   : > { %v7437_v13 = vpop.f32.mrf.mxu0 }
 0x2b7   : > { %v5635_v54 = vpop.f32.mrf.mxu1 }
 0x2b9   : > { %v2903_v0 = vpop.f32.mrf.mxu1 }
 0x2ba   : > { %v3041_v34 = vadd.f32 %v7433_v19, %v2903_v0 }
 0x2bb   : > { %v7439_v22 = vpop.f32.mrf.mxu1 }
 0x2bd   : > { %v7441_v21 = vpop.f32.mrf.mxu1 }
 0x2c0   : > { %v5703_v42 = vpop.f32.mrf.mxu0 }
 0x2c2   : > { %v3399_v57 = vpop.f32.mrf.mxu0 }
 0x2c4   : > { %v5704_v18 = vpop.f32.mrf.mxu0 }
 0x2c6   : > { %v7443_v12 = vpop.f32.mrf.mxu0 }
 0x2c8   : > { %v7445_v48 = vpop.f32.mrf.mxu0 }
 0x2ca   : > { %v7447_v41 = vpop.f32.mrf.mxu0 }
 0x2cb   : > { %v5679_v9 = vpop.f32.mrf.mxu1 }
 0x2cc   : > { %v7449_v28 = vpop.f32.mrf.mxu0  ;;  %v3262_v3 = vadd.f32 %v5679_v9, %v3033_v56 }
 0x2cd   : > { %v3229_v30 = vpop.f32.mrf.mxu1 }
 0x2ce   : > { %v7451_v26 = vpop.f32.mrf.mxu0 }
 0x2cf   : > { %v5680_v16 = vpop.f32.mrf.mxu1 }
 0x2d1   : > { %v3232_v4 = vpop.f32.mrf.mxu1 }
 0x2d3   : > { %v5683_v10 = vpop.f32.mrf.mxu1 }
 0x2d5   : > { %v3245_v35 = vpop.f32.mrf.mxu1 }
 0x2d7   : > { %v5684_v52 = vpop.f32.mrf.mxu1 }
 0x2d9   : > { %v3248_v36 = vpop.f32.mrf.mxu1 }
 0x2e1   : > { %v5751_v27 = vpop.f32.mrf.mxu0 }
 0x2e3   : > { %v3891_v15 = vpop.f32.mrf.mxu0 }
 0x2e5   : > { %v7453_v59 = vpop.f32.mrf.mxu0 }
 0x2e7   : > { %v7455_v38 = vpop.f32.mrf.mxu0 }
 0x2e9   : > { %v7457_v5 = vpop.f32.mrf.mxu0 }
 0x2eb   : > { %v5727_v33 = vpop.f32.mrf.mxu1  ;;  %v7459_v11 = vpop.f32.mrf.mxu0 }
 0x2ec   : > { %7609 = vst [vmem:[#allocation6_spill] sm:$0xff] %v7459_v11  ;;  %v3432_v11 = vadd.f32 %v5703_v42, %v3262_v3 }
 0x2ed   : > { %v3681_v31 = vpop.f32.mrf.mxu1  ;;  %v7461_v61 = vpop.f32.mrf.mxu0 }
 0x2ee   : > { %7610 = vst [vmem:[#allocation4_spill] sm:$0xff] %v7461_v61  ;;  %v3028_v61 = vadd.f32 %v7429_v25, %v2890_v46  ;;  %v3264_v25 = vadd.f32 %v3245_v35, %v3041_v34 }
 0x2ef   : > { %v5728_v29 = vpop.f32.mrf.mxu1  ;;  %v7463_v24 = vpop.f32.mrf.mxu0 }
 0x2f0   : > { %7611 = vst [vmem:[#allocation5_spill] sm:$0xff] %v7463_v24  ;;  %v3036_v24 = vadd.f32 %v5656_v14, %v5632_v60  ;;  %v3052_v14 = vadd.f32 %v7435_v43, %v7439_v22 }
 0x2f1   : > { %v3684_v1 = vpop.f32.mrf.mxu1 }
 0x2f2   : > { %v3267_v19 = vadd.f32 %v5684_v52, %v3052_v14 }
 0x2f3   : > { %v5731_v53 = vpop.f32.mrf.mxu1 }
 0x2f5   : > { %v3697_v58 = vpop.f32.mrf.mxu1 }
 0x2f7   : > { %v5732_v2 = vpop.f32.mrf.mxu1  ;;  %v7626_v34 = vld [vmem:[#allocation5_spill] sm:$0xff] }
 0x2f9   : > { %v7473_v49 = vpop.f32.mrf.mxu1 }
 0x2fa   : > { %7615 = vst [vmem:[#allocation9_spill] sm:$0xff] %v7473_v49  ;;  %v3261_v49 = vadd.f32 %v3232_v4, %v3028_v61  ;;  %v7497_v4 = vld [vmem:[%s7558_s9] ss:$0 sm:$0xff] }
 0x2fc   : > { %v3431_v60 = vadd.f32 %v7443_v12, %v3261_v49  ;;  %v3434_v12 = vadd.f32 %v7447_v41, %v3264_v25 }
 0x2fe   : > { %v3713_v0 = vadd.f32 %v3684_v1, %v3431_v60 }
 0x300   : > { %v3923_v35 = vadd.f32 %v7455_v38, %v3713_v0 }
 0x301   : > { %v7465_v50 = vpop.f32.mrf.mxu0 }
 0x303   : > { %v7467_v37 = vpop.f32.mrf.mxu0 }
 0x304   : > { %7612 = vst [vmem:[#allocation3_spill] sm:$0xff] %v7467_v37  ;;  %v3714_v37 = vadd.f32 %v5727_v33, %v3432_v11 }
 0x305   : > { %v7469_v47 = vpop.f32.mrf.mxu0 }
 0x306   : > { %7613 = vst [vmem:[#allocation7_spill] sm:$0xff] %v7469_v47 }
 0x307   : > { %v7471_v63 = vpop.f32.mrf.mxu0 }
 0x308   : > { %7614 = vst [vmem:[#allocation8_spill] sm:$0xff] %v7471_v63  ;;  %v3260_v63 = vadd.f32 %v3229_v30, %v3025_v17 }
 0x309   : > { %v7475_v51 = vpop.f32.mrf.mxu0 }
 0x30a   : > { %7616 = vst [vmem:[#allocation10_spill] sm:$0xff] %v7475_v51  ;;  %v3263_v51 = vadd.f32 %v5680_v16, %v3036_v24  ;;  %v3430_v7 = vadd.f32 %v3399_v57, %v3260_v63 }
 0x30b   : > { %v5775_v32 = vpop.f32.mrf.mxu1  ;;  %v7477_v8 = vpop.f32.mrf.mxu0  ;;  %v7620_v24 = vld [vmem:[#allocation3_spill] sm:$0xff] }
 0x30c   : > { %7617 = vst [vmem:[#allocation11_spill] sm:$0xff] %v7477_v8  ;;  %v3049_v8 = vadd.f32 %v7431_v40, %v5635_v54  ;;  %v3712_v45 = vadd.f32 %v3681_v31, %v3430_v7  ;;  %v3433_v9 = vadd.f32 %v5704_v18, %v3263_v51  ;;  %v3924_v40 = vadd.f32 %v5751_v27, %v3714_v37  ;;  %v7622_v37 = vld [vmem:[#allocation6_spill] sm:$0xff] }
 0x30d   : > { %v4062_v55 = vpop.f32.mrf.mxu1  ;;  %v7479_v62 = vpop.f32.mrf.mxu0  ;;  %v3044_v54 = vadd.f32 %v7437_v13, %v7441_v21  ;;  %v3716_v21 = vadd.f32 %v3697_v58, %v3434_v12  ;;  %v7623_v51 = vld [vmem:[#allocation7_spill] sm:$0xff] }
 0x30e   : > { %7618 = vst [vmem:[#allocation12_spill] sm:$0xff] %v7479_v62  ;;  %v3715_v42 = vadd.f32 %v5728_v29, %v3433_v9  ;;  %v4095_v30 = vadd.f32 %v5775_v32, %v3924_v40  ;;  %v3922_v16 = vadd.f32 %v3891_v15, %v3712_v45 }
 0x30f   : > { %v5776_v6 = vpop.f32.mrf.mxu1  ;;  %v7481_v44 = vpop.f32.mrf.mxu0  ;;  %v3265_v43 = vadd.f32 %v3248_v36, %v3044_v54  ;;  %v3926_v63 = vadd.f32 %v7622_v37, %v3716_v21 }
 0x310   : > { %7619 = vst [vmem:[#allocation13_spill] sm:$0xff] %v7481_v44  ;;  %v3266_v44 = vadd.f32 %v5683_v10, %v3049_v8  ;;  %v4093_v27 = vadd.f32 %v4062_v55, %v3922_v16  ;;  %v3925_v13 = vadd.f32 %v7453_v59, %v3715_v42  ;;  %v4377_v36 = vadd.f32 %v7465_v50, %v4095_v30  ;;  %v5295_v50 = vld [vmem:[%s7559_s10] ss:$0 sm:$0xff]  ;;  %v7624_v55 = vld [vmem:[#allocation4_spill] sm:$0xff] }
 0x311   : > { %v4065_v20 = vpop.f32.mrf.mxu1  ;;  %v5833_v23 = vpop.f32.mrf.mxu0  ;;  %v3435_v31 = vadd.f32 %v7451_v26, %v3265_v43  ;;  %v7627_v14 = vld [vmem:[#allocation10_spill] sm:$0xff] }
 0x312   : > { %v3436_v57 = vadd.f32 %v7445_v48, %v3266_v44  ;;  %v3437_v48 = vadd.f32 %v7449_v28, %v3267_v19  ;;  %v4096_v41 = vadd.f32 %v5776_v6, %v3925_v13  ;;  %v4695_v52 = vmul.f32 %v5833_v23, %v7497_v4  ;;  %v7625_v44 = vld [vmem:[#allocation8_spill] sm:$0xff] }
 0x313   : > { %v5779_v47 = vpop.f32.mrf.mxu1  ;;  %v4655_v62 = vpop.f32.mrf.mxu0  ;;  %v4094_v11 = vadd.f32 %v4065_v20, %v3923_v35  ;;  %v4375_v28 = vadd.f32 %v7620_v24, %v4093_v27  ;;  %v7628_v16 = vld [vmem:[#allocation11_spill] sm:$0xff] }
 0x314   : > { %v3718_v22 = vadd.f32 %v5731_v53, %v3436_v57  ;;  %v3719_v33 = vadd.f32 %v5732_v2, %v3437_v48  ;;  %v7621_v53 = vld [vmem:[#allocation9_spill] sm:$0xff]  ;;  %v4693_v26 = vmul.f32 %v7497_v4, %v4655_v62  ;;  %v4378_v32 = vadd.f32 %v7623_v51, %v4096_v41 }
 0x315   : > { %v4078_v39 = vpop.f32.mrf.mxu1  ;;  %v5834_v46 = vpop.f32.mrf.mxu0  ;;  %v3717_v38 = vadd.f32 %v7621_v53, %v3435_v31  ;;  %v4376_v20 = vadd.f32 %v7625_v44, %v4094_v11  ;;  %v7629_v12 = vld [vmem:[#allocation12_spill] sm:$0xff] }
 0x316   : > { %v3928_v59 = vadd.f32 %v7457_v5, %v3718_v22  ;;  %v4097_v8 = vadd.f32 %v4078_v39, %v3926_v63  ;;  %v3929_v6 = vadd.f32 %v7624_v55, %v3719_v33  ;;  %v4696_v17 = vmul.f32 %v5834_v46, %v7497_v4 }
 0x317   : > { %v5780_v18 = vpop.f32.mrf.mxu1  ;;  %v4658_v10 = vpop.f32.mrf.mxu0  ;;  %v3927_v39 = vadd.f32 %v7626_v34, %v3717_v38  ;;  %v7630_v41 = vld [vmem:[#allocation13_spill] sm:$0xff] }
 0x318   : > { %v4099_v58 = vadd.f32 %v5779_v47, %v3928_v59  ;;  %v4100_v7 = vadd.f32 %v5780_v18, %v3929_v6  ;;  %v4694_v45 = vmul.f32 %v7497_v4, %v4658_v10  ;;  %v4379_v43 = vadd.f32 %v7628_v16, %v4097_v8 }
 0x319   : > { %v4081_v15 = vpop.f32.mrf.mxu1  ;;  %v5837_v61 = vpop.f32.mrf.mxu0 }
 0x31a   : > { %v4381_v25 = vadd.f32 %v7627_v14, %v4099_v58  ;;  %v4699_v42 = vmul.f32 %v5837_v61, %v7497_v4  ;;  %v4098_v46 = vadd.f32 %v4081_v15, %v3927_v39  ;;  %v4382_v10 = vadd.f32 %v7629_v12, %v4100_v7 }
 0x31b   : > { %v4671_v56 = vpop.f32.mrf.mxu0 }
 0x31c   : > { %v4697_v27 = vmul.f32 %v7497_v4, %v4671_v56 }
 0x31d   : > { %v5838_v19 = vpop.f32.mrf.mxu0 }
 0x31f   : > { %v4674_v35 = vpop.f32.mrf.mxu0 }
 0x32b   : > { %v5823_v29 = vpop.f32.mrf.mxu1 }
 0x32c   : > { %v4587_v1 = vadd.f32 %v5823_v29, %v4377_v36  ;;  %v4700_v36 = vmul.f32 %v5838_v19, %v7497_v4  ;;  %v4698_v29 = vmul.f32 %v7497_v4, %v4674_v35 }
 0x32d   : > { %v4554_v2 = vpop.f32.mrf.mxu1 }
 0x32e   : > { %v4703_v49 = vadd.f32 %v4695_v52, %v4587_v1  ;;  %v4585_v5 = vadd.f32 %v4554_v2, %v4375_v28  ;;  %v4380_v52 = vadd.f32 %v7630_v41, %v4098_v46 }
 0x32f   : > { %v5824_v47 = vpop.f32.mrf.mxu1 }
 0x330   : > { %v4718_v62 = vadd.f32 %v5295_v50, %v4703_v49  ;;  %v4701_v3 = vadd.f32 %v4693_v26, %v4585_v5  ;;  %v4588_v23 = vadd.f32 %v5824_v47, %v4378_v32 }
 0x331   : > { %v4557_v9 = vpop.f32.mrf.mxu1 }
 0x332   : > { %4726 = vst [vmem:[%s7524_s28 + $0x10] sm:$0xff] %v4718_v62  ;;  %v4716_v60 = vadd.f32 %v5295_v50, %v4701_v3  ;;  %v4704_v40 = vadd.f32 %v4696_v17, %v4588_v23  ;;  %v4586_v54 = vadd.f32 %v4557_v9, %v4376_v20 }
 0x333   : > { %v5827_v0 = vpop.f32.mrf.mxu1 }
 0x334   : > { %4724 = vst [vmem:[%s7524_s28] sm:$0xff] %v4716_v60  ;;  %v4719_v57 = vadd.f32 %v5295_v50, %v4704_v40  ;;  %v4702_v18 = vadd.f32 %v4694_v45, %v4586_v54  ;;  %v4591_v30 = vadd.f32 %v5827_v0, %v4381_v25 }
 0x335   : > { %v4570_v22 = vpop.f32.mrf.mxu1 }
 0x336   : > { %4727 = vst [vmem:[%s7524_s28 + $0x18] sm:$0xff] %v4719_v57  ;;  %v4717_v13 = vadd.f32 %v5295_v50, %v4702_v18  ;;  %v4707_v21 = vadd.f32 %v4699_v42, %v4591_v30  ;;  %v4589_v48 = vadd.f32 %v4570_v22, %v4379_v43 }
 0x337   : > { %v5828_v15 = vpop.f32.mrf.mxu1 }
 0x338   : > { %4725 = vst [vmem:[%s7524_s28 + $0x8] sm:$0xff] %v4717_v13  ;;  %v4722_v33 = vadd.f32 %v5295_v50, %v4707_v21  ;;  %v4705_v31 = vadd.f32 %v4697_v27, %v4589_v48  ;;  %v4592_v11 = vadd.f32 %v5828_v15, %v4382_v10 }
 0x339   : > { %v4573_v59 = vpop.f32.mrf.mxu1 }
 0x33a   : > { %4730 = vst [vmem:[%s7524_s28 + $0x30] sm:$0xff] %v4722_v33  ;;  %v4720_v61 = vadd.f32 %v5295_v50, %v4705_v31  ;;  %v4708_v1 = vadd.f32 %v4700_v36, %v4592_v11  ;;  %v4590_v24 = vadd.f32 %v4573_v59, %v4380_v52 }
 0x33c   : > { %4728 = vst [vmem:[%s7524_s28 + $0x20] sm:$0xff] %v4720_v61  ;;  %v4723_v28 = vadd.f32 %v5295_v50, %v4708_v1  ;;  %v4706_v53 = vadd.f32 %v4698_v29, %v4590_v24 }
 0x33e   : > { %4731 = vst [vmem:[%s7524_s28 + $0x38] sm:$0xff] %v4723_v28  ;;  %v4721_v38 = vadd.f32 %v5295_v50, %v4706_v53 }
 0x340   : > { %4729 = vst [vmem:[%s7524_s28 + $0x28] sm:$0xff] %v4721_v38 }
 0x341 PF: > { %s21_s17 = sadd.s32 1, %s5953_s17  }
 0x342   : > { %p18_p5 = scmp.ge.s32.totalorder %s21_s17, 4  }
 0x344   :  { %20 = sbr.rel (!%p18_p5) target bundleno = 1 (0x1), region = 118 }

</bundles_post_ra>
